<compile_context>
chip_gen: v7x
topology: tpu7x:2x2x1
jax: 0.10.0
libtpu: 0.0.40
codegen_flags: <defaults>
</compile_context>

<pallas_src>
import functools

import jax
import jax.numpy as jnp
import numpy as np
from jax.experimental import pallas as pl
from jax.experimental.pallas import tpu as pltpu

EPS = 1e-5          # PyTorch BatchNorm2d default eps
LANE = 128          # vreg lane width
MAX_TM = 1024       # max rows of the im2col matrix per grid step


def _round_up(v, m):
    return (v + m - 1) // m * m


def _cdiv(a, b):
    return -(-a // b)


def _choose_tm(m):
    # Guarantee enough grid steps for software pipelining: >=4 steps when M allows
    # (>=2 per v7x TensorCore, double-buffered), >=2 otherwise, capped at MAX_TM rows.
    if m >= 64:
        min_steps = 4
    elif m >= 16:
        min_steps = 2
    else:
        min_steps = 1
    steps = max(min_steps, _cdiv(m, MAX_TM))
    return max(8, _round_up(_cdiv(m, steps), 8))


# ----------------------------- Pallas kernels ------------------------------ #

def _conv_kernel(a_ref, w_ref, b_ref, o_ref, *, relu):
    # y = (A @ W) + shift ; optional ReLU.  bf16 operands, f32 accumulate/epilogue.
    y = jnp.dot(a_ref[...], w_ref[...], preferred_element_type=jnp.float32)
    y = y + b_ref[...]
    if relu:
        y = jnp.maximum(y, 0.0)
    o_ref[...] = y.astype(o_ref.dtype)


def _conv_res_kernel(a_ref, w_ref, b_ref, r_ref, o_ref, *, relu):
    # y = (A @ W) + shift + residual ; optional ReLU
    y = jnp.dot(a_ref[...], w_ref[...], preferred_element_type=jnp.float32)
    y = y + b_ref[...] + r_ref[...].astype(jnp.float32)
    if relu:
        y = jnp.maximum(y, 0.0)
    o_ref[...] = y.astype(o_ref.dtype)


def _conv_convres_kernel(a_ref, w_ref, b_ref, as_ref, ws_ref, bs_ref, o_ref, *, relu):
    # main conv + fused 1x1-conv shortcut (both BN-folded), add, optional ReLU
    y = jnp.dot(a_ref[...], w_ref[...], preferred_element_type=jnp.float32) + b_ref[...]
    r = jnp.dot(as_ref[...], ws_ref[...], preferred_element_type=jnp.float32) + bs_ref[...]
    y = y + r
    if relu:
        y = jnp.maximum(y, 0.0)
    o_ref[...] = y.astype(o_ref.dtype)


def _conv_res_pool_fc_kernel(a_ref, w_ref, b_ref, r_ref, p_ref, fcw_ref, fcb_ref, o_ref):
    # final BasicBlock conv2 + residual + ReLU, then avg-pool (a small bf16 matmul
    # against a pooling matrix -> avoids cross-sublane reshapes) and the FC layer.
    # Whole-MXU-path bf16 with f32 accumulation.
    y = jnp.dot(a_ref[...], w_ref[...], preferred_element_type=jnp.float32)
    y = jnp.maximum(y + b_ref[...] + r_ref[...].astype(jnp.float32), 0.0)
    pooled = jnp.dot(p_ref[...], y.astype(jnp.bfloat16),
                     preferred_element_type=jnp.float32)
    o_ref[...] = jnp.dot(pooled.astype(jnp.bfloat16), fcw_ref[...],
                         preferred_element_type=jnp.float32) + fcb_ref[...]


def _pool_fc_kernel(x_ref, p_ref, fcw_ref, fcb_ref, o_ref):
    # fallback: stand-alone avg-pool + FC (pooling via bf16 matmul, f32 accumulate)
    pooled = jnp.dot(p_ref[...], x_ref[...], preferred_element_type=jnp.float32)
    o_ref[...] = jnp.dot(pooled.astype(jnp.bfloat16), fcw_ref[...],
                         preferred_element_type=jnp.float32) + fcb_ref[...]


# ------------------------------ spec helpers -------------------------------- #

def _mspec(tm, k):
    # block tiled over the M (rows) grid axis
    return pl.BlockSpec((tm, k), lambda i: (i, 0))


def _cspec(shape):
    # whole-array block, resident across grid steps (constant index map)
    return pl.BlockSpec(shape, lambda i, _nd=len(shape): (0,) * _nd)


# --------------------------- Pallas call wrappers --------------------------- #

def fused_conv(a, w, shift, *, residual=None, shortcut=None, relu=True,
               out_dtype=jnp.bfloat16):
    """relu((a @ w) + shift [+ residual | + (a_s @ w_s + shift_s)]), M-tiled grid."""
    M, K = a.shape
    NP = w.shape[1]
    tm = _choose_tm(M)
    m_pad = _round_up(M, tm)

    def padrows(x):
        # zero-padded rows get shift+relu applied but are sliced off below (out[:M]);
        # no downstream consumer ever sees them.
        return x if x.shape[0] == m_pad else jnp.pad(x, ((0, m_pad - x.shape[0]), (0, 0)))

    args = [padrows(a), w, shift]
    specs = [_mspec(tm, K), _cspec(w.shape), _cspec(shift.shape)]
    if shortcut is not None:
        a_s, w_s, b_s = shortcut
        kernel = functools.partial(_conv_convres_kernel, relu=relu)
        args += [padrows(a_s), w_s, b_s]
        specs += [_mspec(tm, a_s.shape[1]), _cspec(w_s.shape), _cspec(b_s.shape)]
    elif residual is not None:
        kernel = functools.partial(_conv_res_kernel, relu=relu)
        args += [padrows(residual)]
        specs += [_mspec(tm, NP)]
    else:
        kernel = functools.partial(_conv_kernel, relu=relu)

    out = pl.pallas_call(
        kernel,
        out_shape=jax.ShapeDtypeStruct((m_pad, NP), out_dtype),
        grid=(m_pad // tm,),
        in_specs=specs,
        out_specs=_mspec(tm, NP),
        # NOTE: pipeline_mode=pl.Buffered(3) on the streamed A specs is a further knob
        # if profiling still shows exposed DMA; default double-buffering is kept here.
        compiler_params=pltpu.CompilerParams(
            dimension_semantics=("parallel",)),
    )(*args)
    return out[:M] if m_pad != M else out


# ------------------------------ JAX glue ----------------------------------- #

def im2col(x, c_real, kh, kw, stride, padding, k_pad):
    """im2col on the REAL channel count, K padded once to k_pad (multiple of 128)."""
    x = x[..., :c_real]                      # drop zero lanes BEFORE building patches
    if padding:
        x = jnp.pad(x, ((0, 0), (padding, padding), (padding, padding), (0, 0)))
    n, h, w, c = x.shape
    ho = (h - kh) // stride + 1
    wo = (w - kw) // stride + 1
    cols = [x[:, i:i + stride * ho:stride, j:j + stride * wo:stride, :]
            for i in range(kh) for j in range(kw)]
    kc = kh * kw * c
    if k_pad > kc:                           # fold K padding into the single concat
        cols.append(jnp.zeros((n, ho, wo, k_pad - kc), x.dtype))
    patches = cols[0] if len(cols) == 1 else jnp.concatenate(cols, axis=-1)
    return patches.reshape(n * ho * wo, k_pad), (n, ho, wo)


# ------------------- one-time parameter packing (hoisted) ------------------- #

def _fold_bn(w_oihw, bn):
    # Fold eval-mode BN (gamma, beta, running_mean, running_var) into the conv:
    #   scale = gamma / sqrt(var + eps) folded into W; shift = beta - mean*scale.
    gamma, beta, mean, var = bn
    scale = gamma * jax.lax.rsqrt(var + EPS)
    shift = beta - mean * scale
    return w_oihw * scale[:, None, None, None], shift


def pack_conv(w_oihw, bn):
    cout, cin, kh, kw = w_oihw.shape
    w, shift = _fold_bn(w_oihw, bn)
    w = jnp.transpose(w, (2, 3, 1, 0)).reshape(kh * kw * cin, cout)   # tap-major, real cin
    k_real = kh * kw * cin
    k_pad = _round_up(k_real, LANE)
    cout_p = _round_up(cout, LANE)
    w = jnp.pad(w, ((0, k_pad - k_real), (0, cout_p - cout))).astype(jnp.bfloat16)
    b = jnp.pad(shift, (0, cout_p - cout)).reshape(1, cout_p).astype(jnp.float32)
    return {'w': w, 'b': b, 'cin': cin, 'kh': kh, 'kw': kw}


def pack_shortcut(w_oihw, bn, cin_stored):
    # 1x1 shortcut consumes the stored (lane-padded) activation directly: no im2col.
    cout, cin, _, _ = w_oihw.shape
    w, shift = _fold_bn(w_oihw, bn)
    w = w.reshape(cout, cin).T                                        # (cin, cout)
    cout_p = _round_up(cout, LANE)
    w = jnp.pad(w, ((0, cin_stored - cin), (0, cout_p - cout))).astype(jnp.bfloat16)
    b = jnp.pad(shift, (0, cout_p - cout)).reshape(1, cout_p).astype(jnp.float32)
    return {'w': w, 'b': b}


def pack_fc(fc_w, fc_b, feat_p):
    nc, lin = fc_w.shape
    nc_p = _round_up(nc, LANE)
    fcw = jnp.pad(fc_w.T, ((0, feat_p - lin), (0, nc_p - nc))).astype(jnp.bfloat16)
    fcb = jnp.pad(fc_b, (0, nc_p - nc)).reshape(1, nc_p).astype(jnp.float32)
    return {'w': fcw, 'b': fcb, 'nc': nc}


def pack_params(params):
    packed = {'conv1': pack_conv(params['conv1']['w'], params['conv1']['bn'])}
    stages = []
    for stage in params['stages']:
        blocks = []
        for blk in stage:
            pb = {'c1': pack_conv(blk['w1'], blk['bn1']),
                  'c2': pack_conv(blk['w2'], blk['bn2'])}
            if 'ws' in blk:
                cin_stored = _round_up(blk['ws'].shape[1], LANE)
                pb['cs'] = pack_shortcut(blk['ws'], blk['bns'], cin_stored)
            blocks.append(pb)
        stages.append(blocks)
    packed['stages'] = stages
    feat_p = stages[-1][-1]['c2']['w'].shape[1]
    packed['fc'] = pack_fc(params['fc_w'], params['fc_b'], feat_p)
    return packed


# ------------------------------ forward pass -------------------------------- #

def apply_conv(x, conv, stride, relu=True):
    a, (n, ho, wo) = im2col(x, conv['cin'], conv['kh'], conv['kw'],
                            stride, (conv['kh'] - 1) // 2, conv['w'].shape[0])
    y = fused_conv(a, conv['w'], conv['b'], relu=relu)
    return y.reshape(n, ho, wo, conv['w'].shape[1])


def basic_block(x, p, stride):
    out = apply_conv(x, p['c1'], stride, relu=True)
    c2 = p['c2']
    a2, (n, ho, wo) = im2col(out, c2['cin'], 3, 3, 1, 1, c2['w'].shape[0])
    if 'cs' in p:
        # 1x1 stride-s shortcut: strided subsample of the stored lane-padded activation
        a_s = x[:, ::stride, ::stride, :].reshape(-1, x.shape[-1])
        y = fused_conv(a2, c2['w'], c2['b'],
                       shortcut=(a_s, p['cs']['w'], p['cs']['b']), relu=True)
    else:
        y = fused_conv(a2, c2['w'], c2['b'],
                       residual=x.reshape(-1, x.shape[-1]), relu=True)
    return y.reshape(n, ho, wo, c2['w'].shape[1])


def final_block_pool_fc(x, p, fc):
    # identity-shortcut final BasicBlock: conv2 fused with avg_pool2d(4) + Linear.
    # M = n*4*4 rows (~tens of KiB total) -> single grid step; tiling would not pay off.
    out = apply_conv(x, p['c1'], 1, relu=True)
    c2 = p['c2']
    a2, (n, ho, wo) = im2col(out, c2['cin'], 3, 3, 1, 1, c2['w'].shape[0])
    r = x.reshape(-1, x.shape[-1])
    hw = ho * wo
    # compile-time constant pooling matrix (numpy -> baked into the program, no glue ops)
    pool = jnp.asarray(np.repeat(np.eye(n, dtype=np.float32), hw, axis=1) / hw,
                       dtype=jnp.bfloat16)                            # (n, n*hw)
    nc_p = fc['w'].shape[1]
    args = (a2, c2['w'], c2['b'], r, pool, fc['w'], fc['b'])
    logits = pl.pallas_call(
        _conv_res_pool_fc_kernel,
        out_shape=jax.ShapeDtypeStruct((n, nc_p), jnp.float32),
        grid=(1,),
        in_specs=[_cspec(z.shape) for z in args],
        out_specs=_cspec((n, nc_p)),
    )(*args)
    return logits[:, :fc['nc']]


def pool_and_fc(x, fc):
    # fallback path (only used if the last block has a conv shortcut)
    n, h, w, cp = x.shape
    assert h == 4 and w == 4, "avg_pool2d(4) assumes a 4x4 final feature map"
    feats = x.reshape(n * h * w, cp)
    pool = jnp.asarray(np.repeat(np.eye(n, dtype=np.float32), h * w, axis=1) / (h * w),
                       dtype=jnp.bfloat16)
    nc_p = fc['w'].shape[1]
    args = (feats, pool, fc['w'], fc['b'])
    logits = pl.pallas_call(
        _pool_fc_kernel,
        out_shape=jax.ShapeDtypeStruct((n, nc_p), jnp.float32),
        grid=(1,),
        in_specs=[_cspec(z.shape) for z in args],
        out_specs=_cspec((n, nc_p)),
    )(*args)
    return logits[:, :fc['nc']]


def resnet_forward(x_nchw, packed):
    x = jnp.transpose(x_nchw, (0, 2, 3, 1)).astype(jnp.bfloat16)      # NCHW -> NHWC
    x = apply_conv(x, packed['conv1'], 1, relu=True)

    stage_strides = (1, 2, 2, 2)
    blocks = []
    for stage, stride in zip(packed['stages'], stage_strides):
        for bi, blk in enumerate(stage):
            blocks.append((blk, stride if bi == 0 else 1))

    for blk, s in blocks[:-1]:
        x = basic_block(x, blk, s)

    last_blk, last_s = blocks[-1]
    if last_s == 1 and 'cs' not in last_blk and x.shape[1] == 4 and x.shape[2] == 4:
        return final_block_pool_fc(x, last_blk, packed['fc'])
    x = basic_block(x, last_blk, last_s)
    return pool_and_fc(x, packed['fc'])


# --------------------------- deterministic init ----------------------------- #

def init_params(key, in_channels=8, num_block=(2, 2, 2, 2), num_classes=100):
    keys = iter(jax.random.split(key, 256))

    def conv_w(cout, cin, k):
        fan = cin * k * k
        return jax.random.normal(next(keys), (cout, cin, k, k),
                                 jnp.float32) * (2.0 / fan) ** 0.5

    def bn(c):
        # (gamma, beta, running_mean, running_var) -- eval-mode statistics
        return (jnp.ones((c,), jnp.float32), jnp.zeros((c,), jnp.float32),
                jnp.zeros((c,), jnp.float32), jnp.ones((c,), jnp.float32))

    params = {'conv1': {'w': conv_w(in_channels, 3, 3), 'bn': bn(in_channels)}}
    stage_channels = (in_channels, in_channels * 2, in_channels * 4, in_channels * 8)
    stages = []
    c_in = in_channels
    for c_out, nb, stride in zip(stage_channels, num_block, (1, 2, 2, 2)):
        blocks = []
        for s in [stride] + [1] * (nb - 1):
            blk = {'w1': conv_w(c_out, c_in, 3), 'bn1': bn(c_out),
                   'w2': conv_w(c_out, c_out, 3), 'bn2': bn(c_out)}
            if s != 1 or c_in != c_out:
                blk['ws'] = conv_w(c_out, c_in, 1)
                blk['bns'] = bn(c_out)
            blocks.append(blk)
            c_in = c_out
        stages.append(blocks)
    params['stages'] = stages
    linear_sz = in_channels * 8                                        # 4x4 -> 1x1 pooling
    params['fc_w'] = jax.random.normal(next(keys), (num_classes, linear_sz),
                                       jnp.float32) * 0.05
    params['fc_b'] = jnp.zeros((num_classes,), jnp.float32)
    return params


# --------------------------------- main ------------------------------------ #

if __name__ == "__main__":
    key = jax.random.PRNGKey(0)
    kp, kx = jax.random.split(key)
    # small config: in_channels reduced 64 -> 8; CIFAR-style 3x32x32 input, batch 2.
    params = init_params(kp, in_channels=8, num_block=(2, 2, 2, 2), num_classes=100)
    packed = pack_params(params)       # one-time BN fold / transpose / pad / bf16 cast
    x = jax.random.normal(kx, (2, 3, 32, 32), jnp.float32)             # NCHW like PyTorch
    fwd = jax.jit(lambda inp: resnet_forward(inp, packed))             # weights hoisted
    out = jax.block_until_ready(fwd(x))
    assert out.shape == (2, 100) and out.dtype == jnp.float32
    print("KERNEL_OK")
</pallas_src>

<mosaic_0001>
module attributes {stable_mosaic.version = 11 : i64} {
  func.func @_conv_kernel(%arg0: i32, %arg1: memref<512x128xbf16, #tpu.memory_space<vmem>>, %arg2: memref<128x128xbf16, #tpu.memory_space<vmem>>, %arg3: memref<1x128xf32, #tpu.memory_space<vmem>>, %arg4: memref<512x128xbf16, #tpu.memory_space<vmem>>) attributes {dimension_semantics = [#tpu.dimension_semantics<parallel>], iteration_bounds = array<i64: 4>, scalar_prefetch = 0 : i64, scratch_operands = 0 : i64, tpu.core_type = #tpu.core_type<tc>, window_params = [{transform_indices = @transform_0, window_bounds = array<i64: 512, 128>}, {pipeline_mode = #tpu.pipeline_mode<synchronous>, transform_indices = @transform_1, window_bounds = array<i64: 128, 128>}, {pipeline_mode = #tpu.pipeline_mode<synchronous>, transform_indices = @transform_2, window_bounds = array<i64: 1, 128>}, {transform_indices = @transform_3, window_bounds = array<i64: 512, 128>}]} {
    %c0 = arith.constant 0 : index
    %c0_0 = arith.constant 0 : index
    %0 = vector.load %arg1[%c0, %c0_0] : memref<512x128xbf16, #tpu.memory_space<vmem>>, vector<512x128xbf16>
    %c0_1 = arith.constant 0 : index
    %c0_2 = arith.constant 0 : index
    %1 = vector.load %arg2[%c0_1, %c0_2] : memref<128x128xbf16, #tpu.memory_space<vmem>>, vector<128x128xbf16>
    %cst = arith.constant dense<0.000000e+00> : vector<512x128xf32>
    %2 = tpu.matmul %0, %1, %cst {dimension_numbers = #tpu.dot_dimension_numbers<[1], [0], [0], [1], [0, 0, 1, 1], [], []>} : vector<512x128xbf16>, vector<128x128xbf16>, vector<512x128xf32> -> vector<512x128xf32>
    %c0_3 = arith.constant 0 : index
    %c0_4 = arith.constant 0 : index
    %3 = vector.load %arg3[%c0_3, %c0_4] : memref<1x128xf32, #tpu.memory_space<vmem>>, vector<1x128xf32>
    %4 = vector.broadcast %3 : vector<1x128xf32> to vector<512x128xf32>
    %5 = arith.addf %2, %4 : vector<512x128xf32>
    %cst_5 = arith.constant 0.000000e+00 : f32
    %6 = vector.broadcast %cst_5 : f32 to vector<512x128xf32>
    %7 = arith.maximumf %5, %6 : vector<512x128xf32>
    %8 = arith.truncf %7 : vector<512x128xf32> to vector<512x128xbf16>
    %c0_6 = arith.constant 0 : index
    %c0_7 = arith.constant 0 : index
    %9 = vector.load %arg4[%c0_6, %c0_7] : memref<512x128xbf16, #tpu.memory_space<vmem>>, vector<512x128xbf16>
    tpu.vector_store %arg4[%c0_6, %c0_7], %8 {strides = array<i32>} : memref<512x128xbf16, #tpu.memory_space<vmem>>, vector<512x128xbf16>,
    return
  }
  func.func @transform_0(%arg0: i32) -> (i32, i32) {
    %c0_i32 = arith.constant 0 : i32
    %c0_i32_0 = arith.constant 0 : i32
    return %arg0, %c0_i32 : i32, i32
  }
  func.func @transform_1(%arg0: i32) -> (i32, i32) {
    %c0_i32 = arith.constant 0 : i32
    %c0_i32_0 = arith.constant 0 : i32
    %c0_i32_1 = arith.constant 0 : i32
    return %c0_i32, %c0_i32_0 : i32, i32
  }
  func.func @transform_2(%arg0: i32) -> (i32, i32) {
    %c0_i32 = arith.constant 0 : i32
    %c0_i32_0 = arith.constant 0 : i32
    %c0_i32_1 = arith.constant 0 : i32
    return %c0_i32, %c0_i32_0 : i32, i32
  }
  func.func @transform_3(%arg0: i32) -> (i32, i32) {
    %c0_i32 = arith.constant 0 : i32
    %c0_i32_0 = arith.constant 0 : i32
    return %arg0, %c0_i32 : i32, i32
  }
}

module attributes {stable_mosaic.version = 11 : i64} {
  func.func @_conv_res_kernel(%arg0: i32, %arg1: memref<512x128xbf16, #tpu.memory_space<vmem>>, %arg2: memref<128x128xbf16, #tpu.memory_space<vmem>>, %arg3: memref<1x128xf32, #tpu.memory_space<vmem>>, %arg4: memref<512x128xbf16, #tpu.memory_space<vmem>>, %arg5: memref<512x128xbf16, #tpu.memory_space<vmem>>) attributes {dimension_semantics = [#tpu.dimension_semantics<parallel>], iteration_bounds = array<i64: 4>, scalar_prefetch = 0 : i64, scratch_operands = 0 : i64, tpu.core_type = #tpu.core_type<tc>, window_params = [{transform_indices = @transform_0, window_bounds = array<i64: 512, 128>}, {pipeline_mode = #tpu.pipeline_mode<synchronous>, transform_indices = @transform_1, window_bounds = array<i64: 128, 128>}, {pipeline_mode = #tpu.pipeline_mode<synchronous>, transform_indices = @transform_2, window_bounds = array<i64: 1, 128>}, {transform_indices = @transform_3, window_bounds = array<i64: 512, 128>}, {transform_indices = @transform_4, window_bounds = array<i64: 512, 128>}]} {
    %c0 = arith.constant 0 : index
    %c0_0 = arith.constant 0 : index
    %0 = vector.load %arg1[%c0, %c0_0] : memref<512x128xbf16, #tpu.memory_space<vmem>>, vector<512x128xbf16>
    %c0_1 = arith.constant 0 : index
    %c0_2 = arith.constant 0 : index
    %1 = vector.load %arg2[%c0_1, %c0_2] : memref<128x128xbf16, #tpu.memory_space<vmem>>, vector<128x128xbf16>
    %cst = arith.constant dense<0.000000e+00> : vector<512x128xf32>
    %2 = tpu.matmul %0, %1, %cst {dimension_numbers = #tpu.dot_dimension_numbers<[1], [0], [0], [1], [0, 0, 1, 1], [], []>} : vector<512x128xbf16>, vector<128x128xbf16>, vector<512x128xf32> -> vector<512x128xf32>
    %c0_3 = arith.constant 0 : index
    %c0_4 = arith.constant 0 : index
    %3 = vector.load %arg3[%c0_3, %c0_4] : memref<1x128xf32, #tpu.memory_space<vmem>>, vector<1x128xf32>
    %4 = vector.broadcast %3 : vector<1x128xf32> to vector<512x128xf32>
    %5 = arith.addf %2, %4 : vector<512x128xf32>
    %c0_5 = arith.constant 0 : index
    %c0_6 = arith.constant 0 : index
    %6 = vector.load %arg4[%c0_5, %c0_6] : memref<512x128xbf16, #tpu.memory_space<vmem>>, vector<512x128xbf16>
    %7 = arith.extf %6 : vector<512x128xbf16> to vector<512x128xf32>
    %8 = arith.addf %5, %7 : vector<512x128xf32>
    %cst_7 = arith.constant 0.000000e+00 : f32
    %9 = vector.broadcast %cst_7 : f32 to vector<512x128xf32>
    %10 = arith.maximumf %8, %9 : vector<512x128xf32>
    %11 = arith.truncf %10 : vector<512x128xf32> to vector<512x128xbf16>
    %c0_8 = arith.constant 0 : index
    %c0_9 = arith.constant 0 : index
    %12 = vector.load %arg5[%c0_8, %c0_9] : memref<512x128xbf16, #tpu.memory_space<vmem>>, vector<512x128xbf16>
    tpu.vector_store %arg5[%c0_8, %c0_9], %11 {strides = array<i32>} : memref<512x128xbf16, #tpu.memory_space<vmem>>, vector<512x128xbf16>,
    return
  }
  func.func @transform_0(%arg0: i32) -> (i32, i32) {
    %c0_i32 = arith.constant 0 : i32
    %c0_i32_0 = arith.constant 0 : i32
    return %arg0, %c0_i32 : i32, i32
  }
  func.func @transform_1(%arg0: i32) -> (i32, i32) {
    %c0_i32 = arith.constant 0 : i32
    %c0_i32_0 = arith.constant 0 : i32
    %c0_i32_1 = arith.constant 0 : i32
    return %c0_i32, %c0_i32_0 : i32, i32
  }
  func.func @transform_2(%arg0: i32) -> (i32, i32) {
    %c0_i32 = arith.constant 0 : i32
    %c0_i32_0 = arith.constant 0 : i32
    %c0_i32_1 = arith.constant 0 : i32
    return %c0_i32, %c0_i32_0 : i32, i32
  }
  func.func @transform_3(%arg0: i32) -> (i32, i32) {
    %c0_i32 = arith.constant 0 : i32
    %c0_i32_0 = arith.constant 0 : i32
    return %arg0, %c0_i32 : i32, i32
  }
  func.func @transform_4(%arg0: i32) -> (i32, i32) {
    %c0_i32 = arith.constant 0 : i32
    %c0_i32_0 = arith.constant 0 : i32
    return %arg0, %c0_i32 : i32, i32
  }
}

module attributes {stable_mosaic.version = 11 : i64} {
  func.func @_conv_kernel(%arg0: i32, %arg1: memref<128x128xbf16, #tpu.memory_space<vmem>>, %arg2: memref<128x128xbf16, #tpu.memory_space<vmem>>, %arg3: memref<1x128xf32, #tpu.memory_space<vmem>>, %arg4: memref<128x128xbf16, #tpu.memory_space<vmem>>) attributes {dimension_semantics = [#tpu.dimension_semantics<parallel>], iteration_bounds = array<i64: 4>, scalar_prefetch = 0 : i64, scratch_operands = 0 : i64, tpu.core_type = #tpu.core_type<tc>, window_params = [{transform_indices = @transform_0, window_bounds = array<i64: 128, 128>}, {pipeline_mode = #tpu.pipeline_mode<synchronous>, transform_indices = @transform_1, window_bounds = array<i64: 128, 128>}, {pipeline_mode = #tpu.pipeline_mode<synchronous>, transform_indices = @transform_2, window_bounds = array<i64: 1, 128>}, {transform_indices = @transform_3, window_bounds = array<i64: 128, 128>}]} {
    %c0 = arith.constant 0 : index
    %c0_0 = arith.constant 0 : index
    %0 = vector.load %arg1[%c0, %c0_0] : memref<128x128xbf16, #tpu.memory_space<vmem>>, vector<128x128xbf16>
    %c0_1 = arith.constant 0 : index
    %c0_2 = arith.constant 0 : index
    %1 = vector.load %arg2[%c0_1, %c0_2] : memref<128x128xbf16, #tpu.memory_space<vmem>>, vector<128x128xbf16>
    %cst = arith.constant dense<0.000000e+00> : vector<128x128xf32>
    %2 = tpu.matmul %0, %1, %cst {dimension_numbers = #tpu.dot_dimension_numbers<[1], [0], [0], [1], [0, 0, 1, 1], [], []>} : vector<128x128xbf16>, vector<128x128xbf16>, vector<128x128xf32> -> vector<128x128xf32>
    %c0_3 = arith.constant 0 : index
    %c0_4 = arith.constant 0 : index
    %3 = vector.load %arg3[%c0_3, %c0_4] : memref<1x128xf32, #tpu.memory_space<vmem>>, vector<1x128xf32>
    %4 = vector.broadcast %3 : vector<1x128xf32> to vector<128x128xf32>
    %5 = arith.addf %2, %4 : vector<128x128xf32>
    %cst_5 = arith.constant 0.000000e+00 : f32
    %6 = vector.broadcast %cst_5 : f32 to vector<128x128xf32>
    %7 = arith.maximumf %5, %6 : vector<128x128xf32>
    %8 = arith.truncf %7 : vector<128x128xf32> to vector<128x128xbf16>
    %c0_6 = arith.constant 0 : index
    %c0_7 = arith.constant 0 : index
    %9 = vector.load %arg4[%c0_6, %c0_7] : memref<128x128xbf16, #tpu.memory_space<vmem>>, vector<128x128xbf16>
    tpu.vector_store %arg4[%c0_6, %c0_7], %8 {strides = array<i32>} : memref<128x128xbf16, #tpu.memory_space<vmem>>, vector<128x128xbf16>,
    return
  }
  func.func @transform_0(%arg0: i32) -> (i32, i32) {
    %c0_i32 = arith.constant 0 : i32
    %c0_i32_0 = arith.constant 0 : i32
    return %arg0, %c0_i32 : i32, i32
  }
  func.func @transform_1(%arg0: i32) -> (i32, i32) {
    %c0_i32 = arith.constant 0 : i32
    %c0_i32_0 = arith.constant 0 : i32
    %c0_i32_1 = arith.constant 0 : i32
    return %c0_i32, %c0_i32_0 : i32, i32
  }
  func.func @transform_2(%arg0: i32) -> (i32, i32) {
    %c0_i32 = arith.constant 0 : i32
    %c0_i32_0 = arith.constant 0 : i32
    %c0_i32_1 = arith.constant 0 : i32
    return %c0_i32, %c0_i32_0 : i32, i32
  }
  func.func @transform_3(%arg0: i32) -> (i32, i32) {
    %c0_i32 = arith.constant 0 : i32
    %c0_i32_0 = arith.constant 0 : i32
    return %arg0, %c0_i32 : i32, i32
  }
}

module attributes {stable_mosaic.version = 11 : i64} {
  func.func @_conv_convres_kernel(%arg0: i32, %arg1: memref<128x256xbf16, #tpu.memory_space<vmem>>, %arg2: memref<256x128xbf16, #tpu.memory_space<vmem>>, %arg3: memref<1x128xf32, #tpu.memory_space<vmem>>, %arg4: memref<128x128xbf16, #tpu.memory_space<vmem>>, %arg5: memref<128x128xbf16, #tpu.memory_space<vmem>>, %arg6: memref<1x128xf32, #tpu.memory_space<vmem>>, %arg7: memref<128x128xbf16, #tpu.memory_space<vmem>>) attributes {dimension_semantics = [#tpu.dimension_semantics<parallel>], iteration_bounds = array<i64: 4>, scalar_prefetch = 0 : i64, scratch_operands = 0 : i64, tpu.core_type = #tpu.core_type<tc>, window_params = [{transform_indices = @transform_0, window_bounds = array<i64: 128, 256>}, {pipeline_mode = #tpu.pipeline_mode<synchronous>, transform_indices = @transform_1, window_bounds = array<i64: 256, 128>}, {pipeline_mode = #tpu.pipeline_mode<synchronous>, transform_indices = @transform_2, window_bounds = array<i64: 1, 128>}, {transform_indices = @transform_3, window_bounds = array<i64: 128, 128>}, {pipeline_mode = #tpu.pipeline_mode<synchronous>, transform_indices = @transform_4, window_bounds = array<i64: 128, 128>}, {pipeline_mode = #tpu.pipeline_mode<synchronous>, transform_indices = @transform_5, window_bounds = array<i64: 1, 128>}, {transform_indices = @transform_6, window_bounds = array<i64: 128, 128>}]} {
    %c0 = arith.constant 0 : index
    %c0_0 = arith.constant 0 : index
    %0 = vector.load %arg1[%c0, %c0_0] : memref<128x256xbf16, #tpu.memory_space<vmem>>, vector<128x256xbf16>
    %c0_1 = arith.constant 0 : index
    %c0_2 = arith.constant 0 : index
    %1 = vector.load %arg2[%c0_1, %c0_2] : memref<256x128xbf16, #tpu.memory_space<vmem>>, vector<256x128xbf16>
    %cst = arith.constant dense<0.000000e+00> : vector<128x128xf32>
    %2 = tpu.matmul %0, %1, %cst {dimension_numbers = #tpu.dot_dimension_numbers<[1], [0], [0], [1], [0, 0, 1, 1], [], []>} : vector<128x256xbf16>, vector<256x128xbf16>, vector<128x128xf32> -> vector<128x128xf32>
    %c0_3 = arith.constant 0 : index
    %c0_4 = arith.constant 0 : index
    %3 = vector.load %arg3[%c0_3, %c0_4] : memref<1x128xf32, #tpu.memory_space<vmem>>, vector<1x128xf32>
    %4 = vector.broadcast %3 : vector<1x128xf32> to vector<128x128xf32>
    %5 = arith.addf %2, %4 : vector<128x128xf32>
    %c0_5 = arith.constant 0 : index
    %c0_6 = arith.constant 0 : index
    %6 = vector.load %arg4[%c0_5, %c0_6] : memref<128x128xbf16, #tpu.memory_space<vmem>>, vector<128x128xbf16>
    %c0_7 = arith.constant 0 : index
    %c0_8 = arith.constant 0 : index
    %7 = vector.load %arg5[%c0_7, %c0_8] : memref<128x128xbf16, #tpu.memory_space<vmem>>, vector<128x128xbf16>
    %cst_9 = arith.constant dense<0.000000e+00> : vector<128x128xf32>
    %8 = tpu.matmul %6, %7, %cst_9 {dimension_numbers = #tpu.dot_dimension_numbers<[1], [0], [0], [1], [0, 0, 1, 1], [], []>} : vector<128x128xbf16>, vector<128x128xbf16>, vector<128x128xf32> -> vector<128x128xf32>
    %c0_10 = arith.constant 0 : index
    %c0_11 = arith.constant 0 : index
    %9 = vector.load %arg6[%c0_10, %c0_11] : memref<1x128xf32, #tpu.memory_space<vmem>>, vector<1x128xf32>
    %10 = vector.broadcast %9 : vector<1x128xf32> to vector<128x128xf32>
    %11 = arith.addf %8, %10 : vector<128x128xf32>
    %12 = arith.addf %5, %11 : vector<128x128xf32>
    %cst_12 = arith.constant 0.000000e+00 : f32
    %13 = vector.broadcast %cst_12 : f32 to vector<128x128xf32>
    %14 = arith.maximumf %12, %13 : vector<128x128xf32>
    %15 = arith.truncf %14 : vector<128x128xf32> to vector<128x128xbf16>
    %c0_13 = arith.constant 0 : index
    %c0_14 = arith.constant 0 : index
    %16 = vector.load %arg7[%c0_13, %c0_14] : memref<128x128xbf16, #tpu.memory_space<vmem>>, vector<128x128xbf16>
    tpu.vector_store %arg7[%c0_13, %c0_14], %15 {strides = array<i32>} : memref<128x128xbf16, #tpu.memory_space<vmem>>, vector<128x128xbf16>,
    return
  }
  func.func @transform_0(%arg0: i32) -> (i32, i32) {
    %c0_i32 = arith.constant 0 : i32
    %c0_i32_0 = arith.constant 0 : i32
    return %arg0, %c0_i32 : i32, i32
  }
  func.func @transform_1(%arg0: i32) -> (i32, i32) {
    %c0_i32 = arith.constant 0 : i32
    %c0_i32_0 = arith.constant 0 : i32
    %c0_i32_1 = arith.constant 0 : i32
    return %c0_i32, %c0_i32_0 : i32, i32
  }
  func.func @transform_2(%arg0: i32) -> (i32, i32) {
    %c0_i32 = arith.constant 0 : i32
    %c0_i32_0 = arith.constant 0 : i32
    %c0_i32_1 = arith.constant 0 : i32
    return %c0_i32, %c0_i32_0 : i32, i32
  }
  func.func @transform_3(%arg0: i32) -> (i32, i32) {
    %c0_i32 = arith.constant 0 : i32
    %c0_i32_0 = arith.constant 0 : i32
    return %arg0, %c0_i32 : i32, i32
  }
  func.func @transform_4(%arg0: i32) -> (i32, i32) {
    %c0_i32 = arith.constant 0 : i32
    %c0_i32_0 = arith.constant 0 : i32
    %c0_i32_1 = arith.constant 0 : i32
    return %c0_i32, %c0_i32_0 : i32, i32
  }
  func.func @transform_5(%arg0: i32) -> (i32, i32) {
    %c0_i32 = arith.constant 0 : i32
    %c0_i32_0 = arith.constant 0 : i32
    %c0_i32_1 = arith.constant 0 : i32
    return %c0_i32, %c0_i32_0 : i32, i32
  }
  func.func @transform_6(%arg0: i32) -> (i32, i32) {
    %c0_i32 = arith.constant 0 : i32
    %c0_i32_0 = arith.constant 0 : i32
    return %arg0, %c0_i32 : i32, i32
  }
}

module attributes {stable_mosaic.version = 11 : i64} {
  func.func @_conv_kernel(%arg0: i32, %arg1: memref<128x256xbf16, #tpu.memory_space<vmem>>, %arg2: memref<256x128xbf16, #tpu.memory_space<vmem>>, %arg3: memref<1x128xf32, #tpu.memory_space<vmem>>, %arg4: memref<128x128xbf16, #tpu.memory_space<vmem>>) attributes {dimension_semantics = [#tpu.dimension_semantics<parallel>], iteration_bounds = array<i64: 4>, scalar_prefetch = 0 : i64, scratch_operands = 0 : i64, tpu.core_type = #tpu.core_type<tc>, window_params = [{transform_indices = @transform_0, window_bounds = array<i64: 128, 256>}, {pipeline_mode = #tpu.pipeline_mode<synchronous>, transform_indices = @transform_1, window_bounds = array<i64: 256, 128>}, {pipeline_mode = #tpu.pipeline_mode<synchronous>, transform_indices = @transform_2, window_bounds = array<i64: 1, 128>}, {transform_indices = @transform_3, window_bounds = array<i64: 128, 128>}]} {
    %c0 = arith.constant 0 : index
    %c0_0 = arith.constant 0 : index
    %0 = vector.load %arg1[%c0, %c0_0] : memref<128x256xbf16, #tpu.memory_space<vmem>>, vector<128x256xbf16>
    %c0_1 = arith.constant 0 : index
    %c0_2 = arith.constant 0 : index
    %1 = vector.load %arg2[%c0_1, %c0_2] : memref<256x128xbf16, #tpu.memory_space<vmem>>, vector<256x128xbf16>
    %cst = arith.constant dense<0.000000e+00> : vector<128x128xf32>
    %2 = tpu.matmul %0, %1, %cst {dimension_numbers = #tpu.dot_dimension_numbers<[1], [0], [0], [1], [0, 0, 1, 1], [], []>} : vector<128x256xbf16>, vector<256x128xbf16>, vector<128x128xf32> -> vector<128x128xf32>
    %c0_3 = arith.constant 0 : index
    %c0_4 = arith.constant 0 : index
    %3 = vector.load %arg3[%c0_3, %c0_4] : memref<1x128xf32, #tpu.memory_space<vmem>>, vector<1x128xf32>
    %4 = vector.broadcast %3 : vector<1x128xf32> to vector<128x128xf32>
    %5 = arith.addf %2, %4 : vector<128x128xf32>
    %cst_5 = arith.constant 0.000000e+00 : f32
    %6 = vector.broadcast %cst_5 : f32 to vector<128x128xf32>
    %7 = arith.maximumf %5, %6 : vector<128x128xf32>
    %8 = arith.truncf %7 : vector<128x128xf32> to vector<128x128xbf16>
    %c0_6 = arith.constant 0 : index
    %c0_7 = arith.constant 0 : index
    %9 = vector.load %arg4[%c0_6, %c0_7] : memref<128x128xbf16, #tpu.memory_space<vmem>>, vector<128x128xbf16>
    tpu.vector_store %arg4[%c0_6, %c0_7], %8 {strides = array<i32>} : memref<128x128xbf16, #tpu.memory_space<vmem>>, vector<128x128xbf16>,
    return
  }
  func.func @transform_0(%arg0: i32) -> (i32, i32) {
    %c0_i32 = arith.constant 0 : i32
    %c0_i32_0 = arith.constant 0 : i32
    return %arg0, %c0_i32 : i32, i32
  }
  func.func @transform_1(%arg0: i32) -> (i32, i32) {
    %c0_i32 = arith.constant 0 : i32
    %c0_i32_0 = arith.constant 0 : i32
    %c0_i32_1 = arith.constant 0 : i32
    return %c0_i32, %c0_i32_0 : i32, i32
  }
  func.func @transform_2(%arg0: i32) -> (i32, i32) {
    %c0_i32 = arith.constant 0 : i32
    %c0_i32_0 = arith.constant 0 : i32
    %c0_i32_1 = arith.constant 0 : i32
    return %c0_i32, %c0_i32_0 : i32, i32
  }
  func.func @transform_3(%arg0: i32) -> (i32, i32) {
    %c0_i32 = arith.constant 0 : i32
    %c0_i32_0 = arith.constant 0 : i32
    return %arg0, %c0_i32 : i32, i32
  }
}

module attributes {stable_mosaic.version = 11 : i64} {
  func.func @_conv_res_kernel(%arg0: i32, %arg1: memref<128x256xbf16, #tpu.memory_space<vmem>>, %arg2: memref<256x128xbf16, #tpu.memory_space<vmem>>, %arg3: memref<1x128xf32, #tpu.memory_space<vmem>>, %arg4: memref<128x128xbf16, #tpu.memory_space<vmem>>, %arg5: memref<128x128xbf16, #tpu.memory_space<vmem>>) attributes {dimension_semantics = [#tpu.dimension_semantics<parallel>], iteration_bounds = array<i64: 4>, scalar_prefetch = 0 : i64, scratch_operands = 0 : i64, tpu.core_type = #tpu.core_type<tc>, window_params = [{transform_indices = @transform_0, window_bounds = array<i64: 128, 256>}, {pipeline_mode = #tpu.pipeline_mode<synchronous>, transform_indices = @transform_1, window_bounds = array<i64: 256, 128>}, {pipeline_mode = #tpu.pipeline_mode<synchronous>, transform_indices = @transform_2, window_bounds = array<i64: 1, 128>}, {transform_indices = @transform_3, window_bounds = array<i64: 128, 128>}, {transform_indices = @transform_4, window_bounds = array<i64: 128, 128>}]} {
    %c0 = arith.constant 0 : index
    %c0_0 = arith.constant 0 : index
    %0 = vector.load %arg1[%c0, %c0_0] : memref<128x256xbf16, #tpu.memory_space<vmem>>, vector<128x256xbf16>
    %c0_1 = arith.constant 0 : index
    %c0_2 = arith.constant 0 : index
    %1 = vector.load %arg2[%c0_1, %c0_2] : memref<256x128xbf16, #tpu.memory_space<vmem>>, vector<256x128xbf16>
    %cst = arith.constant dense<0.000000e+00> : vector<128x128xf32>
    %2 = tpu.matmul %0, %1, %cst {dimension_numbers = #tpu.dot_dimension_numbers<[1], [0], [0], [1], [0, 0, 1, 1], [], []>} : vector<128x256xbf16>, vector<256x128xbf16>, vector<128x128xf32> -> vector<128x128xf32>
    %c0_3 = arith.constant 0 : index
    %c0_4 = arith.constant 0 : index
    %3 = vector.load %arg3[%c0_3, %c0_4] : memref<1x128xf32, #tpu.memory_space<vmem>>, vector<1x128xf32>
    %4 = vector.broadcast %3 : vector<1x128xf32> to vector<128x128xf32>
    %5 = arith.addf %2, %4 : vector<128x128xf32>
    %c0_5 = arith.constant 0 : index
    %c0_6 = arith.constant 0 : index
    %6 = vector.load %arg4[%c0_5, %c0_6] : memref<128x128xbf16, #tpu.memory_space<vmem>>, vector<128x128xbf16>
    %7 = arith.extf %6 : vector<128x128xbf16> to vector<128x128xf32>
    %8 = arith.addf %5, %7 : vector<128x128xf32>
    %cst_7 = arith.constant 0.000000e+00 : f32
    %9 = vector.broadcast %cst_7 : f32 to vector<128x128xf32>
    %10 = arith.maximumf %8, %9 : vector<128x128xf32>
    %11 = arith.truncf %10 : vector<128x128xf32> to vector<128x128xbf16>
    %c0_8 = arith.constant 0 : index
    %c0_9 = arith.constant 0 : index
    %12 = vector.load %arg5[%c0_8, %c0_9] : memref<128x128xbf16, #tpu.memory_space<vmem>>, vector<128x128xbf16>
    tpu.vector_store %arg5[%c0_8, %c0_9], %11 {strides = array<i32>} : memref<128x128xbf16, #tpu.memory_space<vmem>>, vector<128x128xbf16>,
    return
  }
  func.func @transform_0(%arg0: i32) -> (i32, i32) {
    %c0_i32 = arith.constant 0 : i32
    %c0_i32_0 = arith.constant 0 : i32
    return %arg0, %c0_i32 : i32, i32
  }
  func.func @transform_1(%arg0: i32) -> (i32, i32) {
    %c0_i32 = arith.constant 0 : i32
    %c0_i32_0 = arith.constant 0 : i32
    %c0_i32_1 = arith.constant 0 : i32
    return %c0_i32, %c0_i32_0 : i32, i32
  }
  func.func @transform_2(%arg0: i32) -> (i32, i32) {
    %c0_i32 = arith.constant 0 : i32
    %c0_i32_0 = arith.constant 0 : i32
    %c0_i32_1 = arith.constant 0 : i32
    return %c0_i32, %c0_i32_0 : i32, i32
  }
  func.func @transform_3(%arg0: i32) -> (i32, i32) {
    %c0_i32 = arith.constant 0 : i32
    %c0_i32_0 = arith.constant 0 : i32
    return %arg0, %c0_i32 : i32, i32
  }
  func.func @transform_4(%arg0: i32) -> (i32, i32) {
    %c0_i32 = arith.constant 0 : i32
    %c0_i32_0 = arith.constant 0 : i32
    return %arg0, %c0_i32 : i32, i32
  }
}

module attributes {stable_mosaic.version = 11 : i64} {
  func.func @_conv_kernel(%arg0: i32, %arg1: memref<32x256xbf16, #tpu.memory_space<vmem>>, %arg2: memref<256x128xbf16, #tpu.memory_space<vmem>>, %arg3: memref<1x128xf32, #tpu.memory_space<vmem>>, %arg4: memref<32x128xbf16, #tpu.memory_space<vmem>>) attributes {dimension_semantics = [#tpu.dimension_semantics<parallel>], iteration_bounds = array<i64: 4>, scalar_prefetch = 0 : i64, scratch_operands = 0 : i64, tpu.core_type = #tpu.core_type<tc>, window_params = [{transform_indices = @transform_0, window_bounds = array<i64: 32, 256>}, {pipeline_mode = #tpu.pipeline_mode<synchronous>, transform_indices = @transform_1, window_bounds = array<i64: 256, 128>}, {pipeline_mode = #tpu.pipeline_mode<synchronous>, transform_indices = @transform_2, window_bounds = array<i64: 1, 128>}, {transform_indices = @transform_3, window_bounds = array<i64: 32, 128>}]} {
    %c0 = arith.constant 0 : index
    %c0_0 = arith.constant 0 : index
    %0 = vector.load %arg1[%c0, %c0_0] : memref<32x256xbf16, #tpu.memory_space<vmem>>, vector<32x256xbf16>
    %c0_1 = arith.constant 0 : index
    %c0_2 = arith.constant 0 : index
    %1 = vector.load %arg2[%c0_1, %c0_2] : memref<256x128xbf16, #tpu.memory_space<vmem>>, vector<256x128xbf16>
    %cst = arith.constant dense<0.000000e+00> : vector<32x128xf32>
    %2 = tpu.matmul %0, %1, %cst {dimension_numbers = #tpu.dot_dimension_numbers<[1], [0], [0], [1], [0, 0, 1, 1], [], []>} : vector<32x256xbf16>, vector<256x128xbf16>, vector<32x128xf32> -> vector<32x128xf32>
    %c0_3 = arith.constant 0 : index
    %c0_4 = arith.constant 0 : index
    %3 = vector.load %arg3[%c0_3, %c0_4] : memref<1x128xf32, #tpu.memory_space<vmem>>, vector<1x128xf32>
    %4 = vector.broadcast %3 : vector<1x128xf32> to vector<32x128xf32>
    %5 = arith.addf %2, %4 : vector<32x128xf32>
    %cst_5 = arith.constant 0.000000e+00 : f32
    %6 = vector.broadcast %cst_5 : f32 to vector<32x128xf32>
    %7 = arith.maximumf %5, %6 : vector<32x128xf32>
    %8 = arith.truncf %7 : vector<32x128xf32> to vector<32x128xbf16>
    %c0_6 = arith.constant 0 : index
    %c0_7 = arith.constant 0 : index
    %9 = vector.load %arg4[%c0_6, %c0_7] : memref<32x128xbf16, #tpu.memory_space<vmem>>, vector<32x128xbf16>
    tpu.vector_store %arg4[%c0_6, %c0_7], %8 {strides = array<i32>} : memref<32x128xbf16, #tpu.memory_space<vmem>>, vector<32x128xbf16>,
    return
  }
  func.func @transform_0(%arg0: i32) -> (i32, i32) {
    %c0_i32 = arith.constant 0 : i32
    %c0_i32_0 = arith.constant 0 : i32
    return %arg0, %c0_i32 : i32, i32
  }
  func.func @transform_1(%arg0: i32) -> (i32, i32) {
    %c0_i32 = arith.constant 0 : i32
    %c0_i32_0 = arith.constant 0 : i32
    %c0_i32_1 = arith.constant 0 : i32
    return %c0_i32, %c0_i32_0 : i32, i32
  }
  func.func @transform_2(%arg0: i32) -> (i32, i32) {
    %c0_i32 = arith.constant 0 : i32
    %c0_i32_0 = arith.constant 0 : i32
    %c0_i32_1 = arith.constant 0 : i32
    return %c0_i32, %c0_i32_0 : i32, i32
  }
  func.func @transform_3(%arg0: i32) -> (i32, i32) {
    %c0_i32 = arith.constant 0 : i32
    %c0_i32_0 = arith.constant 0 : i32
    return %arg0, %c0_i32 : i32, i32
  }
}

module attributes {stable_mosaic.version = 11 : i64} {
  func.func @_conv_convres_kernel(%arg0: i32, %arg1: memref<32x384xbf16, #tpu.memory_space<vmem>>, %arg2: memref<384x128xbf16, #tpu.memory_space<vmem>>, %arg3: memref<1x128xf32, #tpu.memory_space<vmem>>, %arg4: memref<32x128xbf16, #tpu.memory_space<vmem>>, %arg5: memref<128x128xbf16, #tpu.memory_space<vmem>>, %arg6: memref<1x128xf32, #tpu.memory_space<vmem>>, %arg7: memref<32x128xbf16, #tpu.memory_space<vmem>>) attributes {dimension_semantics = [#tpu.dimension_semantics<parallel>], iteration_bounds = array<i64: 4>, scalar_prefetch = 0 : i64, scratch_operands = 0 : i64, tpu.core_type = #tpu.core_type<tc>, window_params = [{transform_indices = @transform_0, window_bounds = array<i64: 32, 384>}, {pipeline_mode = #tpu.pipeline_mode<synchronous>, transform_indices = @transform_1, window_bounds = array<i64: 384, 128>}, {pipeline_mode = #tpu.pipeline_mode<synchronous>, transform_indices = @transform_2, window_bounds = array<i64: 1, 128>}, {transform_indices = @transform_3, window_bounds = array<i64: 32, 128>}, {pipeline_mode = #tpu.pipeline_mode<synchronous>, transform_indices = @transform_4, window_bounds = array<i64: 128, 128>}, {pipeline_mode = #tpu.pipeline_mode<synchronous>, transform_indices = @transform_5, window_bounds = array<i64: 1, 128>}, {transform_indices = @transform_6, window_bounds = array<i64: 32, 128>}]} {
    %c0 = arith.constant 0 : index
    %c0_0 = arith.constant 0 : index
    %0 = vector.load %arg1[%c0, %c0_0] : memref<32x384xbf16, #tpu.memory_space<vmem>>, vector<32x384xbf16>
    %c0_1 = arith.constant 0 : index
    %c0_2 = arith.constant 0 : index
    %1 = vector.load %arg2[%c0_1, %c0_2] : memref<384x128xbf16, #tpu.memory_space<vmem>>, vector<384x128xbf16>
    %cst = arith.constant dense<0.000000e+00> : vector<32x128xf32>
    %2 = tpu.matmul %0, %1, %cst {dimension_numbers = #tpu.dot_dimension_numbers<[1], [0], [0], [1], [0, 0, 1, 1], [], []>} : vector<32x384xbf16>, vector<384x128xbf16>, vector<32x128xf32> -> vector<32x128xf32>
    %c0_3 = arith.constant 0 : index
    %c0_4 = arith.constant 0 : index
    %3 = vector.load %arg3[%c0_3, %c0_4] : memref<1x128xf32, #tpu.memory_space<vmem>>, vector<1x128xf32>
    %4 = vector.broadcast %3 : vector<1x128xf32> to vector<32x128xf32>
    %5 = arith.addf %2, %4 : vector<32x128xf32>
    %c0_5 = arith.constant 0 : index
    %c0_6 = arith.constant 0 : index
    %6 = vector.load %arg4[%c0_5, %c0_6] : memref<32x128xbf16, #tpu.memory_space<vmem>>, vector<32x128xbf16>
    %c0_7 = arith.constant 0 : index
    %c0_8 = arith.constant 0 : index
    %7 = vector.load %arg5[%c0_7, %c0_8] : memref<128x128xbf16, #tpu.memory_space<vmem>>, vector<128x128xbf16>
    %cst_9 = arith.constant dense<0.000000e+00> : vector<32x128xf32>
    %8 = tpu.matmul %6, %7, %cst_9 {dimension_numbers = #tpu.dot_dimension_numbers<[1], [0], [0], [1], [0, 0, 1, 1], [], []>} : vector<32x128xbf16>, vector<128x128xbf16>, vector<32x128xf32> -> vector<32x128xf32>
    %c0_10 = arith.constant 0 : index
    %c0_11 = arith.constant 0 : index
    %9 = vector.load %arg6[%c0_10, %c0_11] : memref<1x128xf32, #tpu.memory_space<vmem>>, vector<1x128xf32>
    %10 = vector.broadcast %9 : vector<1x128xf32> to vector<32x128xf32>
    %11 = arith.addf %8, %10 : vector<32x128xf32>
    %12 = arith.addf %5, %11 : vector<32x128xf32>
    %cst_12 = arith.constant 0.000000e+00 : f32
    %13 = vector.broadcast %cst_12 : f32 to vector<32x128xf32>
    %14 = arith.maximumf %12, %13 : vector<32x128xf32>
    %15 = arith.truncf %14 : vector<32x128xf32> to vector<32x128xbf16>
    %c0_13 = arith.constant 0 : index
    %c0_14 = arith.constant 0 : index
    %16 = vector.load %arg7[%c0_13, %c0_14] : memref<32x128xbf16, #tpu.memory_space<vmem>>, vector<32x128xbf16>
    tpu.vector_store %arg7[%c0_13, %c0_14], %15 {strides = array<i32>} : memref<32x128xbf16, #tpu.memory_space<vmem>>, vector<32x128xbf16>,
    return
  }
  func.func @transform_0(%arg0: i32) -> (i32, i32) {
    %c0_i32 = arith.constant 0 : i32
    %c0_i32_0 = arith.constant 0 : i32
    return %arg0, %c0_i32 : i32, i32
  }
  func.func @transform_1(%arg0: i32) -> (i32, i32) {
    %c0_i32 = arith.constant 0 : i32
    %c0_i32_0 = arith.constant 0 : i32
    %c0_i32_1 = arith.constant 0 : i32
    return %c0_i32, %c0_i32_0 : i32, i32
  }
  func.func @transform_2(%arg0: i32) -> (i32, i32) {
    %c0_i32 = arith.constant 0 : i32
    %c0_i32_0 = arith.constant 0 : i32
    %c0_i32_1 = arith.constant 0 : i32
    return %c0_i32, %c0_i32_0 : i32, i32
  }
  func.func @transform_3(%arg0: i32) -> (i32, i32) {
    %c0_i32 = arith.constant 0 : i32
    %c0_i32_0 = arith.constant 0 : i32
    return %arg0, %c0_i32 : i32, i32
  }
  func.func @transform_4(%arg0: i32) -> (i32, i32) {
    %c0_i32 = arith.constant 0 : i32
    %c0_i32_0 = arith.constant 0 : i32
    %c0_i32_1 = arith.constant 0 : i32
    return %c0_i32, %c0_i32_0 : i32, i32
  }
  func.func @transform_5(%arg0: i32) -> (i32, i32) {
    %c0_i32 = arith.constant 0 : i32
    %c0_i32_0 = arith.constant 0 : i32
    %c0_i32_1 = arith.constant 0 : i32
    return %c0_i32, %c0_i32_0 : i32, i32
  }
  func.func @transform_6(%arg0: i32) -> (i32, i32) {
    %c0_i32 = arith.constant 0 : i32
    %c0_i32_0 = arith.constant 0 : i32
    return %arg0, %c0_i32 : i32, i32
  }
}

module attributes {stable_mosaic.version = 11 : i64} {
  func.func @_conv_kernel(%arg0: i32, %arg1: memref<32x384xbf16, #tpu.memory_space<vmem>>, %arg2: memref<384x128xbf16, #tpu.memory_space<vmem>>, %arg3: memref<1x128xf32, #tpu.memory_space<vmem>>, %arg4: memref<32x128xbf16, #tpu.memory_space<vmem>>) attributes {dimension_semantics = [#tpu.dimension_semantics<parallel>], iteration_bounds = array<i64: 4>, scalar_prefetch = 0 : i64, scratch_operands = 0 : i64, tpu.core_type = #tpu.core_type<tc>, window_params = [{transform_indices = @transform_0, window_bounds = array<i64: 32, 384>}, {pipeline_mode = #tpu.pipeline_mode<synchronous>, transform_indices = @transform_1, window_bounds = array<i64: 384, 128>}, {pipeline_mode = #tpu.pipeline_mode<synchronous>, transform_indices = @transform_2, window_bounds = array<i64: 1, 128>}, {transform_indices = @transform_3, window_bounds = array<i64: 32, 128>}]} {
    %c0 = arith.constant 0 : index
    %c0_0 = arith.constant 0 : index
    %0 = vector.load %arg1[%c0, %c0_0] : memref<32x384xbf16, #tpu.memory_space<vmem>>, vector<32x384xbf16>
    %c0_1 = arith.constant 0 : index
    %c0_2 = arith.constant 0 : index
    %1 = vector.load %arg2[%c0_1, %c0_2] : memref<384x128xbf16, #tpu.memory_space<vmem>>, vector<384x128xbf16>
    %cst = arith.constant dense<0.000000e+00> : vector<32x128xf32>
    %2 = tpu.matmul %0, %1, %cst {dimension_numbers = #tpu.dot_dimension_numbers<[1], [0], [0], [1], [0, 0, 1, 1], [], []>} : vector<32x384xbf16>, vector<384x128xbf16>, vector<32x128xf32> -> vector<32x128xf32>
    %c0_3 = arith.constant 0 : index
    %c0_4 = arith.constant 0 : index
    %3 = vector.load %arg3[%c0_3, %c0_4] : memref<1x128xf32, #tpu.memory_space<vmem>>, vector<1x128xf32>
    %4 = vector.broadcast %3 : vector<1x128xf32> to vector<32x128xf32>
    %5 = arith.addf %2, %4 : vector<32x128xf32>
    %cst_5 = arith.constant 0.000000e+00 : f32
    %6 = vector.broadcast %cst_5 : f32 to vector<32x128xf32>
    %7 = arith.maximumf %5, %6 : vector<32x128xf32>
    %8 = arith.truncf %7 : vector<32x128xf32> to vector<32x128xbf16>
    %c0_6 = arith.constant 0 : index
    %c0_7 = arith.constant 0 : index
    %9 = vector.load %arg4[%c0_6, %c0_7] : memref<32x128xbf16, #tpu.memory_space<vmem>>, vector<32x128xbf16>
    tpu.vector_store %arg4[%c0_6, %c0_7], %8 {strides = array<i32>} : memref<32x128xbf16, #tpu.memory_space<vmem>>, vector<32x128xbf16>,
    return
  }
  func.func @transform_0(%arg0: i32) -> (i32, i32) {
    %c0_i32 = arith.constant 0 : i32
    %c0_i32_0 = arith.constant 0 : i32
    return %arg0, %c0_i32 : i32, i32
  }
  func.func @transform_1(%arg0: i32) -> (i32, i32) {
    %c0_i32 = arith.constant 0 : i32
    %c0_i32_0 = arith.constant 0 : i32
    %c0_i32_1 = arith.constant 0 : i32
    return %c0_i32, %c0_i32_0 : i32, i32
  }
  func.func @transform_2(%arg0: i32) -> (i32, i32) {
    %c0_i32 = arith.constant 0 : i32
    %c0_i32_0 = arith.constant 0 : i32
    %c0_i32_1 = arith.constant 0 : i32
    return %c0_i32, %c0_i32_0 : i32, i32
  }
  func.func @transform_3(%arg0: i32) -> (i32, i32) {
    %c0_i32 = arith.constant 0 : i32
    %c0_i32_0 = arith.constant 0 : i32
    return %arg0, %c0_i32 : i32, i32
  }
}

module attributes {stable_mosaic.version = 11 : i64} {
  func.func @_conv_res_kernel(%arg0: i32, %arg1: memref<32x384xbf16, #tpu.memory_space<vmem>>, %arg2: memref<384x128xbf16, #tpu.memory_space<vmem>>, %arg3: memref<1x128xf32, #tpu.memory_space<vmem>>, %arg4: memref<32x128xbf16, #tpu.memory_space<vmem>>, %arg5: memref<32x128xbf16, #tpu.memory_space<vmem>>) attributes {dimension_semantics = [#tpu.dimension_semantics<parallel>], iteration_bounds = array<i64: 4>, scalar_prefetch = 0 : i64, scratch_operands = 0 : i64, tpu.core_type = #tpu.core_type<tc>, window_params = [{transform_indices = @transform_0, window_bounds = array<i64: 32, 384>}, {pipeline_mode = #tpu.pipeline_mode<synchronous>, transform_indices = @transform_1, window_bounds = array<i64: 384, 128>}, {pipeline_mode = #tpu.pipeline_mode<synchronous>, transform_indices = @transform_2, window_bounds = array<i64: 1, 128>}, {transform_indices = @transform_3, window_bounds = array<i64: 32, 128>}, {transform_indices = @transform_4, window_bounds = array<i64: 32, 128>}]} {
    %c0 = arith.constant 0 : index
    %c0_0 = arith.constant 0 : index
    %0 = vector.load %arg1[%c0, %c0_0] : memref<32x384xbf16, #tpu.memory_space<vmem>>, vector<32x384xbf16>
    %c0_1 = arith.constant 0 : index
    %c0_2 = arith.constant 0 : index
    %1 = vector.load %arg2[%c0_1, %c0_2] : memref<384x128xbf16, #tpu.memory_space<vmem>>, vector<384x128xbf16>
    %cst = arith.constant dense<0.000000e+00> : vector<32x128xf32>
    %2 = tpu.matmul %0, %1, %cst {dimension_numbers = #tpu.dot_dimension_numbers<[1], [0], [0], [1], [0, 0, 1, 1], [], []>} : vector<32x384xbf16>, vector<384x128xbf16>, vector<32x128xf32> -> vector<32x128xf32>
    %c0_3 = arith.constant 0 : index
    %c0_4 = arith.constant 0 : index
    %3 = vector.load %arg3[%c0_3, %c0_4] : memref<1x128xf32, #tpu.memory_space<vmem>>, vector<1x128xf32>
    %4 = vector.broadcast %3 : vector<1x128xf32> to vector<32x128xf32>
    %5 = arith.addf %2, %4 : vector<32x128xf32>
    %c0_5 = arith.constant 0 : index
    %c0_6 = arith.constant 0 : index
    %6 = vector.load %arg4[%c0_5, %c0_6] : memref<32x128xbf16, #tpu.memory_space<vmem>>, vector<32x128xbf16>
    %7 = arith.extf %6 : vector<32x128xbf16> to vector<32x128xf32>
    %8 = arith.addf %5, %7 : vector<32x128xf32>
    %cst_7 = arith.constant 0.000000e+00 : f32
    %9 = vector.broadcast %cst_7 : f32 to vector<32x128xf32>
    %10 = arith.maximumf %8, %9 : vector<32x128xf32>
    %11 = arith.truncf %10 : vector<32x128xf32> to vector<32x128xbf16>
    %c0_8 = arith.constant 0 : index
    %c0_9 = arith.constant 0 : index
    %12 = vector.load %arg5[%c0_8, %c0_9] : memref<32x128xbf16, #tpu.memory_space<vmem>>, vector<32x128xbf16>
    tpu.vector_store %arg5[%c0_8, %c0_9], %11 {strides = array<i32>} : memref<32x128xbf16, #tpu.memory_space<vmem>>, vector<32x128xbf16>,
    return
  }
  func.func @transform_0(%arg0: i32) -> (i32, i32) {
    %c0_i32 = arith.constant 0 : i32
    %c0_i32_0 = arith.constant 0 : i32
    return %arg0, %c0_i32 : i32, i32
  }
  func.func @transform_1(%arg0: i32) -> (i32, i32) {
    %c0_i32 = arith.constant 0 : i32
    %c0_i32_0 = arith.constant 0 : i32
    %c0_i32_1 = arith.constant 0 : i32
    return %c0_i32, %c0_i32_0 : i32, i32
  }
  func.func @transform_2(%arg0: i32) -> (i32, i32) {
    %c0_i32 = arith.constant 0 : i32
    %c0_i32_0 = arith.constant 0 : i32
    %c0_i32_1 = arith.constant 0 : i32
    return %c0_i32, %c0_i32_0 : i32, i32
  }
  func.func @transform_3(%arg0: i32) -> (i32, i32) {
    %c0_i32 = arith.constant 0 : i32
    %c0_i32_0 = arith.constant 0 : i32
    return %arg0, %c0_i32 : i32, i32
  }
  func.func @transform_4(%arg0: i32) -> (i32, i32) {
    %c0_i32 = arith.constant 0 : i32
    %c0_i32_0 = arith.constant 0 : i32
    return %arg0, %c0_i32 : i32, i32
  }
}

module attributes {stable_mosaic.version = 11 : i64} {
  func.func @_conv_kernel(%arg0: i32, %arg1: memref<16x384xbf16, #tpu.memory_space<vmem>>, %arg2: memref<384x128xbf16, #tpu.memory_space<vmem>>, %arg3: memref<1x128xf32, #tpu.memory_space<vmem>>, %arg4: memref<16x128xbf16, #tpu.memory_space<vmem>>) attributes {dimension_semantics = [#tpu.dimension_semantics<parallel>], iteration_bounds = array<i64: 2>, scalar_prefetch = 0 : i64, scratch_operands = 0 : i64, tpu.core_type = #tpu.core_type<tc>, window_params = [{transform_indices = @transform_0, window_bounds = array<i64: 16, 384>}, {pipeline_mode = #tpu.pipeline_mode<synchronous>, transform_indices = @transform_1, window_bounds = array<i64: 384, 128>}, {pipeline_mode = #tpu.pipeline_mode<synchronous>, transform_indices = @transform_2, window_bounds = array<i64: 1, 128>}, {transform_indices = @transform_3, window_bounds = array<i64: 16, 128>}]} {
    %c0 = arith.constant 0 : index
    %c0_0 = arith.constant 0 : index
    %0 = vector.load %arg1[%c0, %c0_0] : memref<16x384xbf16, #tpu.memory_space<vmem>>, vector<16x384xbf16>
    %c0_1 = arith.constant 0 : index
    %c0_2 = arith.constant 0 : index
    %1 = vector.load %arg2[%c0_1, %c0_2] : memref<384x128xbf16, #tpu.memory_space<vmem>>, vector<384x128xbf16>
    %cst = arith.constant dense<0.000000e+00> : vector<16x128xf32>
    %2 = tpu.matmul %0, %1, %cst {dimension_numbers = #tpu.dot_dimension_numbers<[1], [0], [0], [1], [0, 0, 1, 1], [], []>} : vector<16x384xbf16>, vector<384x128xbf16>, vector<16x128xf32> -> vector<16x128xf32>
    %c0_3 = arith.constant 0 : index
    %c0_4 = arith.constant 0 : index
    %3 = vector.load %arg3[%c0_3, %c0_4] : memref<1x128xf32, #tpu.memory_space<vmem>>, vector<1x128xf32>
    %4 = vector.broadcast %3 : vector<1x128xf32> to vector<16x128xf32>
    %5 = arith.addf %2, %4 : vector<16x128xf32>
    %cst_5 = arith.constant 0.000000e+00 : f32
    %6 = vector.broadcast %cst_5 : f32 to vector<16x128xf32>
    %7 = arith.maximumf %5, %6 : vector<16x128xf32>
    %8 = arith.truncf %7 : vector<16x128xf32> to vector<16x128xbf16>
    %c0_6 = arith.constant 0 : index
    %c0_7 = arith.constant 0 : index
    %9 = vector.load %arg4[%c0_6, %c0_7] : memref<16x128xbf16, #tpu.memory_space<vmem>>, vector<16x128xbf16>
    tpu.vector_store %arg4[%c0_6, %c0_7], %8 {strides = array<i32>} : memref<16x128xbf16, #tpu.memory_space<vmem>>, vector<16x128xbf16>,
    return
  }
  func.func @transform_0(%arg0: i32) -> (i32, i32) {
    %c0_i32 = arith.constant 0 : i32
    %c0_i32_0 = arith.constant 0 : i32
    return %arg0, %c0_i32 : i32, i32
  }
  func.func @transform_1(%arg0: i32) -> (i32, i32) {
    %c0_i32 = arith.constant 0 : i32
    %c0_i32_0 = arith.constant 0 : i32
    %c0_i32_1 = arith.constant 0 : i32
    return %c0_i32, %c0_i32_0 : i32, i32
  }
  func.func @transform_2(%arg0: i32) -> (i32, i32) {
    %c0_i32 = arith.constant 0 : i32
    %c0_i32_0 = arith.constant 0 : i32
    %c0_i32_1 = arith.constant 0 : i32
    return %c0_i32, %c0_i32_0 : i32, i32
  }
  func.func @transform_3(%arg0: i32) -> (i32, i32) {
    %c0_i32 = arith.constant 0 : i32
    %c0_i32_0 = arith.constant 0 : i32
    return %arg0, %c0_i32 : i32, i32
  }
}

module attributes {stable_mosaic.version = 11 : i64} {
  func.func @_conv_convres_kernel(%arg0: i32, %arg1: memref<16x640xbf16, #tpu.memory_space<vmem>>, %arg2: memref<640x128xbf16, #tpu.memory_space<vmem>>, %arg3: memref<1x128xf32, #tpu.memory_space<vmem>>, %arg4: memref<16x128xbf16, #tpu.memory_space<vmem>>, %arg5: memref<128x128xbf16, #tpu.memory_space<vmem>>, %arg6: memref<1x128xf32, #tpu.memory_space<vmem>>, %arg7: memref<16x128xbf16, #tpu.memory_space<vmem>>) attributes {dimension_semantics = [#tpu.dimension_semantics<parallel>], iteration_bounds = array<i64: 2>, scalar_prefetch = 0 : i64, scratch_operands = 0 : i64, tpu.core_type = #tpu.core_type<tc>, window_params = [{transform_indices = @transform_0, window_bounds = array<i64: 16, 640>}, {pipeline_mode = #tpu.pipeline_mode<synchronous>, transform_indices = @transform_1, window_bounds = array<i64: 640, 128>}, {pipeline_mode = #tpu.pipeline_mode<synchronous>, transform_indices = @transform_2, window_bounds = array<i64: 1, 128>}, {transform_indices = @transform_3, window_bounds = array<i64: 16, 128>}, {pipeline_mode = #tpu.pipeline_mode<synchronous>, transform_indices = @transform_4, window_bounds = array<i64: 128, 128>}, {pipeline_mode = #tpu.pipeline_mode<synchronous>, transform_indices = @transform_5, window_bounds = array<i64: 1, 128>}, {transform_indices = @transform_6, window_bounds = array<i64: 16, 128>}]} {
    %c0 = arith.constant 0 : index
    %c0_0 = arith.constant 0 : index
    %0 = vector.load %arg1[%c0, %c0_0] : memref<16x640xbf16, #tpu.memory_space<vmem>>, vector<16x640xbf16>
    %c0_1 = arith.constant 0 : index
    %c0_2 = arith.constant 0 : index
    %1 = vector.load %arg2[%c0_1, %c0_2] : memref<640x128xbf16, #tpu.memory_space<vmem>>, vector<640x128xbf16>
    %cst = arith.constant dense<0.000000e+00> : vector<16x128xf32>
    %2 = tpu.matmul %0, %1, %cst {dimension_numbers = #tpu.dot_dimension_numbers<[1], [0], [0], [1], [0, 0, 1, 1], [], []>} : vector<16x640xbf16>, vector<640x128xbf16>, vector<16x128xf32> -> vector<16x128xf32>
    %c0_3 = arith.constant 0 : index
    %c0_4 = arith.constant 0 : index
    %3 = vector.load %arg3[%c0_3, %c0_4] : memref<1x128xf32, #tpu.memory_space<vmem>>, vector<1x128xf32>
    %4 = vector.broadcast %3 : vector<1x128xf32> to vector<16x128xf32>
    %5 = arith.addf %2, %4 : vector<16x128xf32>
    %c0_5 = arith.constant 0 : index
    %c0_6 = arith.constant 0 : index
    %6 = vector.load %arg4[%c0_5, %c0_6] : memref<16x128xbf16, #tpu.memory_space<vmem>>, vector<16x128xbf16>
    %c0_7 = arith.constant 0 : index
    %c0_8 = arith.constant 0 : index
    %7 = vector.load %arg5[%c0_7, %c0_8] : memref<128x128xbf16, #tpu.memory_space<vmem>>, vector<128x128xbf16>
    %cst_9 = arith.constant dense<0.000000e+00> : vector<16x128xf32>
    %8 = tpu.matmul %6, %7, %cst_9 {dimension_numbers = #tpu.dot_dimension_numbers<[1], [0], [0], [1], [0, 0, 1, 1], [], []>} : vector<16x128xbf16>, vector<128x128xbf16>, vector<16x128xf32> -> vector<16x128xf32>
    %c0_10 = arith.constant 0 : index
    %c0_11 = arith.constant 0 : index
    %9 = vector.load %arg6[%c0_10, %c0_11] : memref<1x128xf32, #tpu.memory_space<vmem>>, vector<1x128xf32>
    %10 = vector.broadcast %9 : vector<1x128xf32> to vector<16x128xf32>
    %11 = arith.addf %8, %10 : vector<16x128xf32>
    %12 = arith.addf %5, %11 : vector<16x128xf32>
    %cst_12 = arith.constant 0.000000e+00 : f32
    %13 = vector.broadcast %cst_12 : f32 to vector<16x128xf32>
    %14 = arith.maximumf %12, %13 : vector<16x128xf32>
    %15 = arith.truncf %14 : vector<16x128xf32> to vector<16x128xbf16>
    %c0_13 = arith.constant 0 : index
    %c0_14 = arith.constant 0 : index
    %16 = vector.load %arg7[%c0_13, %c0_14] : memref<16x128xbf16, #tpu.memory_space<vmem>>, vector<16x128xbf16>
    tpu.vector_store %arg7[%c0_13, %c0_14], %15 {strides = array<i32>} : memref<16x128xbf16, #tpu.memory_space<vmem>>, vector<16x128xbf16>,
    return
  }
  func.func @transform_0(%arg0: i32) -> (i32, i32) {
    %c0_i32 = arith.constant 0 : i32
    %c0_i32_0 = arith.constant 0 : i32
    return %arg0, %c0_i32 : i32, i32
  }
  func.func @transform_1(%arg0: i32) -> (i32, i32) {
    %c0_i32 = arith.constant 0 : i32
    %c0_i32_0 = arith.constant 0 : i32
    %c0_i32_1 = arith.constant 0 : i32
    return %c0_i32, %c0_i32_0 : i32, i32
  }
  func.func @transform_2(%arg0: i32) -> (i32, i32) {
    %c0_i32 = arith.constant 0 : i32
    %c0_i32_0 = arith.constant 0 : i32
    %c0_i32_1 = arith.constant 0 : i32
    return %c0_i32, %c0_i32_0 : i32, i32
  }
  func.func @transform_3(%arg0: i32) -> (i32, i32) {
    %c0_i32 = arith.constant 0 : i32
    %c0_i32_0 = arith.constant 0 : i32
    return %arg0, %c0_i32 : i32, i32
  }
  func.func @transform_4(%arg0: i32) -> (i32, i32) {
    %c0_i32 = arith.constant 0 : i32
    %c0_i32_0 = arith.constant 0 : i32
    %c0_i32_1 = arith.constant 0 : i32
    return %c0_i32, %c0_i32_0 : i32, i32
  }
  func.func @transform_5(%arg0: i32) -> (i32, i32) {
    %c0_i32 = arith.constant 0 : i32
    %c0_i32_0 = arith.constant 0 : i32
    %c0_i32_1 = arith.constant 0 : i32
    return %c0_i32, %c0_i32_0 : i32, i32
  }
  func.func @transform_6(%arg0: i32) -> (i32, i32) {
    %c0_i32 = arith.constant 0 : i32
    %c0_i32_0 = arith.constant 0 : i32
    return %arg0, %c0_i32 : i32, i32
  }
}

module attributes {stable_mosaic.version = 11 : i64} {
  func.func @_conv_res_pool_fc_kernel(%arg0: i32, %arg1: memref<32x640xbf16, #tpu.memory_space<vmem>>, %arg2: memref<640x128xbf16, #tpu.memory_space<vmem>>, %arg3: memref<1x128xf32, #tpu.memory_space<vmem>>, %arg4: memref<32x128xbf16, #tpu.memory_space<vmem>>, %arg5: memref<2x32xbf16, #tpu.memory_space<vmem>>, %arg6: memref<128x128xbf16, #tpu.memory_space<vmem>>, %arg7: memref<1x128xf32, #tpu.memory_space<vmem>>, %arg8: memref<2x128xf32, #tpu.memory_space<vmem>>) attributes {dimension_semantics = [#tpu.dimension_semantics<arbitrary>], iteration_bounds = array<i64: 1>, scalar_prefetch = 0 : i64, scratch_operands = 0 : i64, tpu.core_type = #tpu.core_type<tc>, window_params = [{pipeline_mode = #tpu.pipeline_mode<synchronous>, transform_indices = @transform_0, window_bounds = array<i64: 32, 640>}, {pipeline_mode = #tpu.pipeline_mode<synchronous>, transform_indices = @transform_1, window_bounds = array<i64: 640, 128>}, {pipeline_mode = #tpu.pipeline_mode<synchronous>, transform_indices = @transform_2, window_bounds = array<i64: 1, 128>}, {pipeline_mode = #tpu.pipeline_mode<synchronous>, transform_indices = @transform_3, window_bounds = array<i64: 32, 128>}, {pipeline_mode = #tpu.pipeline_mode<synchronous>, transform_indices = @transform_4, window_bounds = array<i64: 2, 32>}, {pipeline_mode = #tpu.pipeline_mode<synchronous>, transform_indices = @transform_5, window_bounds = array<i64: 128, 128>}, {pipeline_mode = #tpu.pipeline_mode<synchronous>, transform_indices = @transform_6, window_bounds = array<i64: 1, 128>}, {pipeline_mode = #tpu.pipeline_mode<synchronous>, transform_indices = @transform_7, window_bounds = array<i64: 2, 128>}]} {
    %c0 = arith.constant 0 : index
    %c0_0 = arith.constant 0 : index
    %0 = vector.load %arg1[%c0, %c0_0] : memref<32x640xbf16, #tpu.memory_space<vmem>>, vector<32x640xbf16>
    %c0_1 = arith.constant 0 : index
    %c0_2 = arith.constant 0 : index
    %1 = vector.load %arg2[%c0_1, %c0_2] : memref<640x128xbf16, #tpu.memory_space<vmem>>, vector<640x128xbf16>
    %cst = arith.constant dense<0.000000e+00> : vector<32x128xf32>
    %2 = tpu.matmul %0, %1, %cst {dimension_numbers = #tpu.dot_dimension_numbers<[1], [0], [0], [1], [0, 0, 1, 1], [], []>} : vector<32x640xbf16>, vector<640x128xbf16>, vector<32x128xf32> -> vector<32x128xf32>
    %c0_3 = arith.constant 0 : index
    %c0_4 = arith.constant 0 : index
    %3 = vector.load %arg3[%c0_3, %c0_4] : memref<1x128xf32, #tpu.memory_space<vmem>>, vector<1x128xf32>
    %4 = vector.broadcast %3 : vector<1x128xf32> to vector<32x128xf32>
    %5 = arith.addf %2, %4 : vector<32x128xf32>
    %c0_5 = arith.constant 0 : index
    %c0_6 = arith.constant 0 : index
    %6 = vector.load %arg4[%c0_5, %c0_6] : memref<32x128xbf16, #tpu.memory_space<vmem>>, vector<32x128xbf16>
    %7 = arith.extf %6 : vector<32x128xbf16> to vector<32x128xf32>
    %8 = arith.addf %5, %7 : vector<32x128xf32>
    %cst_7 = arith.constant 0.000000e+00 : f32
    %9 = vector.broadcast %cst_7 : f32 to vector<32x128xf32>
    %10 = arith.maximumf %8, %9 : vector<32x128xf32>
    %c0_8 = arith.constant 0 : index
    %c0_9 = arith.constant 0 : index
    %11 = vector.load %arg5[%c0_8, %c0_9] : memref<2x32xbf16, #tpu.memory_space<vmem>>, vector<2x32xbf16>
    %12 = arith.truncf %10 : vector<32x128xf32> to vector<32x128xbf16>
    %cst_10 = arith.constant dense<0.000000e+00> : vector<2x128xf32>
    %13 = tpu.matmul %11, %12, %cst_10 {dimension_numbers = #tpu.dot_dimension_numbers<[1], [0], [0], [1], [0, 0, 1, 1], [], []>} : vector<2x32xbf16>, vector<32x128xbf16>, vector<2x128xf32> -> vector<2x128xf32>
    %14 = arith.truncf %13 : vector<2x128xf32> to vector<2x128xbf16>
    %c0_11 = arith.constant 0 : index
    %c0_12 = arith.constant 0 : index
    %15 = vector.load %arg6[%c0_11, %c0_12] : memref<128x128xbf16, #tpu.memory_space<vmem>>, vector<128x128xbf16>
    %cst_13 = arith.constant dense<0.000000e+00> : vector<2x128xf32>
    %16 = tpu.matmul %14, %15, %cst_13 {dimension_numbers = #tpu.dot_dimension_numbers<[1], [0], [0], [1], [0, 0, 1, 1], [], []>} : vector<2x128xbf16>, vector<128x128xbf16>, vector<2x128xf32> -> vector<2x128xf32>
    %c0_14 = arith.constant 0 : index
    %c0_15 = arith.constant 0 : index
    %17 = vector.load %arg7[%c0_14, %c0_15] : memref<1x128xf32, #tpu.memory_space<vmem>>, vector<1x128xf32>
    %18 = vector.broadcast %17 : vector<1x128xf32> to vector<2x128xf32>
    %19 = arith.addf %16, %18 : vector<2x128xf32>
    %c0_16 = arith.constant 0 : index
    %c0_17 = arith.constant 0 : index
    %20 = vector.load %arg8[%c0_16, %c0_17] : memref<2x128xf32, #tpu.memory_space<vmem>>, vector<2x128xf32>
    tpu.vector_store %arg8[%c0_16, %c0_17], %19 {strides = array<i32>} : memref<2x128xf32, #tpu.memory_space<vmem>>, vector<2x128xf32>,
    return
  }
  func.func @transform_0(%arg0: i32) -> (i32, i32) {
    %c0_i32 = arith.constant 0 : i32
    %c0_i32_0 = arith.constant 0 : i32
    %c0_i32_1 = arith.constant 0 : i32
    return %c0_i32, %c0_i32_0 : i32, i32
  }
  func.func @transform_1(%arg0: i32) -> (i32, i32) {
    %c0_i32 = arith.constant 0 : i32
    %c0_i32_0 = arith.constant 0 : i32
    %c0_i32_1 = arith.constant 0 : i32
    return %c0_i32, %c0_i32_0 : i32, i32
  }
  func.func @transform_2(%arg0: i32) -> (i32, i32) {
    %c0_i32 = arith.constant 0 : i32
    %c0_i32_0 = arith.constant 0 : i32
    %c0_i32_1 = arith.constant 0 : i32
    return %c0_i32, %c0_i32_0 : i32, i32
  }
  func.func @transform_3(%arg0: i32) -> (i32, i32) {
    %c0_i32 = arith.constant 0 : i32
    %c0_i32_0 = arith.constant 0 : i32
    %c0_i32_1 = arith.constant 0 : i32
    return %c0_i32, %c0_i32_0 : i32, i32
  }
  func.func @transform_4(%arg0: i32) -> (i32, i32) {
    %c0_i32 = arith.constant 0 : i32
    %c0_i32_0 = arith.constant 0 : i32
    %c0_i32_1 = arith.constant 0 : i32
    return %c0_i32, %c0_i32_0 : i32, i32
  }
  func.func @transform_5(%arg0: i32) -> (i32, i32) {
    %c0_i32 = arith.constant 0 : i32
    %c0_i32_0 = arith.constant 0 : i32
    %c0_i32_1 = arith.constant 0 : i32
    return %c0_i32, %c0_i32_0 : i32, i32
  }
  func.func @transform_6(%arg0: i32) -> (i32, i32) {
    %c0_i32 = arith.constant 0 : i32
    %c0_i32_0 = arith.constant 0 : i32
    %c0_i32_1 = arith.constant 0 : i32
    return %c0_i32, %c0_i32_0 : i32, i32
  }
  func.func @transform_7(%arg0: i32) -> (i32, i32) {
    %c0_i32 = arith.constant 0 : i32
    %c0_i32_0 = arith.constant 0 : i32
    %c0_i32_1 = arith.constant 0 : i32
    return %c0_i32, %c0_i32_0 : i32, i32
  }
}

module attributes {stable_mosaic.version = 11 : i64} {
  func.func @_conv_kernel(%arg0: i32, %arg1: memref<16x640xbf16, #tpu.memory_space<vmem>>, %arg2: memref<640x128xbf16, #tpu.memory_space<vmem>>, %arg3: memref<1x128xf32, #tpu.memory_space<vmem>>, %arg4: memref<16x128xbf16, #tpu.memory_space<vmem>>) attributes {dimension_semantics = [#tpu.dimension_semantics<parallel>], iteration_bounds = array<i64: 2>, scalar_prefetch = 0 : i64, scratch_operands = 0 : i64, tpu.core_type = #tpu.core_type<tc>, window_params = [{transform_indices = @transform_0, window_bounds = array<i64: 16, 640>}, {pipeline_mode = #tpu.pipeline_mode<synchronous>, transform_indices = @transform_1, window_bounds = array<i64: 640, 128>}, {pipeline_mode = #tpu.pipeline_mode<synchronous>, transform_indices = @transform_2, window_bounds = array<i64: 1, 128>}, {transform_indices = @transform_3, window_bounds = array<i64: 16, 128>}]} {
    %c0 = arith.constant 0 : index
    %c0_0 = arith.constant 0 : index
    %0 = vector.load %arg1[%c0, %c0_0] : memref<16x640xbf16, #tpu.memory_space<vmem>>, vector<16x640xbf16>
    %c0_1 = arith.constant 0 : index
    %c0_2 = arith.constant 0 : index
    %1 = vector.load %arg2[%c0_1, %c0_2] : memref<640x128xbf16, #tpu.memory_space<vmem>>, vector<640x128xbf16>
    %cst = arith.constant dense<0.000000e+00> : vector<16x128xf32>
    %2 = tpu.matmul %0, %1, %cst {dimension_numbers = #tpu.dot_dimension_numbers<[1], [0], [0], [1], [0, 0, 1, 1], [], []>} : vector<16x640xbf16>, vector<640x128xbf16>, vector<16x128xf32> -> vector<16x128xf32>
    %c0_3 = arith.constant 0 : index
    %c0_4 = arith.constant 0 : index
    %3 = vector.load %arg3[%c0_3, %c0_4] : memref<1x128xf32, #tpu.memory_space<vmem>>, vector<1x128xf32>
    %4 = vector.broadcast %3 : vector<1x128xf32> to vector<16x128xf32>
    %5 = arith.addf %2, %4 : vector<16x128xf32>
    %cst_5 = arith.constant 0.000000e+00 : f32
    %6 = vector.broadcast %cst_5 : f32 to vector<16x128xf32>
    %7 = arith.maximumf %5, %6 : vector<16x128xf32>
    %8 = arith.truncf %7 : vector<16x128xf32> to vector<16x128xbf16>
    %c0_6 = arith.constant 0 : index
    %c0_7 = arith.constant 0 : index
    %9 = vector.load %arg4[%c0_6, %c0_7] : memref<16x128xbf16, #tpu.memory_space<vmem>>, vector<16x128xbf16>
    tpu.vector_store %arg4[%c0_6, %c0_7], %8 {strides = array<i32>} : memref<16x128xbf16, #tpu.memory_space<vmem>>, vector<16x128xbf16>,
    return
  }
  func.func @transform_0(%arg0: i32) -> (i32, i32) {
    %c0_i32 = arith.constant 0 : i32
    %c0_i32_0 = arith.constant 0 : i32
    return %arg0, %c0_i32 : i32, i32
  }
  func.func @transform_1(%arg0: i32) -> (i32, i32) {
    %c0_i32 = arith.constant 0 : i32
    %c0_i32_0 = arith.constant 0 : i32
    %c0_i32_1 = arith.constant 0 : i32
    return %c0_i32, %c0_i32_0 : i32, i32
  }
  func.func @transform_2(%arg0: i32) -> (i32, i32) {
    %c0_i32 = arith.constant 0 : i32
    %c0_i32_0 = arith.constant 0 : i32
    %c0_i32_1 = arith.constant 0 : i32
    return %c0_i32, %c0_i32_0 : i32, i32
  }
  func.func @transform_3(%arg0: i32) -> (i32, i32) {
    %c0_i32 = arith.constant 0 : i32
    %c0_i32_0 = arith.constant 0 : i32
    return %arg0, %c0_i32 : i32, i32
  }
}

</mosaic_0001>

<bundles_post_ra>
// kernel: _lambda_.17
= control target key start
LH: loop header
LB: loop body
LE: loop exit
PB: predicated region body
PF: predicated region fallthrough
CT: control target
= control target key end

     0   :  { %s1814_s12 = smov 0   ;;  %s1999_s0 = inlined_call_operand.vmem [shape: bf16[2048,128], index: 0, kind: input, shape index: {}]   ;;  %s2000_s1 = inlined_call_operand.vmem [shape: bf16[128,128], index: 1, kind: input, shape index: {}]   ;;  %s2001_s2 = inlined_call_operand.vmem [shape: f32[1,128], index: 2, kind: input, shape index: {}]   ;;  %s2002_s3 = inlined_call_operand.vmem [shape: bf16[2048,128], index: 3, kind: output, shape index: {}]  }
   0x1 LB: > { %s1231_s13 = sadd.s32 4294967295, %s1792_s12   ;;  %p1235_p0 = scmp.ge.s32.totalorder %s1792_s12, 1  ;;  %s1792_s12 = sphi %s1814_s12, %s13_s12  }
   0x2   : > { %p138_p1 = scmp.lt.s32.totalorder %s1792_s12, 5 }
   0x4   : > { %p139_p2 = pnand %p1235_p0, %p138_p1 }
   0x5   : > { %v1746_v0 = vld [vmem:[%s2000_s1] sm:$0xff] (!%p139_p2)   ;;  %s1236_s16 = sshll.u32 (!%p139_p2), %s1231_s13, 6  ;;  %v1747_v1 = vld [vmem:[%s2000_s1 + $0x8] sm:$0xff] (!%p139_p2)   ;;  %v1748_v2 = vld [vmem:[%s2000_s1 + $0x10] sm:$0xff] (!%p139_p2)  }
   0x6   : > { %142 = sbr.rel (%p139_p2) target bundleno = 316 (0x13c), region = 32  ;;  %p163_p3 = scmp.lt.s32.totalorder (!%p139_p2), %s1236_s16, 255  ;;  %1642 = vmatprep.subr.bf16.mxu0 (!%p139_p2), %v1746_v0  ;;  %1722 = vmatprep.subr.bf16.mxu1 (!%p139_p2), %v1746_v0  ;;  %v1749_v3 = vld [vmem:[%s2000_s1 + $0x18] sm:$0xff] (!%p139_p2)   ;;  %v1750_v6 = vld [vmem:[%s2000_s1 + $0x20] sm:$0xff] (!%p139_p2)   ;;  %v1751_v7 = vld [vmem:[%s2000_s1 + $0x28] sm:$0xff] (!%p139_p2)  }
   0x7   : > { %1643 = vmatpush3.bf16.msra.mxu0 (!%p139_p2), %v1746_v0  ;;  %1730 = vmatpush3.bf16.msra.mxu1 (!%p139_p2), %v1746_v0  ;;  %v1752_v8 = vld [vmem:[%s2000_s1 + $0x30] sm:$0xff] (!%p139_p2)   ;;  %v1753_v9 = vld [vmem:[%s2000_s1 + $0x38] sm:$0xff] (!%p139_p2)   ;;  %v1891_v40 = vld [vmem:[%s2001_s2] ss:$0 sm:$0xff] (!%p139_p2) }
   0x8   : > { %1644 = vmatprep.subr.bf16.mxu0 (!%p139_p2), %v1747_v1  ;;  %1723 = vmatprep.subr.bf16.mxu1 (!%p139_p2), %v1747_v1 }
   0xb   : > { %1645 = vmatpush3.bf16.msra.mxu0 (!%p139_p2), %v1747_v1  ;;  %1731 = vmatpush3.bf16.msra.mxu1 (!%p139_p2), %v1747_v1 }
   0xc   : > { %1646 = vmatprep.subr.bf16.mxu0 (!%p139_p2), %v1748_v2  ;;  %1724 = vmatprep.subr.bf16.mxu1 (!%p139_p2), %v1748_v2 }
   0xd   : > { %s2004_s16 = smov (!%p163_p3, %s1236_s16), 255 }
   0xe   : > { %s1237_s21 = sshll.u32 %s2004_s16, 2 }
   0xf   : > { %s1839_s24 = scalar_lea.vmem %s1999_s0, %s1237_s21  ;;  %1647 = vmatpush3.bf16.msra.mxu0 %v1748_v2  ;;  %1732 = vmatpush3.bf16.msra.mxu1 %v1748_v2  ;;  %s1906_s13 = scalar_lea.vmem %s2002_s3, %s1237_s21 }
  0x10   : > { %v1754_v4 = vld [vmem:[%s1839_s24] sm:$0xff]   ;;  %1648 = vmatprep.subr.bf16.mxu0 %v1749_v3  ;;  %1725 = vmatprep.subr.bf16.mxu1 %v1749_v3  ;;  %v1756_v10 = vld [vmem:[%s1839_s24 + $0x8] sm:$0xff]   ;;  %v1758_v12 = vld [vmem:[%s1839_s24 + $0x10] sm:$0xff]  }
  0x11   : > { %v1755_v5 = vld [vmem:[%s1839_s24 + $0x80] sm:$0xff]   ;;  %1658 = vmatprep.mubr.bf16.mxu0 %v1754_v4  ;;  %v1757_v11 = vld [vmem:[%s1839_s24 + $0x88] sm:$0xff]   ;;  %v1759_v13 = vld [vmem:[%s1839_s24 + $0x90] sm:$0xff]  }
  0x12   : > { %1690 = vmatprep.mubr.bf16.mxu1 %v1755_v5  ;;  %v1760_v14 = vld [vmem:[%s1839_s24 + $0x18] sm:$0xff]   ;;  %v1762_v16 = vld [vmem:[%s1839_s24 + $0x20] sm:$0xff]   ;;  %v1764_v18 = vld [vmem:[%s1839_s24 + $0x28] sm:$0xff]  }
  0x13   : > { %1649 = vmatpush3.bf16.msra.mxu0 %v1749_v3  ;;  %1733 = vmatpush3.bf16.msra.mxu1 %v1749_v3  ;;  %v1761_v15 = vld [vmem:[%s1839_s24 + $0x98] sm:$0xff]   ;;  %v1763_v17 = vld [vmem:[%s1839_s24 + $0xa0] sm:$0xff]   ;;  %v1765_v19 = vld [vmem:[%s1839_s24 + $0xa8] sm:$0xff]  }
  0x14   : > { %1650 = vmatprep.subr.bf16.mxu0 %v1750_v6  ;;  %1726 = vmatprep.subr.bf16.mxu1 %v1750_v6  ;;  %v1766_v20 = vld [vmem:[%s1839_s24 + $0x30] sm:$0xff]   ;;  %v1768_v22 = vld [vmem:[%s1839_s24 + $0x38] sm:$0xff]   ;;  %v1770_v24 = vld [vmem:[%s1839_s24 + $0x40] sm:$0xff]  }
  0x15   : > { %v1767_v21 = vld [vmem:[%s1839_s24 + $0xb0] sm:$0xff]   ;;  %v1769_v23 = vld [vmem:[%s1839_s24 + $0xb8] sm:$0xff]   ;;  %v1771_v25 = vld [vmem:[%s1839_s24 + $0xc0] sm:$0xff]  }
  0x16   : > { %v1772_v26 = vld [vmem:[%s1839_s24 + $0x48] sm:$0xff]   ;;  %v1774_v28 = vld [vmem:[%s1839_s24 + $0x50] sm:$0xff]   ;;  %v1776_v30 = vld [vmem:[%s1839_s24 + $0x58] sm:$0xff]  }
  0x17   : > { %1651 = vmatpush3.bf16.msra.mxu0 %v1750_v6  ;;  %1734 = vmatpush3.bf16.msra.mxu1 %v1750_v6  ;;  %v1773_v27 = vld [vmem:[%s1839_s24 + $0xc8] sm:$0xff]   ;;  %v1775_v29 = vld [vmem:[%s1839_s24 + $0xd0] sm:$0xff]   ;;  %v1777_v31 = vld [vmem:[%s1839_s24 + $0xd8] sm:$0xff]  }
  0x18   : > { %1652 = vmatprep.subr.bf16.mxu0 %v1751_v7  ;;  %1727 = vmatprep.subr.bf16.mxu1 %v1751_v7  ;;  %v1778_v32 = vld [vmem:[%s1839_s24 + $0x60] sm:$0xff]   ;;  %v1780_v34 = vld [vmem:[%s1839_s24 + $0x68] sm:$0xff]   ;;  %v1782_v36 = vld [vmem:[%s1839_s24 + $0x70] sm:$0xff]  }
  0x19   : > { %v1779_v33 = vld [vmem:[%s1839_s24 + $0xe0] sm:$0xff]   ;;  %v1781_v35 = vld [vmem:[%s1839_s24 + $0xe8] sm:$0xff]   ;;  %v1783_v37 = vld [vmem:[%s1839_s24 + $0xf0] sm:$0xff]  }
  0x1a   : > { %v1784_v38 = vld [vmem:[%s1839_s24 + $0x78] sm:$0xff]  }
  0x1b   : > { %1653 = vmatpush3.bf16.msra.mxu0 %v1751_v7  ;;  %1735 = vmatpush3.bf16.msra.mxu1 %v1751_v7  ;;  %v1785_v39 = vld [vmem:[%s1839_s24 + $0xf8] sm:$0xff]  }
  0x1c   : > { %1654 = vmatprep.subr.bf16.mxu0 %v1752_v8  ;;  %1728 = vmatprep.subr.bf16.mxu1 %v1752_v8 }
  0x1f   : > { %1655 = vmatpush3.bf16.msra.mxu0 %v1752_v8  ;;  %1736 = vmatpush3.bf16.msra.mxu1 %v1752_v8 }
  0x20   : > { %1656 = vmatprep.subr.bf16.mxu0 %v1753_v9  ;;  %1729 = vmatprep.subr.bf16.mxu1 %v1753_v9 }
  0x23   : > { %1657 = vmatpush3.bf16.msra.mxu0 %v1753_v9  ;;  %1737 = vmatpush3.bf16.msra.mxu1 %v1753_v9 }
  0x26   : > { %1659 = vmatmul.mubr.bf16.vlgmr.msra.gmra.mrb[0].mxu0 %v1756_v10  ;;  %1691 = vmatmul.mubr.bf16.vlgmr.msra.gmra.mrb[0].mxu1 %v1757_v11 }
  0x27   : > { %1662 = vmatprep.mubr.bf16.mxu0 %v1758_v12  ;;  %1694 = vmatprep.mubr.bf16.mxu1 %v1759_v13 }
  0x2e   : > { %1663 = vmatmul.mubr.bf16.gmra.mrb[4].mxu0 %v1760_v14  ;;  %1695 = vmatmul.mubr.bf16.gmra.mrb[4].mxu1 %v1761_v15 }
  0x2f   : > { %1666 = vmatprep.mubr.bf16.mxu0 %v1762_v16  ;;  %1698 = vmatprep.mubr.bf16.mxu1 %v1763_v17 }
  0x36   : > { %1667 = vmatmul.mubr.bf16.gmra.mrb[8].mxu0 %v1764_v18  ;;  %1699 = vmatmul.mubr.bf16.gmra.mrb[8].mxu1 %v1765_v19 }
  0x37   : > { %1670 = vmatprep.mubr.bf16.mxu0 %v1766_v20  ;;  %1702 = vmatprep.mubr.bf16.mxu1 %v1767_v21 }
  0x3e   : > { %1671 = vmatmul.mubr.bf16.gmra.mrb[12].mxu0 %v1768_v22  ;;  %1703 = vmatmul.mubr.bf16.gmra.mrb[12].mxu1 %v1769_v23 }
  0x3f   : > { %1674 = vmatprep.mubr.bf16.mxu0 %v1770_v24  ;;  %1706 = vmatprep.mubr.bf16.mxu1 %v1771_v25 }
  0x46   : > { %1675 = vmatmul.mubr.bf16.gmra.mrb[16].mxu0 %v1772_v26  ;;  %1707 = vmatmul.mubr.bf16.gmra.mrb[16].mxu1 %v1773_v27 }
  0x47   : > { %1678 = vmatprep.mubr.bf16.mxu0 %v1774_v28  ;;  %1710 = vmatprep.mubr.bf16.mxu1 %v1775_v29 }
  0x4e   : > { %1679 = vmatmul.mubr.bf16.gmra.mrb[20].mxu0 %v1776_v30  ;;  %1711 = vmatmul.mubr.bf16.gmra.mrb[20].mxu1 %v1777_v31 }
  0x4f   : > { %1682 = vmatprep.mubr.bf16.mxu0 %v1778_v32  ;;  %1714 = vmatprep.mubr.bf16.mxu1 %v1779_v33 }
  0x56   : > { %1683 = vmatmul.mubr.bf16.gmra.mrb[24].mxu0 %v1780_v34  ;;  %1715 = vmatmul.mubr.bf16.gmra.mrb[24].mxu1 %v1781_v35 }
  0x57   : > { %1686 = vmatprep.mubr.bf16.mxu0 %v1782_v36  ;;  %1718 = vmatprep.mubr.bf16.mxu1 %v1783_v37 }
  0x5e   : > { %1687 = vmatmul.mubr.bf16.gmra.mrb[28].mxu0 %v1784_v38  ;;  %1719 = vmatmul.mubr.bf16.gmra.mrb[28].mxu1 %v1785_v39 }
  0xf9   : > { %v1660_v41 = vpop.f32.mrb[0].mxu0  ;;  %v1692_v42 = vpop.f32.mrb[0].mxu1 }
  0xfa   : > { %v545_v43 = vadd.f32 %v1660_v41, %v1891_v40  ;;  %v673_v44 = vadd.f32 %v1692_v42, %v1891_v40  ;;  %v536_v45 = vpop.f32.mrb[1].mxu0  ;;  %v664_v46 = vpop.f32.mrb[1].mxu1 }
  0xfb   : > { %v537_v47 = vadd.f32 %v1891_v40, %v536_v45  ;;  %v665_v48 = vadd.f32 %v1891_v40, %v664_v46  ;;  %v1661_v49 = vpop.f32.mrb[2].mxu0  ;;  %v1693_v50 = vpop.f32.mrb[2].mxu1 }
  0xfc   : > { %v548_v51 = vadd.f32 %v1661_v49, %v1891_v40  ;;  %v676_v52 = vadd.f32 %v1693_v50, %v1891_v40  ;;  %v539_v53 = vpop.f32.mrb[3].mxu0  ;;  %v667_v54 = vpop.f32.mrb[3].mxu1  ;;  %v793_v57 = vmax.f32 %v545_v43, 0.0  ;;  %v825_v58 = vmax.f32 %v673_v44, 0.0 }
  0xfd   : > { %v540_v55 = vadd.f32 %v1891_v40, %v539_v53  ;;  %v668_v56 = vadd.f32 %v1891_v40, %v667_v54  ;;  %v791_v61 = vmax.f32 %v537_v47, 0.0  ;;  %v823_v62 = vmax.f32 %v665_v48, 0.0 }
  0xfe   : > { %v794_v59 = vmax.f32 %v548_v51, 0.0  ;;  %v826_v60 = vmax.f32 %v676_v52, 0.0 }
  0xff   : > { %v792_v63 = vmax.f32 %v540_v55, 0.0  ;;  %v824_v0 = vmax.f32 %v668_v56, 0.0 }
 0x100   : > { %v1419_v1 = vpack.c.bf16 %v794_v59, %v793_v57  ;;  %v1499_v2 = vpack.c.bf16 %v826_v60, %v825_v58 }
 0x101   : > { %v1414_v3 = vpack.c.bf16 %v792_v63, %v791_v61  ;;  %v1494_v4 = vpack.c.bf16 %v824_v0, %v823_v62  ;;  %v1664_v5 = vpop.f32.mrb[4].mxu0  ;;  %v1696_v6 = vpop.f32.mrb[4].mxu1 }
 0x102   : > { %1571 = vst [vmem:[%s1906_s13 + $0x8] sm:$0xff] %v1419_v1   ;;  %1587 = vst [vmem:[%s1906_s13 + $0x88] sm:$0xff] %v1499_v2   ;;  %v561_v7 = vadd.f32 %v1664_v5, %v1891_v40  ;;  %v689_v8 = vadd.f32 %v1696_v6, %v1891_v40  ;;  %v552_v9 = vpop.f32.mrb[5].mxu0  ;;  %v680_v10 = vpop.f32.mrb[5].mxu1 }
 0x103   : > { %1415 = vst [vmem:[%s1906_s13] sm:$0xff] %v1414_v3   ;;  %1586 = vst [vmem:[%s1906_s13 + $0x80] sm:$0xff] %v1494_v4   ;;  %v553_v11 = vadd.f32 %v1891_v40, %v552_v9  ;;  %v681_v12 = vadd.f32 %v1891_v40, %v680_v10  ;;  %v1665_v13 = vpop.f32.mrb[6].mxu0  ;;  %v1697_v14 = vpop.f32.mrb[6].mxu1 }
 0x104   : > { %v564_v15 = vadd.f32 %v1665_v13, %v1891_v40  ;;  %v692_v16 = vadd.f32 %v1697_v14, %v1891_v40  ;;  %v555_v17 = vpop.f32.mrb[7].mxu0  ;;  %v683_v18 = vpop.f32.mrb[7].mxu1  ;;  %v797_v21 = vmax.f32 %v561_v7, 0.0  ;;  %v829_v22 = vmax.f32 %v689_v8, 0.0 }
 0x105   : > { %v556_v19 = vadd.f32 %v1891_v40, %v555_v17  ;;  %v684_v20 = vadd.f32 %v1891_v40, %v683_v18  ;;  %v795_v25 = vmax.f32 %v553_v11, 0.0  ;;  %v827_v26 = vmax.f32 %v681_v12, 0.0 }
 0x106   : > { %v798_v23 = vmax.f32 %v564_v15, 0.0  ;;  %v830_v24 = vmax.f32 %v692_v16, 0.0 }
 0x107   : > { %v796_v27 = vmax.f32 %v556_v19, 0.0  ;;  %v828_v28 = vmax.f32 %v684_v20, 0.0 }
 0x108   : > { %v1429_v29 = vpack.c.bf16 %v798_v23, %v797_v21  ;;  %v1509_v30 = vpack.c.bf16 %v830_v24, %v829_v22 }
 0x109   : > { %v1424_v31 = vpack.c.bf16 %v796_v27, %v795_v25  ;;  %v1504_v32 = vpack.c.bf16 %v828_v28, %v827_v26  ;;  %v1668_v33 = vpop.f32.mrb[8].mxu0  ;;  %v1700_v34 = vpop.f32.mrb[8].mxu1 }
 0x10a   : > { %1573 = vst [vmem:[%s1906_s13 + $0x18] sm:$0xff] %v1429_v29   ;;  %1589 = vst [vmem:[%s1906_s13 + $0x98] sm:$0xff] %v1509_v30   ;;  %v577_v35 = vadd.f32 %v1668_v33, %v1891_v40  ;;  %v705_v36 = vadd.f32 %v1700_v34, %v1891_v40  ;;  %v568_v37 = vpop.f32.mrb[9].mxu0  ;;  %v696_v38 = vpop.f32.mrb[9].mxu1 }
 0x10b   : > { %1572 = vst [vmem:[%s1906_s13 + $0x10] sm:$0xff] %v1424_v31   ;;  %1588 = vst [vmem:[%s1906_s13 + $0x90] sm:$0xff] %v1504_v32   ;;  %v569_v39 = vadd.f32 %v1891_v40, %v568_v37  ;;  %v697_v41 = vadd.f32 %v1891_v40, %v696_v38  ;;  %v1669_v42 = vpop.f32.mrb[10].mxu0  ;;  %v1701_v43 = vpop.f32.mrb[10].mxu1 }
 0x10c   : > { %v580_v44 = vadd.f32 %v1669_v42, %v1891_v40  ;;  %v708_v45 = vadd.f32 %v1701_v43, %v1891_v40  ;;  %v571_v46 = vpop.f32.mrb[11].mxu0  ;;  %v699_v47 = vpop.f32.mrb[11].mxu1  ;;  %v801_v50 = vmax.f32 %v577_v35, 0.0  ;;  %v833_v51 = vmax.f32 %v705_v36, 0.0 }
 0x10d   : > { %v572_v48 = vadd.f32 %v1891_v40, %v571_v46  ;;  %v700_v49 = vadd.f32 %v1891_v40, %v699_v47  ;;  %v799_v54 = vmax.f32 %v569_v39, 0.0  ;;  %v831_v55 = vmax.f32 %v697_v41, 0.0 }
 0x10e   : > { %v802_v52 = vmax.f32 %v580_v44, 0.0  ;;  %v834_v53 = vmax.f32 %v708_v45, 0.0 }
 0x10f   : > { %v800_v56 = vmax.f32 %v572_v48, 0.0  ;;  %v832_v57 = vmax.f32 %v700_v49, 0.0 }
 0x110   : > { %v1439_v58 = vpack.c.bf16 %v802_v52, %v801_v50  ;;  %v1519_v59 = vpack.c.bf16 %v834_v53, %v833_v51 }
 0x111   : > { %v1434_v60 = vpack.c.bf16 %v800_v56, %v799_v54  ;;  %v1514_v61 = vpack.c.bf16 %v832_v57, %v831_v55  ;;  %v1672_v62 = vpop.f32.mrb[12].mxu0  ;;  %v1704_v63 = vpop.f32.mrb[12].mxu1 }
 0x112   : > { %1575 = vst [vmem:[%s1906_s13 + $0x28] sm:$0xff] %v1439_v58   ;;  %1591 = vst [vmem:[%s1906_s13 + $0xa8] sm:$0xff] %v1519_v59   ;;  %v593_v0 = vadd.f32 %v1672_v62, %v1891_v40  ;;  %v721_v1 = vadd.f32 %v1704_v63, %v1891_v40  ;;  %v584_v2 = vpop.f32.mrb[13].mxu0  ;;  %v712_v3 = vpop.f32.mrb[13].mxu1 }
 0x113   : > { %1574 = vst [vmem:[%s1906_s13 + $0x20] sm:$0xff] %v1434_v60   ;;  %1590 = vst [vmem:[%s1906_s13 + $0xa0] sm:$0xff] %v1514_v61   ;;  %v585_v4 = vadd.f32 %v1891_v40, %v584_v2  ;;  %v713_v5 = vadd.f32 %v1891_v40, %v712_v3  ;;  %v1673_v6 = vpop.f32.mrb[14].mxu0  ;;  %v1705_v7 = vpop.f32.mrb[14].mxu1 }
 0x114   : > { %v596_v8 = vadd.f32 %v1673_v6, %v1891_v40  ;;  %v724_v9 = vadd.f32 %v1705_v7, %v1891_v40  ;;  %v587_v10 = vpop.f32.mrb[15].mxu0  ;;  %v715_v11 = vpop.f32.mrb[15].mxu1  ;;  %v805_v14 = vmax.f32 %v593_v0, 0.0  ;;  %v837_v15 = vmax.f32 %v721_v1, 0.0 }
 0x115   : > { %v588_v12 = vadd.f32 %v1891_v40, %v587_v10  ;;  %v716_v13 = vadd.f32 %v1891_v40, %v715_v11  ;;  %v803_v18 = vmax.f32 %v585_v4, 0.0  ;;  %v835_v19 = vmax.f32 %v713_v5, 0.0 }
 0x116   : > { %v806_v16 = vmax.f32 %v596_v8, 0.0  ;;  %v838_v17 = vmax.f32 %v724_v9, 0.0 }
 0x117   : > { %v804_v20 = vmax.f32 %v588_v12, 0.0  ;;  %v836_v21 = vmax.f32 %v716_v13, 0.0 }
 0x118   : > { %v1449_v22 = vpack.c.bf16 %v806_v16, %v805_v14  ;;  %v1529_v23 = vpack.c.bf16 %v838_v17, %v837_v15 }
 0x119   : > { %v1444_v24 = vpack.c.bf16 %v804_v20, %v803_v18  ;;  %v1524_v25 = vpack.c.bf16 %v836_v21, %v835_v19  ;;  %v1676_v26 = vpop.f32.mrb[16].mxu0  ;;  %v1708_v27 = vpop.f32.mrb[16].mxu1 }
 0x11a   : > { %1577 = vst [vmem:[%s1906_s13 + $0x38] sm:$0xff] %v1449_v22   ;;  %1593 = vst [vmem:[%s1906_s13 + $0xb8] sm:$0xff] %v1529_v23   ;;  %v609_v28 = vadd.f32 %v1676_v26, %v1891_v40  ;;  %v737_v29 = vadd.f32 %v1708_v27, %v1891_v40  ;;  %v600_v30 = vpop.f32.mrb[17].mxu0  ;;  %v728_v31 = vpop.f32.mrb[17].mxu1 }
 0x11b   : > { %1576 = vst [vmem:[%s1906_s13 + $0x30] sm:$0xff] %v1444_v24   ;;  %1592 = vst [vmem:[%s1906_s13 + $0xb0] sm:$0xff] %v1524_v25   ;;  %v601_v32 = vadd.f32 %v1891_v40, %v600_v30  ;;  %v729_v33 = vadd.f32 %v1891_v40, %v728_v31  ;;  %v1677_v34 = vpop.f32.mrb[18].mxu0  ;;  %v1709_v35 = vpop.f32.mrb[18].mxu1 }
 0x11c   : > { %v612_v36 = vadd.f32 %v1677_v34, %v1891_v40  ;;  %v740_v37 = vadd.f32 %v1709_v35, %v1891_v40  ;;  %v603_v38 = vpop.f32.mrb[19].mxu0  ;;  %v731_v39 = vpop.f32.mrb[19].mxu1  ;;  %v809_v43 = vmax.f32 %v609_v28, 0.0  ;;  %v841_v44 = vmax.f32 %v737_v29, 0.0 }
 0x11d   : > { %v604_v41 = vadd.f32 %v1891_v40, %v603_v38  ;;  %v732_v42 = vadd.f32 %v1891_v40, %v731_v39  ;;  %v807_v47 = vmax.f32 %v601_v32, 0.0  ;;  %v839_v48 = vmax.f32 %v729_v33, 0.0 }
 0x11e   : > { %v810_v45 = vmax.f32 %v612_v36, 0.0  ;;  %v842_v46 = vmax.f32 %v740_v37, 0.0 }
 0x11f   : > { %v808_v49 = vmax.f32 %v604_v41, 0.0  ;;  %v840_v50 = vmax.f32 %v732_v42, 0.0 }
 0x120   : > { %v1459_v51 = vpack.c.bf16 %v810_v45, %v809_v43  ;;  %v1539_v52 = vpack.c.bf16 %v842_v46, %v841_v44 }
 0x121   : > { %v1454_v53 = vpack.c.bf16 %v808_v49, %v807_v47  ;;  %v1534_v54 = vpack.c.bf16 %v840_v50, %v839_v48  ;;  %v1680_v55 = vpop.f32.mrb[20].mxu0  ;;  %v1712_v56 = vpop.f32.mrb[20].mxu1 }
 0x122   : > { %1579 = vst [vmem:[%s1906_s13 + $0x48] sm:$0xff] %v1459_v51   ;;  %1595 = vst [vmem:[%s1906_s13 + $0xc8] sm:$0xff] %v1539_v52   ;;  %v625_v57 = vadd.f32 %v1680_v55, %v1891_v40  ;;  %v753_v58 = vadd.f32 %v1712_v56, %v1891_v40  ;;  %v616_v59 = vpop.f32.mrb[21].mxu0  ;;  %v744_v60 = vpop.f32.mrb[21].mxu1 }
 0x123   : > { %1578 = vst [vmem:[%s1906_s13 + $0x40] sm:$0xff] %v1454_v53   ;;  %1594 = vst [vmem:[%s1906_s13 + $0xc0] sm:$0xff] %v1534_v54   ;;  %v617_v61 = vadd.f32 %v1891_v40, %v616_v59  ;;  %v745_v62 = vadd.f32 %v1891_v40, %v744_v60  ;;  %v1681_v63 = vpop.f32.mrb[22].mxu0  ;;  %v1713_v0 = vpop.f32.mrb[22].mxu1 }
 0x124   : > { %v628_v1 = vadd.f32 %v1681_v63, %v1891_v40  ;;  %v756_v2 = vadd.f32 %v1713_v0, %v1891_v40  ;;  %v619_v3 = vpop.f32.mrb[23].mxu0  ;;  %v747_v4 = vpop.f32.mrb[23].mxu1  ;;  %v813_v7 = vmax.f32 %v625_v57, 0.0  ;;  %v845_v8 = vmax.f32 %v753_v58, 0.0 }
 0x125   : > { %v620_v5 = vadd.f32 %v1891_v40, %v619_v3  ;;  %v748_v6 = vadd.f32 %v1891_v40, %v747_v4  ;;  %v811_v11 = vmax.f32 %v617_v61, 0.0  ;;  %v843_v12 = vmax.f32 %v745_v62, 0.0 }
 0x126   : > { %v814_v9 = vmax.f32 %v628_v1, 0.0  ;;  %v846_v10 = vmax.f32 %v756_v2, 0.0 }
 0x127   : > { %v812_v13 = vmax.f32 %v620_v5, 0.0  ;;  %v844_v14 = vmax.f32 %v748_v6, 0.0 }
 0x128   : > { %v1469_v15 = vpack.c.bf16 %v814_v9, %v813_v7  ;;  %v1549_v16 = vpack.c.bf16 %v846_v10, %v845_v8 }
 0x129   : > { %v1464_v17 = vpack.c.bf16 %v812_v13, %v811_v11  ;;  %v1544_v18 = vpack.c.bf16 %v844_v14, %v843_v12  ;;  %v1684_v19 = vpop.f32.mrb[24].mxu0  ;;  %v1716_v20 = vpop.f32.mrb[24].mxu1 }
 0x12a   : > { %1581 = vst [vmem:[%s1906_s13 + $0x58] sm:$0xff] %v1469_v15   ;;  %1597 = vst [vmem:[%s1906_s13 + $0xd8] sm:$0xff] %v1549_v16   ;;  %v641_v21 = vadd.f32 %v1684_v19, %v1891_v40  ;;  %v769_v22 = vadd.f32 %v1716_v20, %v1891_v40  ;;  %v632_v23 = vpop.f32.mrb[25].mxu0  ;;  %v760_v24 = vpop.f32.mrb[25].mxu1 }
 0x12b   : > { %1580 = vst [vmem:[%s1906_s13 + $0x50] sm:$0xff] %v1464_v17   ;;  %1596 = vst [vmem:[%s1906_s13 + $0xd0] sm:$0xff] %v1544_v18   ;;  %v633_v25 = vadd.f32 %v1891_v40, %v632_v23  ;;  %v761_v26 = vadd.f32 %v1891_v40, %v760_v24  ;;  %v1685_v27 = vpop.f32.mrb[26].mxu0  ;;  %v1717_v28 = vpop.f32.mrb[26].mxu1 }
 0x12c   : > { %v644_v29 = vadd.f32 %v1685_v27, %v1891_v40  ;;  %v772_v30 = vadd.f32 %v1717_v28, %v1891_v40  ;;  %v635_v31 = vpop.f32.mrb[27].mxu0  ;;  %v763_v32 = vpop.f32.mrb[27].mxu1  ;;  %v817_v35 = vmax.f32 %v641_v21, 0.0  ;;  %v849_v36 = vmax.f32 %v769_v22, 0.0 }
 0x12d   : > { %v636_v33 = vadd.f32 %v1891_v40, %v635_v31  ;;  %v764_v34 = vadd.f32 %v1891_v40, %v763_v32  ;;  %v815_v39 = vmax.f32 %v633_v25, 0.0  ;;  %v847_v41 = vmax.f32 %v761_v26, 0.0 }
 0x12e   : > { %v818_v37 = vmax.f32 %v644_v29, 0.0  ;;  %v850_v38 = vmax.f32 %v772_v30, 0.0 }
 0x12f   : > { %v816_v42 = vmax.f32 %v636_v33, 0.0  ;;  %v848_v43 = vmax.f32 %v764_v34, 0.0 }
 0x130   : > { %v1479_v44 = vpack.c.bf16 %v818_v37, %v817_v35  ;;  %v1559_v45 = vpack.c.bf16 %v850_v38, %v849_v36 }
 0x131   : > { %v1474_v46 = vpack.c.bf16 %v816_v42, %v815_v39  ;;  %v1554_v47 = vpack.c.bf16 %v848_v43, %v847_v41  ;;  %v1688_v48 = vpop.f32.mrb[28].mxu0  ;;  %v1720_v49 = vpop.f32.mrb[28].mxu1 }
 0x132   : > { %1583 = vst [vmem:[%s1906_s13 + $0x68] sm:$0xff] %v1479_v44   ;;  %1599 = vst [vmem:[%s1906_s13 + $0xe8] sm:$0xff] %v1559_v45   ;;  %v657_v50 = vadd.f32 %v1688_v48, %v1891_v40  ;;  %v785_v51 = vadd.f32 %v1720_v49, %v1891_v40  ;;  %v648_v52 = vpop.f32.mrb[29].mxu0  ;;  %v776_v53 = vpop.f32.mrb[29].mxu1 }
 0x133   : > { %1582 = vst [vmem:[%s1906_s13 + $0x60] sm:$0xff] %v1474_v46   ;;  %1598 = vst [vmem:[%s1906_s13 + $0xe0] sm:$0xff] %v1554_v47   ;;  %v649_v54 = vadd.f32 %v1891_v40, %v648_v52  ;;  %v777_v55 = vadd.f32 %v1891_v40, %v776_v53  ;;  %v1689_v56 = vpop.f32.mrb[30].mxu0  ;;  %v1721_v57 = vpop.f32.mrb[30].mxu1 }
 0x134   : > { %v660_v58 = vadd.f32 %v1689_v56, %v1891_v40  ;;  %v788_v59 = vadd.f32 %v1721_v57, %v1891_v40  ;;  %v651_v60 = vpop.f32.mrb[31].mxu0  ;;  %v779_v61 = vpop.f32.mrb[31].mxu1  ;;  %v821_v0 = vmax.f32 %v657_v50, 0.0  ;;  %v853_v1 = vmax.f32 %v785_v51, 0.0 }
 0x135   : > { %v652_v62 = vadd.f32 %v1891_v40, %v651_v60  ;;  %v780_v63 = vadd.f32 %v1891_v40, %v779_v61  ;;  %v819_v4 = vmax.f32 %v649_v54, 0.0  ;;  %v851_v5 = vmax.f32 %v777_v55, 0.0 }
 0x136   : > { %v822_v2 = vmax.f32 %v660_v58, 0.0  ;;  %v854_v3 = vmax.f32 %v788_v59, 0.0 }
 0x137   : > { %v820_v6 = vmax.f32 %v652_v62, 0.0  ;;  %v852_v7 = vmax.f32 %v780_v63, 0.0 }
 0x138   : > { %v1489_v8 = vpack.c.bf16 %v822_v2, %v821_v0  ;;  %v1569_v9 = vpack.c.bf16 %v854_v3, %v853_v1 }
 0x139   : > { %v1484_v10 = vpack.c.bf16 %v820_v6, %v819_v4  ;;  %v1564_v11 = vpack.c.bf16 %v852_v7, %v851_v5 }
 0x13a   : > { %1585 = vst [vmem:[%s1906_s13 + $0x78] sm:$0xff] %v1489_v8   ;;  %1601 = vst [vmem:[%s1906_s13 + $0xf8] sm:$0xff] %v1569_v9  }
 0x13b   : > { %1584 = vst [vmem:[%s1906_s13 + $0x70] sm:$0xff] %v1484_v10   ;;  %1600 = vst [vmem:[%s1906_s13 + $0xf0] sm:$0xff] %v1564_v11  }
 0x13c PF: > { %s13_s12 = sadd.s32 1, %s1792_s12  }
 0x13d   : > { %p10_p4 = scmp.ge.s32.totalorder %s13_s12, 6  }
 0x13f   :  { %12 = sbr.rel (!%p10_p4) target bundleno = 1 (0x1), region = 62 }

// kernel: _lambda_.19
= control target key start
LH: loop header
LB: loop body
LE: loop exit
PB: predicated region body
PF: predicated region fallthrough
CT: control target
= control target key end

     0   :  { %s2233_s15 = smov 0   ;;  %s2697_s0 = inlined_call_operand.vmem [shape: bf16[2048,128], index: 0, kind: input, shape index: {}]   ;;  %s2698_s1 = inlined_call_operand.vmem [shape: bf16[128,128], index: 1, kind: input, shape index: {}]   ;;  %s2699_s2 = inlined_call_operand.vmem [shape: f32[1,128], index: 2, kind: input, shape index: {}]   ;;  %s2700_s3 = inlined_call_operand.vmem [shape: bf16[2048,128], index: 3, kind: input, shape index: {}]   ;;  %s2701_s4 = inlined_call_operand.vmem [shape: bf16[2048,128], index: 4, kind: output, shape index: {}]  }
   0x1 LB: > { %s1484_s16 = sadd.s32 4294967295, %s2206_s15   ;;  %p1488_p0 = scmp.ge.s32.totalorder %s2206_s15, 1  ;;  %s2206_s15 = sphi %s2233_s15, %s14_s15  }
   0x2   : > { %p174_p1 = scmp.lt.s32.totalorder %s2206_s15, 5 }
   0x4   : > { %p175_p2 = pnand %p1488_p0, %p174_p1 }
   0x5   : > { %v2160_v0 = vld [vmem:[%s2698_s1] sm:$0xff] (!%p175_p2)   ;;  %s1489_s19 = sshll.u32 (!%p175_p2), %s1484_s16, 6  ;;  %v2161_v1 = vld [vmem:[%s2698_s1 + $0x8] sm:$0xff] (!%p175_p2)   ;;  %v2162_v2 = vld [vmem:[%s2698_s1 + $0x10] sm:$0xff] (!%p175_p2)  }
   0x6   : > { %178 = sbr.rel (%p175_p2) target bundleno = 322 (0x142), region = 36  ;;  %p206_p3 = scmp.lt.s32.totalorder (!%p175_p2), %s1489_s19, 255  ;;  %2056 = vmatprep.subr.bf16.mxu0 (!%p175_p2), %v2160_v0  ;;  %2136 = vmatprep.subr.bf16.mxu1 (!%p175_p2), %v2160_v0  ;;  %v2163_v3 = vld [vmem:[%s2698_s1 + $0x18] sm:$0xff] (!%p175_p2)   ;;  %v2164_v6 = vld [vmem:[%s2698_s1 + $0x20] sm:$0xff] (!%p175_p2)   ;;  %v2165_v7 = vld [vmem:[%s2698_s1 + $0x28] sm:$0xff] (!%p175_p2)  }
   0x7   : > { %2057 = vmatpush3.bf16.msra.mxu0 (!%p175_p2), %v2160_v0  ;;  %2144 = vmatpush3.bf16.msra.mxu1 (!%p175_p2), %v2160_v0  ;;  %v2166_v8 = vld [vmem:[%s2698_s1 + $0x30] sm:$0xff] (!%p175_p2)   ;;  %v2167_v9 = vld [vmem:[%s2698_s1 + $0x38] sm:$0xff] (!%p175_p2)  }
   0x8   : > { %2058 = vmatprep.subr.bf16.mxu0 (!%p175_p2), %v2161_v1  ;;  %2137 = vmatprep.subr.bf16.mxu1 (!%p175_p2), %v2161_v1 }
   0xb   : > { %2059 = vmatpush3.bf16.msra.mxu0 (!%p175_p2), %v2161_v1  ;;  %2145 = vmatpush3.bf16.msra.mxu1 (!%p175_p2), %v2161_v1 }
   0xc   : > { %2060 = vmatprep.subr.bf16.mxu0 (!%p175_p2), %v2162_v2  ;;  %2138 = vmatprep.subr.bf16.mxu1 (!%p175_p2), %v2162_v2 }
   0xd   : > { %s2712_s19 = smov (!%p206_p3, %s1489_s19), 255 }
   0xe   : > { %s2250_s24 = sshll.u32 %s2712_s19, 2 }
   0xf   : > { %s2256_s27 = scalar_lea.vmem %s2697_s0, %s2250_s24  ;;  %2061 = vmatpush3.bf16.msra.mxu0 %v2162_v2  ;;  %2146 = vmatpush3.bf16.msra.mxu1 %v2162_v2  ;;  %s2309_s14 = scalar_lea.vmem %s2700_s3, %s2250_s24 }
  0x10   : > { %v2168_v4 = vld [vmem:[%s2256_s27] sm:$0xff]   ;;  %2062 = vmatprep.subr.bf16.mxu0 %v2163_v3  ;;  %2139 = vmatprep.subr.bf16.mxu1 %v2163_v3  ;;  %v2170_v10 = vld [vmem:[%s2256_s27 + $0x8] sm:$0xff]   ;;  %v2172_v12 = vld [vmem:[%s2256_s27 + $0x10] sm:$0xff]   ;;  %s2440_s20 = scalar_lea.vmem %s2701_s4, %s2250_s24 }
  0x11   : > { %v2169_v5 = vld [vmem:[%s2256_s27 + $0x80] sm:$0xff]   ;;  %2072 = vmatprep.mubr.bf16.mxu0 %v2168_v4  ;;  %v2171_v11 = vld [vmem:[%s2256_s27 + $0x88] sm:$0xff]   ;;  %v2173_v13 = vld [vmem:[%s2256_s27 + $0x90] sm:$0xff]  }
  0x12   : > { %2104 = vmatprep.mubr.bf16.mxu1 %v2169_v5  ;;  %v2174_v14 = vld [vmem:[%s2256_s27 + $0x18] sm:$0xff]   ;;  %v2176_v16 = vld [vmem:[%s2256_s27 + $0x20] sm:$0xff]   ;;  %v2178_v18 = vld [vmem:[%s2256_s27 + $0x28] sm:$0xff]  }
  0x13   : > { %2063 = vmatpush3.bf16.msra.mxu0 %v2163_v3  ;;  %2147 = vmatpush3.bf16.msra.mxu1 %v2163_v3  ;;  %v2175_v15 = vld [vmem:[%s2256_s27 + $0x98] sm:$0xff]   ;;  %v2177_v17 = vld [vmem:[%s2256_s27 + $0xa0] sm:$0xff]   ;;  %v2179_v19 = vld [vmem:[%s2256_s27 + $0xa8] sm:$0xff]  }
  0x14   : > { %2064 = vmatprep.subr.bf16.mxu0 %v2164_v6  ;;  %2140 = vmatprep.subr.bf16.mxu1 %v2164_v6  ;;  %v2180_v20 = vld [vmem:[%s2256_s27 + $0x30] sm:$0xff]   ;;  %v2182_v22 = vld [vmem:[%s2256_s27 + $0x38] sm:$0xff]   ;;  %v2184_v24 = vld [vmem:[%s2256_s27 + $0x40] sm:$0xff]  }
  0x15   : > { %v2181_v21 = vld [vmem:[%s2256_s27 + $0xb0] sm:$0xff]   ;;  %v2183_v23 = vld [vmem:[%s2256_s27 + $0xb8] sm:$0xff]   ;;  %v2185_v25 = vld [vmem:[%s2256_s27 + $0xc0] sm:$0xff]  }
  0x16   : > { %v2186_v26 = vld [vmem:[%s2256_s27 + $0x48] sm:$0xff]   ;;  %v2188_v28 = vld [vmem:[%s2256_s27 + $0x50] sm:$0xff]   ;;  %v2190_v30 = vld [vmem:[%s2256_s27 + $0x58] sm:$0xff]  }
  0x17   : > { %2065 = vmatpush3.bf16.msra.mxu0 %v2164_v6  ;;  %2148 = vmatpush3.bf16.msra.mxu1 %v2164_v6  ;;  %v2187_v27 = vld [vmem:[%s2256_s27 + $0xc8] sm:$0xff]   ;;  %v2189_v29 = vld [vmem:[%s2256_s27 + $0xd0] sm:$0xff]   ;;  %v2191_v31 = vld [vmem:[%s2256_s27 + $0xd8] sm:$0xff]  }
  0x18   : > { %2066 = vmatprep.subr.bf16.mxu0 %v2165_v7  ;;  %2141 = vmatprep.subr.bf16.mxu1 %v2165_v7  ;;  %v2192_v32 = vld [vmem:[%s2256_s27 + $0x60] sm:$0xff]   ;;  %v2194_v34 = vld [vmem:[%s2256_s27 + $0x68] sm:$0xff]   ;;  %v2196_v36 = vld [vmem:[%s2256_s27 + $0x70] sm:$0xff]  }
  0x19   : > { %v2193_v33 = vld [vmem:[%s2256_s27 + $0xe0] sm:$0xff]   ;;  %v2195_v35 = vld [vmem:[%s2256_s27 + $0xe8] sm:$0xff]   ;;  %v2197_v37 = vld [vmem:[%s2256_s27 + $0xf0] sm:$0xff]  }
  0x1a   : > { %v2198_v38 = vld [vmem:[%s2256_s27 + $0x78] sm:$0xff]   ;;  %v2312_v40 = vld [vmem:[%s2309_s14 + $0x8] sm:$0xff]   ;;  %v2318_v42 = vld [vmem:[%s2309_s14] sm:$0xff]  }
  0x1b   : > { %2067 = vmatpush3.bf16.msra.mxu0 %v2165_v7  ;;  %2149 = vmatpush3.bf16.msra.mxu1 %v2165_v7  ;;  %v2199_v39 = vld [vmem:[%s2256_s27 + $0xf8] sm:$0xff]   ;;  %v2315_v41 = vld [vmem:[%s2309_s14 + $0x88] sm:$0xff]   ;;  %v2321_v43 = vld [vmem:[%s2309_s14 + $0x80] sm:$0xff]   ;;  %v1672_v48 = vunpack.c.l.bf16 %v2312_v40  ;;  %v1668_v50 = vunpack.c.l.bf16 %v2318_v42  ;;  %v1673_v53 = vunpack.c.h.bf16 %v2312_v40  ;;  %v1669_v55 = vunpack.c.h.bf16 %v2318_v42 }
  0x1c   : > { %2068 = vmatprep.subr.bf16.mxu0 %v2166_v8  ;;  %2142 = vmatprep.subr.bf16.mxu1 %v2166_v8  ;;  %v2324_v44 = vld [vmem:[%s2309_s14 + $0x18] sm:$0xff]   ;;  %v2330_v46 = vld [vmem:[%s2309_s14 + $0x10] sm:$0xff]   ;;  %v1736_v49 = vunpack.c.l.bf16 %v2315_v41  ;;  %v1732_v51 = vunpack.c.l.bf16 %v2321_v43  ;;  %v2340_v52 = vld [vmem:[%s2309_s14 + $0x28] sm:$0xff]   ;;  %v1737_v54 = vunpack.c.h.bf16 %v2315_v41  ;;  %v1733_v56 = vunpack.c.h.bf16 %v2321_v43 }
  0x1d   : > { %v2327_v45 = vld [vmem:[%s2309_s14 + $0x98] sm:$0xff]   ;;  %v2333_v47 = vld [vmem:[%s2309_s14 + $0x90] sm:$0xff]   ;;  %v2347_v57 = vld [vmem:[%s2309_s14 + $0xa8] sm:$0xff]   ;;  %v1680_v60 = vunpack.c.l.bf16 %v2324_v44  ;;  %v1676_v62 = vunpack.c.l.bf16 %v2330_v46  ;;  %v1681_v1 = vunpack.c.h.bf16 %v2324_v44  ;;  %v1677_v3 = vunpack.c.h.bf16 %v2330_v46 }
  0x1e   : > { %v2350_v58 = vld [vmem:[%s2309_s14 + $0x20] sm:$0xff]   ;;  %v1744_v61 = vunpack.c.l.bf16 %v2327_v45  ;;  %v1740_v63 = vunpack.c.l.bf16 %v2333_v47  ;;  %v2360_v0 = vld [vmem:[%s2309_s14 + $0x38] sm:$0xff]   ;;  %v1745_v2 = vunpack.c.h.bf16 %v2327_v45  ;;  %v1741_v4 = vunpack.c.h.bf16 %v2333_v47  ;;  %v2370_v6 = vld [vmem:[%s2309_s14 + $0x30] sm:$0xff]  }
  0x1f   : > { %2069 = vmatpush3.bf16.msra.mxu0 %v2166_v8  ;;  %2150 = vmatpush3.bf16.msra.mxu1 %v2166_v8  ;;  %v2353_v59 = vld [vmem:[%s2309_s14 + $0xa0] sm:$0xff]   ;;  %v2367_v5 = vld [vmem:[%s2309_s14 + $0xb8] sm:$0xff]   ;;  %v2373_v7 = vld [vmem:[%s2309_s14 + $0xb0] sm:$0xff]   ;;  %v1688_v8 = vunpack.c.l.bf16 %v2340_v52 }
  0x20   : > { %2070 = vmatprep.subr.bf16.mxu0 %v2167_v9  ;;  %2143 = vmatprep.subr.bf16.mxu1 %v2167_v9 }
  0x23   : > { %2071 = vmatpush3.bf16.msra.mxu0 %v2167_v9  ;;  %2151 = vmatpush3.bf16.msra.mxu1 %v2167_v9  ;;  %v1752_v9 = vunpack.c.l.bf16 %v2347_v57 }
  0x26   : > { %2073 = vmatmul.mubr.bf16.vlgmr.msra.gmra.mrb[0].mxu0 %v2170_v10  ;;  %2105 = vmatmul.mubr.bf16.vlgmr.msra.gmra.mrb[0].mxu1 %v2171_v11  ;;  %v1684_v10 = vunpack.c.l.bf16 %v2350_v58  ;;  %v1748_v11 = vunpack.c.l.bf16 %v2353_v59 }
  0x27   : > { %2076 = vmatprep.mubr.bf16.mxu0 %v2172_v12  ;;  %2108 = vmatprep.mubr.bf16.mxu1 %v2173_v13  ;;  %v2382_v12 = vld [vmem:[%s2699_s2] ss:$0 sm:$0xff]  ;;  %v1689_v13 = vunpack.c.h.bf16 %v2340_v52 }
  0x2e   : > { %2077 = vmatmul.mubr.bf16.gmra.mrb[4].mxu0 %v2174_v14  ;;  %2109 = vmatmul.mubr.bf16.gmra.mrb[4].mxu1 %v2175_v15  ;;  %v1753_v14 = vunpack.c.h.bf16 %v2347_v57  ;;  %v1685_v15 = vunpack.c.h.bf16 %v2350_v58 }
  0x2f   : > { %2080 = vmatprep.mubr.bf16.mxu0 %v2176_v16  ;;  %2112 = vmatprep.mubr.bf16.mxu1 %v2177_v17  ;;  %v1749_v16 = vunpack.c.h.bf16 %v2353_v59  ;;  %v2389_v17 = vld [vmem:[%s2309_s14 + $0x48] sm:$0xff]  }
  0x36   : > { %2081 = vmatmul.mubr.bf16.gmra.mrb[8].mxu0 %v2178_v18  ;;  %2113 = vmatmul.mubr.bf16.gmra.mrb[8].mxu1 %v2179_v19  ;;  %v2392_v18 = vld [vmem:[%s2309_s14 + $0xc8] sm:$0xff]   ;;  %v1696_v19 = vunpack.c.l.bf16 %v2360_v0 }
  0x37   : > { %2084 = vmatprep.mubr.bf16.mxu0 %v2180_v20  ;;  %2116 = vmatprep.mubr.bf16.mxu1 %v2181_v21  ;;  %v1760_v20 = vunpack.c.l.bf16 %v2367_v5 }
  0x3e   : > { %2085 = vmatmul.mubr.bf16.gmra.mrb[12].mxu0 %v2182_v22  ;;  %2117 = vmatmul.mubr.bf16.gmra.mrb[12].mxu1 %v2183_v23  ;;  %v2399_v23 = vld [vmem:[%s2309_s14 + $0x40] sm:$0xff]  }
  0x3f   : > { %2088 = vmatprep.mubr.bf16.mxu0 %v2184_v24  ;;  %2120 = vmatprep.mubr.bf16.mxu1 %v2185_v25  ;;  %v2402_v24 = vld [vmem:[%s2309_s14 + $0xc0] sm:$0xff]  }
  0x46   : > { %2089 = vmatmul.mubr.bf16.gmra.mrb[16].mxu0 %v2186_v26  ;;  %2121 = vmatmul.mubr.bf16.gmra.mrb[16].mxu1 %v2187_v27 }
  0x47   : > { %2092 = vmatprep.mubr.bf16.mxu0 %v2188_v28  ;;  %2124 = vmatprep.mubr.bf16.mxu1 %v2189_v29 }
  0x4e   : > { %2093 = vmatmul.mubr.bf16.gmra.mrb[20].mxu0 %v2190_v30  ;;  %2125 = vmatmul.mubr.bf16.gmra.mrb[20].mxu1 %v2191_v31  ;;  %v1764_v30 = vunpack.c.l.bf16 %v2402_v24 }
  0x4f   : > { %2096 = vmatprep.mubr.bf16.mxu0 %v2192_v32  ;;  %2128 = vmatprep.mubr.bf16.mxu1 %v2193_v33 }
  0x56   : > { %2097 = vmatmul.mubr.bf16.gmra.mrb[24].mxu0 %v2194_v34  ;;  %2129 = vmatmul.mubr.bf16.gmra.mrb[24].mxu1 %v2195_v35 }
  0x57   : > { %2100 = vmatprep.mubr.bf16.mxu0 %v2196_v36  ;;  %2132 = vmatprep.mubr.bf16.mxu1 %v2197_v37 }
  0x5e   : > { %2101 = vmatmul.mubr.bf16.gmra.mrb[28].mxu0 %v2198_v38  ;;  %2133 = vmatmul.mubr.bf16.gmra.mrb[28].mxu1 %v2199_v39 }
  0xf9   : > { %v2074_v25 = vpop.f32.mrb[0].mxu0  ;;  %v2106_v26 = vpop.f32.mrb[0].mxu1 }
  0xfa   : > { %v594_v31 = vadd.f32 %v2074_v25, %v2382_v12  ;;  %v722_v32 = vadd.f32 %v2106_v26, %v2382_v12  ;;  %v585_v33 = vpop.f32.mrb[1].mxu0  ;;  %v713_v34 = vpop.f32.mrb[1].mxu1 }
  0xfb   : > { %v586_v37 = vadd.f32 %v2382_v12, %v585_v33  ;;  %v714_v38 = vadd.f32 %v2382_v12, %v713_v34  ;;  %v2075_v39 = vpop.f32.mrb[2].mxu0  ;;  %v2107_v28 = vpop.f32.mrb[2].mxu1 }
  0xfc   : > { %v970_v27 = vadd.f32 %v1672_v48, %v594_v31  ;;  %v1002_v25 = vadd.f32 %v1736_v49, %v722_v32  ;;  %v597_v26 = vadd.f32 %v2075_v39, %v2382_v12  ;;  %v725_v22 = vadd.f32 %v2107_v28, %v2382_v12  ;;  %v588_v21 = vpop.f32.mrb[3].mxu0  ;;  %v716_v35 = vpop.f32.mrb[3].mxu1 }
  0xfd   : > { %v968_v36 = vadd.f32 %v1668_v50, %v586_v37  ;;  %v1000_v33 = vadd.f32 %v1732_v51, %v714_v38  ;;  %v589_v34 = vadd.f32 %v2382_v12, %v588_v21  ;;  %v717_v29 = vadd.f32 %v2382_v12, %v716_v35 }
  0xfe   : > { %v971_v48 = vadd.f32 %v1673_v53, %v597_v26  ;;  %v1003_v49 = vadd.f32 %v1737_v54, %v725_v22  ;;  %v1705_v28 = vunpack.c.h.bf16 %v2389_v17  ;;  %v1769_v31 = vunpack.c.h.bf16 %v2392_v18 }
  0xff   : > { %v969_v50 = vadd.f32 %v1669_v55, %v589_v34  ;;  %v1001_v51 = vadd.f32 %v1733_v56, %v717_v29  ;;  %v1701_v21 = vunpack.c.h.bf16 %v2399_v23  ;;  %v1765_v32 = vunpack.c.h.bf16 %v2402_v24 }
 0x100   : > { %v1034_v35 = vmax.f32 %v970_v27, 0.0  ;;  %v1066_v40 = vmax.f32 %v1002_v25, 0.0  ;;  %v1035_v53 = vmax.f32 %v971_v48, 0.0  ;;  %v1067_v37 = vmax.f32 %v1003_v49, 0.0 }
 0x101   : > { %v1032_v41 = vmax.f32 %v968_v36, 0.0  ;;  %v1064_v54 = vmax.f32 %v1000_v33, 0.0  ;;  %v1033_v42 = vmax.f32 %v969_v50, 0.0  ;;  %v1065_v55 = vmax.f32 %v1001_v51, 0.0  ;;  %v2078_v43 = vpop.f32.mrb[4].mxu0  ;;  %v2110_v56 = vpop.f32.mrb[4].mxu1 }
 0x102   : > { %v1802_v22 = vpack.c.bf16 %v1035_v53, %v1034_v35  ;;  %v1882_v27 = vpack.c.bf16 %v1067_v37, %v1066_v40  ;;  %v610_v29 = vadd.f32 %v2078_v43, %v2382_v12  ;;  %v738_v36 = vadd.f32 %v2110_v56, %v2382_v12  ;;  %v601_v38 = vpop.f32.mrb[5].mxu0  ;;  %v729_v39 = vpop.f32.mrb[5].mxu1  ;;  %v2447_v50 = vld [vmem:[%s2309_s14 + $0x58] sm:$0xff]  }
 0x103   : > { %v1797_v25 = vpack.c.bf16 %v1033_v42, %v1032_v41  ;;  %v1877_v26 = vpack.c.bf16 %v1065_v55, %v1064_v54  ;;  %v602_v33 = vadd.f32 %v2382_v12, %v601_v38  ;;  %v730_v34 = vadd.f32 %v2382_v12, %v729_v39  ;;  %v2079_v48 = vpop.f32.mrb[6].mxu0  ;;  %v2111_v49 = vpop.f32.mrb[6].mxu1  ;;  %v2450_v51 = vld [vmem:[%s2309_s14 + $0xd8] sm:$0xff]   ;;  %v2461_v42 = vld [vmem:[%s2309_s14 + $0x50] sm:$0xff]  }
 0x104   : > { %1985 = vst [vmem:[%s2440_s20 + $0x8] sm:$0xff] %v1802_v22   ;;  %2001 = vst [vmem:[%s2440_s20 + $0x88] sm:$0xff] %v1882_v27   ;;  %v974_v35 = vadd.f32 %v1680_v60, %v610_v29  ;;  %v1006_v40 = vadd.f32 %v1744_v61, %v738_v36  ;;  %v613_v53 = vadd.f32 %v2079_v48, %v2382_v12  ;;  %v604_v41 = vpop.f32.mrb[7].mxu0  ;;  %v732_v54 = vpop.f32.mrb[7].mxu1  ;;  %v2464_v55 = vld [vmem:[%s2309_s14 + $0xd0] sm:$0xff]   ;;  %v1712_v29 = vunpack.c.l.bf16 %v2447_v50 }
 0x105   : > { %v741_v37 = vadd.f32 %v2111_v49, %v2382_v12  ;;  %1798 = vst [vmem:[%s2440_s20] sm:$0xff] %v1797_v25   ;;  %2000 = vst [vmem:[%s2440_s20 + $0x80] sm:$0xff] %v1877_v26   ;;  %v972_v43 = vadd.f32 %v1676_v62, %v602_v33  ;;  %v1004_v60 = vadd.f32 %v1740_v63, %v730_v34  ;;  %v1776_v36 = vunpack.c.l.bf16 %v2450_v51 }
 0x106   : > { %v605_v61 = vadd.f32 %v2382_v12, %v604_v41  ;;  %v733_v56 = vadd.f32 %v2382_v12, %v732_v54  ;;  %v975_v22 = vadd.f32 %v1681_v1, %v613_v53  ;;  %v1708_v38 = vunpack.c.l.bf16 %v2461_v42 }
 0x107   : > { %v1007_v27 = vadd.f32 %v1745_v2, %v741_v37  ;;  %v1772_v39 = vunpack.c.l.bf16 %v2464_v55  ;;  %v1038_v25 = vmax.f32 %v974_v35, 0.0  ;;  %v1070_v44 = vmax.f32 %v1006_v40, 0.0 }
 0x108   : > { %v973_v62 = vadd.f32 %v1677_v3, %v605_v61  ;;  %v1005_v63 = vadd.f32 %v1741_v4, %v733_v56  ;;  %v1039_v1 = vmax.f32 %v975_v22, 0.0  ;;  %v1036_v45 = vmax.f32 %v972_v43, 0.0 }
 0x109   : > { %v1071_v26 = vmax.f32 %v1007_v27, 0.0  ;;  %v1068_v2 = vmax.f32 %v1004_v60, 0.0  ;;  %v2082_v48 = vpop.f32.mrb[8].mxu0  ;;  %v2114_v46 = vpop.f32.mrb[8].mxu1 }
 0x10a   : > { %v1037_v33 = vmax.f32 %v973_v62, 0.0  ;;  %v1069_v34 = vmax.f32 %v1005_v63, 0.0  ;;  %v1812_v3 = vpack.c.bf16 %v1039_v1, %v1038_v25  ;;  %v626_v47 = vadd.f32 %v2082_v48, %v2382_v12  ;;  %v617_v53 = vpop.f32.mrb[9].mxu0  ;;  %v745_v35 = vpop.f32.mrb[9].mxu1 }
 0x10b   : > { %v1892_v49 = vpack.c.bf16 %v1071_v26, %v1070_v44  ;;  %v754_v4 = vadd.f32 %v2114_v46, %v2382_v12  ;;  %v618_v41 = vadd.f32 %v2382_v12, %v617_v53  ;;  %v746_v54 = vadd.f32 %v2382_v12, %v745_v35  ;;  %v2083_v43 = vpop.f32.mrb[10].mxu0  ;;  %v2115_v60 = vpop.f32.mrb[10].mxu1 }
 0x10c   : > { %v1807_v40 = vpack.c.bf16 %v1037_v33, %v1036_v45  ;;  %v1887_v37 = vpack.c.bf16 %v1069_v34, %v1068_v2  ;;  %1987 = vst [vmem:[%s2440_s20 + $0x18] sm:$0xff] %v1812_v3   ;;  %v978_v61 = vadd.f32 %v1688_v8, %v626_v47  ;;  %v629_v22 = vadd.f32 %v2083_v43, %v2382_v12  ;;  %v620_v62 = vpop.f32.mrb[11].mxu0  ;;  %v748_v63 = vpop.f32.mrb[11].mxu1 }
 0x10d   : > { %2003 = vst [vmem:[%s2440_s20 + $0x98] sm:$0xff] %v1892_v49   ;;  %v1010_v56 = vadd.f32 %v1752_v9, %v754_v4  ;;  %v757_v27 = vadd.f32 %v2115_v60, %v2382_v12  ;;  %v976_v25 = vadd.f32 %v1684_v10, %v618_v41  ;;  %v1008_v44 = vadd.f32 %v1748_v11, %v746_v54 }
 0x10e   : > { %1986 = vst [vmem:[%s2440_s20 + $0x10] sm:$0xff] %v1807_v40   ;;  %2002 = vst [vmem:[%s2440_s20 + $0x90] sm:$0xff] %v1887_v37   ;;  %v621_v1 = vadd.f32 %v2382_v12, %v620_v62  ;;  %v749_v8 = vadd.f32 %v2382_v12, %v748_v63  ;;  %v979_v9 = vadd.f32 %v1689_v13, %v629_v22  ;;  %v1713_v45 = vunpack.c.h.bf16 %v2447_v50 }
 0x10f   : > { %v1011_v26 = vadd.f32 %v1753_v14, %v757_v27  ;;  %v1777_v2 = vunpack.c.h.bf16 %v2450_v51  ;;  %v1709_v33 = vunpack.c.h.bf16 %v2461_v42  ;;  %v1773_v34 = vunpack.c.h.bf16 %v2464_v55 }
 0x110   : > { %v977_v10 = vadd.f32 %v1685_v15, %v621_v1  ;;  %v1009_v11 = vadd.f32 %v1749_v16, %v749_v8  ;;  %v1042_v48 = vmax.f32 %v978_v61, 0.0  ;;  %v1074_v52 = vmax.f32 %v1010_v56, 0.0  ;;  %v2523_v61 = vld [vmem:[%s2309_s14 + $0x68] sm:$0xff]   ;;  %v2537_v1 = vld [vmem:[%s2309_s14 + $0x60] sm:$0xff]  }
 0x111   : > { %v1043_v13 = vmax.f32 %v979_v9, 0.0  ;;  %v1075_v46 = vmax.f32 %v1011_v26, 0.0  ;;  %v1040_v57 = vmax.f32 %v976_v25, 0.0  ;;  %v1072_v14 = vmax.f32 %v1008_v44, 0.0  ;;  %v2086_v47 = vpop.f32.mrb[12].mxu0  ;;  %v2118_v58 = vpop.f32.mrb[12].mxu1 }
 0x112   : > { %v1041_v3 = vmax.f32 %v977_v10, 0.0  ;;  %v1073_v49 = vmax.f32 %v1009_v11, 0.0  ;;  %v642_v16 = vadd.f32 %v2086_v47, %v2382_v12  ;;  %v770_v4 = vadd.f32 %v2118_v58, %v2382_v12  ;;  %v633_v53 = vpop.f32.mrb[13].mxu0  ;;  %v761_v35 = vpop.f32.mrb[13].mxu1  ;;  %v2526_v56 = vld [vmem:[%s2309_s14 + $0xe8] sm:$0xff]   ;;  %v2540_v8 = vld [vmem:[%s2309_s14 + $0xe0] sm:$0xff]  }
 0x113   : > { %v1822_v59 = vpack.c.bf16 %v1043_v13, %v1042_v48  ;;  %v1902_v15 = vpack.c.bf16 %v1075_v46, %v1074_v52  ;;  %v634_v41 = vadd.f32 %v2382_v12, %v633_v53  ;;  %v762_v54 = vadd.f32 %v2382_v12, %v761_v35  ;;  %v2087_v43 = vpop.f32.mrb[14].mxu0  ;;  %v2119_v60 = vpop.f32.mrb[14].mxu1 }
 0x114   : > { %v1817_v40 = vpack.c.bf16 %v1041_v3, %v1040_v57  ;;  %v1897_v37 = vpack.c.bf16 %v1073_v49, %v1072_v14  ;;  %v982_v22 = vadd.f32 %v1696_v19, %v642_v16  ;;  %v1014_v27 = vadd.f32 %v1760_v20, %v770_v4  ;;  %v636_v25 = vpop.f32.mrb[15].mxu0  ;;  %v764_v44 = vpop.f32.mrb[15].mxu1 }
 0x115   : > { %1989 = vst [vmem:[%s2440_s20 + $0x28] sm:$0xff] %v1822_v59   ;;  %2005 = vst [vmem:[%s2440_s20 + $0xa8] sm:$0xff] %v1902_v15   ;;  %v645_v62 = vadd.f32 %v2087_v43, %v2382_v12  ;;  %v773_v63 = vadd.f32 %v2119_v60, %v2382_v12  ;;  %v2702_v9 = vunpack.c.l.bf16 %v2370_v6  ;;  %v2703_v19 = vunpack.c.l.bf16 %v2373_v7 }
 0x116   : > { %1988 = vst [vmem:[%s2440_s20 + $0x20] sm:$0xff] %v1817_v40   ;;  %2004 = vst [vmem:[%s2440_s20 + $0xa0] sm:$0xff] %v1897_v37   ;;  %v637_v20 = vadd.f32 %v2382_v12, %v636_v25  ;;  %v765_v11 = vadd.f32 %v2382_v12, %v764_v44  ;;  %v2704_v48 = vunpack.c.h.bf16 %v2360_v0  ;;  %v2705_v13 = vunpack.c.h.bf16 %v2367_v5 }
 0x117   : > { %v980_v26 = vadd.f32 %v2702_v9, %v634_v41  ;;  %v1012_v10 = vadd.f32 %v2703_v19, %v762_v54  ;;  %v1720_v57 = vunpack.c.l.bf16 %v2523_v61  ;;  %v1784_v14 = vunpack.c.l.bf16 %v2526_v56 }
 0x118   : > { %v983_v52 = vadd.f32 %v2704_v48, %v645_v62  ;;  %v1015_v46 = vadd.f32 %v2705_v13, %v773_v63  ;;  %v2706_v3 = vunpack.c.h.bf16 %v2370_v6  ;;  %v2707_v47 = vunpack.c.h.bf16 %v2373_v7 }
 0x119   : > { %v1716_v59 = vunpack.c.l.bf16 %v2537_v1  ;;  %v1780_v15 = vunpack.c.l.bf16 %v2540_v8  ;;  %v1046_v16 = vmax.f32 %v982_v22, 0.0  ;;  %v1078_v0 = vmax.f32 %v1014_v27, 0.0  ;;  %v2090_v41 = vpop.f32.mrb[16].mxu0  ;;  %v2122_v6 = vpop.f32.mrb[16].mxu1 }
 0x11a   : > { %v981_v49 = vadd.f32 %v2706_v3, %v637_v20  ;;  %v1013_v58 = vadd.f32 %v2707_v47, %v765_v11  ;;  %v1047_v4 = vmax.f32 %v983_v52, 0.0  ;;  %v1079_v53 = vmax.f32 %v1015_v46, 0.0  ;;  %v649_v62 = vpop.f32.mrb[17].mxu0  ;;  %v777_v22 = vpop.f32.mrb[17].mxu1 }
 0x11b   : > { %v1044_v5 = vmax.f32 %v980_v26, 0.0  ;;  %v1076_v35 = vmax.f32 %v1012_v10, 0.0  ;;  %v658_v7 = vadd.f32 %v2090_v41, %v2382_v12  ;;  %v786_v60 = vadd.f32 %v2122_v6, %v2382_v12  ;;  %v2091_v9 = vpop.f32.mrb[18].mxu0  ;;  %v2123_v26 = vpop.f32.mrb[18].mxu1 }
 0x11c   : > { %v1045_v40 = vmax.f32 %v981_v49, 0.0  ;;  %v1077_v37 = vmax.f32 %v1013_v58, 0.0  ;;  %v1832_v54 = vpack.c.bf16 %v1047_v4, %v1046_v16  ;;  %v1912_v43 = vpack.c.bf16 %v1079_v53, %v1078_v0  ;;  %v652_v13 = vpop.f32.mrb[19].mxu0  ;;  %v780_v46 = vpop.f32.mrb[19].mxu1 }
 0x11d   : > { %v650_v25 = vadd.f32 %v2382_v12, %v649_v62  ;;  %v778_v44 = vadd.f32 %v2382_v12, %v777_v22  ;;  %v2708_v19 = vunpack.c.l.bf16 %v2389_v17  ;;  %v2709_v20 = vunpack.c.l.bf16 %v2392_v18 }
 0x11e   : > { %v1827_v27 = vpack.c.bf16 %v1045_v40, %v1044_v5  ;;  %v1907_v63 = vpack.c.bf16 %v1077_v37, %v1076_v35  ;;  %1991 = vst [vmem:[%s2440_s20 + $0x38] sm:$0xff] %v1832_v54   ;;  %2007 = vst [vmem:[%s2440_s20 + $0xb8] sm:$0xff] %v1912_v43   ;;  %v661_v48 = vadd.f32 %v2091_v9, %v2382_v12  ;;  %v2710_v3 = vunpack.c.l.bf16 %v2399_v23 }
 0x11f   : > { %v986_v10 = vadd.f32 %v2708_v19, %v658_v7  ;;  %v1018_v11 = vadd.f32 %v2709_v20, %v786_v60  ;;  %v789_v52 = vadd.f32 %v2123_v26, %v2382_v12  ;;  %v1016_v47 = vadd.f32 %v1764_v30, %v778_v44  ;;  %v2599_v19 = vld [vmem:[%s2309_s14 + $0x78] sm:$0xff]  }
 0x120   : > { %1990 = vst [vmem:[%s2440_s20 + $0x30] sm:$0xff] %v1827_v27   ;;  %2006 = vst [vmem:[%s2440_s20 + $0xb0] sm:$0xff] %v1907_v63   ;;  %v984_v49 = vadd.f32 %v2710_v3, %v650_v25  ;;  %v653_v58 = vadd.f32 %v2382_v12, %v652_v13  ;;  %v781_v16 = vadd.f32 %v2382_v12, %v780_v46  ;;  %v1721_v53 = vunpack.c.h.bf16 %v2523_v61  ;;  %v2613_v3 = vld [vmem:[%s2309_s14 + $0x70] sm:$0xff]  }
 0x121   : > { %v987_v0 = vadd.f32 %v1705_v28, %v661_v48  ;;  %v1019_v4 = vadd.f32 %v1769_v31, %v789_v52  ;;  %v1785_v5 = vunpack.c.h.bf16 %v2526_v56  ;;  %v1717_v40 = vunpack.c.h.bf16 %v2537_v1  ;;  %v2094_v7 = vpop.f32.mrb[20].mxu0  ;;  %v2126_v23 = vpop.f32.mrb[20].mxu1 }
 0x122   : > { %v985_v35 = vadd.f32 %v1701_v21, %v653_v58  ;;  %v1017_v30 = vadd.f32 %v1765_v32, %v781_v16  ;;  %v1781_v37 = vunpack.c.h.bf16 %v2540_v8  ;;  %v1050_v41 = vmax.f32 %v986_v10, 0.0  ;;  %v665_v62 = vpop.f32.mrb[21].mxu0  ;;  %v793_v22 = vpop.f32.mrb[21].mxu1  ;;  %v2602_v10 = vld [vmem:[%s2309_s14 + $0xf8] sm:$0xff]  }
 0x123   : > { %v1082_v17 = vmax.f32 %v1018_v11, 0.0  ;;  %v1051_v28 = vmax.f32 %v987_v0, 0.0  ;;  %v1083_v6 = vmax.f32 %v1019_v4, 0.0  ;;  %v1048_v18 = vmax.f32 %v984_v49, 0.0  ;;  %v2095_v9 = vpop.f32.mrb[22].mxu0  ;;  %v2127_v26 = vpop.f32.mrb[22].mxu1 }
 0x124   : > { %v1080_v31 = vmax.f32 %v1016_v47, 0.0  ;;  %v1049_v54 = vmax.f32 %v985_v35, 0.0  ;;  %v1081_v43 = vmax.f32 %v1017_v30, 0.0  ;;  %v674_v32 = vadd.f32 %v2094_v7, %v2382_v12  ;;  %v668_v13 = vpop.f32.mrb[23].mxu0  ;;  %v796_v46 = vpop.f32.mrb[23].mxu1  ;;  %v2616_v49 = vld [vmem:[%s2309_s14 + $0xf0] sm:$0xff]  }
 0x125   : > { %v1842_v24 = vpack.c.bf16 %v1051_v28, %v1050_v41  ;;  %v1922_v21 = vpack.c.bf16 %v1083_v6, %v1082_v17  ;;  %v802_v60 = vadd.f32 %v2126_v23, %v2382_v12  ;;  %v666_v25 = vadd.f32 %v2382_v12, %v665_v62 }
 0x126   : > { %v1837_v27 = vpack.c.bf16 %v1049_v54, %v1048_v18  ;;  %v1917_v63 = vpack.c.bf16 %v1081_v43, %v1080_v31  ;;  %v794_v44 = vadd.f32 %v2382_v12, %v793_v22  ;;  %v990_v20 = vadd.f32 %v1712_v29, %v674_v32 }
 0x127   : > { %1993 = vst [vmem:[%s2440_s20 + $0x48] sm:$0xff] %v1842_v24   ;;  %2009 = vst [vmem:[%s2440_s20 + $0xc8] sm:$0xff] %v1922_v21   ;;  %v1022_v11 = vadd.f32 %v1776_v36, %v802_v60  ;;  %v677_v48 = vadd.f32 %v2095_v9, %v2382_v12  ;;  %v805_v52 = vadd.f32 %v2127_v26, %v2382_v12  ;;  %v1728_v4 = vunpack.c.l.bf16 %v2599_v19 }
 0x128   : > { %1992 = vst [vmem:[%s2440_s20 + $0x40] sm:$0xff] %v1837_v27   ;;  %2008 = vst [vmem:[%s2440_s20 + $0xc0] sm:$0xff] %v1917_v63   ;;  %v988_v47 = vadd.f32 %v1708_v38, %v666_v25  ;;  %v1020_v29 = vadd.f32 %v1772_v39, %v794_v44  ;;  %v669_v36 = vadd.f32 %v2382_v12, %v668_v13  ;;  %v1792_v35 = vunpack.c.l.bf16 %v2602_v10 }
 0x129   : > { %v797_v58 = vadd.f32 %v2382_v12, %v796_v46  ;;  %v991_v16 = vadd.f32 %v1713_v45, %v677_v48  ;;  %v1023_v0 = vadd.f32 %v1777_v2, %v805_v52  ;;  %v1724_v30 = vunpack.c.l.bf16 %v2613_v3  ;;  %v2098_v31 = vpop.f32.mrb[24].mxu0  ;;  %v2130_v42 = vpop.f32.mrb[24].mxu1 }
 0x12a   : > { %v989_v38 = vadd.f32 %v1709_v33, %v669_v36  ;;  %v1788_v41 = vunpack.c.l.bf16 %v2616_v49  ;;  %v1054_v17 = vmax.f32 %v990_v20, 0.0  ;;  %v1086_v50 = vmax.f32 %v1022_v11, 0.0  ;;  %v681_v43 = vpop.f32.mrb[25].mxu0  ;;  %v809_v7 = vpop.f32.mrb[25].mxu1 }
 0x12b   : > { %v1021_v39 = vadd.f32 %v1773_v34, %v797_v58  ;;  %v1055_v45 = vmax.f32 %v991_v16, 0.0  ;;  %v1087_v28 = vmax.f32 %v1023_v0, 0.0  ;;  %v1052_v51 = vmax.f32 %v988_v47, 0.0  ;;  %v2099_v60 = vpop.f32.mrb[26].mxu0  ;;  %v2131_v62 = vpop.f32.mrb[26].mxu1 }
 0x12c   : > { %v1084_v2 = vmax.f32 %v1020_v29, 0.0  ;;  %v1053_v6 = vmax.f32 %v989_v38, 0.0  ;;  %v690_v55 = vadd.f32 %v2098_v31, %v2382_v12  ;;  %v818_v34 = vadd.f32 %v2130_v42, %v2382_v12  ;;  %v684_v44 = vpop.f32.mrb[27].mxu0  ;;  %v812_v9 = vpop.f32.mrb[27].mxu1 }
 0x12d   : > { %v1085_v18 = vmax.f32 %v1021_v39, 0.0  ;;  %v1852_v33 = vpack.c.bf16 %v1055_v45, %v1054_v17  ;;  %v1932_v54 = vpack.c.bf16 %v1087_v28, %v1086_v50  ;;  %v682_v21 = vadd.f32 %v2382_v12, %v681_v43 }
 0x12e   : > { %v1847_v23 = vpack.c.bf16 %v1053_v6, %v1052_v51  ;;  %v810_v32 = vadd.f32 %v2382_v12, %v809_v7  ;;  %v994_v22 = vadd.f32 %v1720_v57, %v690_v55  ;;  %v1026_v27 = vadd.f32 %v1784_v14, %v818_v34 }
 0x12f   : > { %v1927_v24 = vpack.c.bf16 %v1085_v18, %v1084_v2  ;;  %1995 = vst [vmem:[%s2440_s20 + $0x58] sm:$0xff] %v1852_v33   ;;  %2011 = vst [vmem:[%s2440_s20 + $0xd8] sm:$0xff] %v1932_v54   ;;  %v693_v63 = vadd.f32 %v2099_v60, %v2382_v12  ;;  %v821_v25 = vadd.f32 %v2131_v62, %v2382_v12  ;;  %v1729_v52 = vunpack.c.h.bf16 %v2599_v19 }
 0x130   : > { %1994 = vst [vmem:[%s2440_s20 + $0x50] sm:$0xff] %v1847_v23   ;;  %v992_v26 = vadd.f32 %v1716_v59, %v682_v21  ;;  %v1024_v20 = vadd.f32 %v1780_v15, %v810_v32  ;;  %v685_v11 = vadd.f32 %v2382_v12, %v684_v44  ;;  %v813_v57 = vadd.f32 %v2382_v12, %v812_v9 }
 0x131   : > { %2010 = vst [vmem:[%s2440_s20 + $0xd0] sm:$0xff] %v1927_v24   ;;  %v995_v14 = vadd.f32 %v1721_v53, %v693_v63  ;;  %v1027_v48 = vadd.f32 %v1785_v5, %v821_v25  ;;  %v1793_v13 = vunpack.c.h.bf16 %v2602_v10  ;;  %v1725_v46 = vunpack.c.h.bf16 %v2613_v3  ;;  %v2102_v0 = vpop.f32.mrb[28].mxu0  ;;  %v2134_v1 = vpop.f32.mrb[28].mxu1 }
 0x132   : > { %v993_v59 = vadd.f32 %v1717_v40, %v685_v11  ;;  %v1025_v15 = vadd.f32 %v1781_v37, %v813_v57  ;;  %v1789_v47 = vunpack.c.h.bf16 %v2616_v49  ;;  %v1058_v29 = vmax.f32 %v994_v22, 0.0  ;;  %v697_v39 = vpop.f32.mrb[29].mxu0  ;;  %v825_v17 = vpop.f32.mrb[29].mxu1 }
 0x133   : > { %v1090_v61 = vmax.f32 %v1026_v27, 0.0  ;;  %v1059_v53 = vmax.f32 %v995_v14, 0.0  ;;  %v1091_v36 = vmax.f32 %v1027_v48, 0.0  ;;  %v1056_v56 = vmax.f32 %v992_v26, 0.0  ;;  %v2103_v2 = vpop.f32.mrb[30].mxu0  ;;  %v2135_v6 = vpop.f32.mrb[30].mxu1 }
 0x134   : > { %v1088_v5 = vmax.f32 %v1024_v20, 0.0  ;;  %v1057_v58 = vmax.f32 %v993_v59, 0.0  ;;  %v1089_v16 = vmax.f32 %v1025_v15, 0.0  ;;  %v706_v8 = vadd.f32 %v2102_v0, %v2382_v12  ;;  %v700_v54 = vpop.f32.mrb[31].mxu0  ;;  %v828_v55 = vpop.f32.mrb[31].mxu1 }
 0x135   : > { %v1862_v40 = vpack.c.bf16 %v1059_v53, %v1058_v29  ;;  %v1942_v38 = vpack.c.bf16 %v1091_v36, %v1090_v61  ;;  %v834_v37 = vadd.f32 %v2134_v1, %v2382_v12  ;;  %v698_v28 = vadd.f32 %v2382_v12, %v697_v39 }
 0x136   : > { %v1857_v50 = vpack.c.bf16 %v1057_v58, %v1056_v56  ;;  %v1937_v45 = vpack.c.bf16 %v1089_v16, %v1088_v5  ;;  %v826_v51 = vadd.f32 %v2382_v12, %v825_v17  ;;  %v998_v18 = vadd.f32 %v1728_v4, %v706_v8 }
 0x137   : > { %1997 = vst [vmem:[%s2440_s20 + $0x68] sm:$0xff] %v1862_v40   ;;  %2013 = vst [vmem:[%s2440_s20 + $0xe8] sm:$0xff] %v1942_v38   ;;  %v1030_v31 = vadd.f32 %v1792_v35, %v834_v37  ;;  %v709_v42 = vadd.f32 %v2103_v2, %v2382_v12  ;;  %v837_v33 = vadd.f32 %v2135_v6, %v2382_v12 }
 0x138   : > { %1996 = vst [vmem:[%s2440_s20 + $0x60] sm:$0xff] %v1857_v50   ;;  %2012 = vst [vmem:[%s2440_s20 + $0xe0] sm:$0xff] %v1937_v45   ;;  %v996_v34 = vadd.f32 %v1724_v30, %v698_v28  ;;  %v1028_v43 = vadd.f32 %v1788_v41, %v826_v51  ;;  %v701_v19 = vadd.f32 %v2382_v12, %v700_v54  ;;  %v1062_v24 = vmax.f32 %v998_v18, 0.0 }
 0x139   : > { %v829_v4 = vadd.f32 %v2382_v12, %v828_v55  ;;  %v999_v10 = vadd.f32 %v1729_v52, %v709_v42  ;;  %v1031_v35 = vadd.f32 %v1793_v13, %v837_v33  ;;  %v1094_v21 = vmax.f32 %v1030_v31, 0.0 }
 0x13a   : > { %v997_v7 = vadd.f32 %v1725_v46, %v701_v19  ;;  %v1060_v30 = vmax.f32 %v996_v34, 0.0  ;;  %v1092_v60 = vmax.f32 %v1028_v43, 0.0 }
 0x13b   : > { %v1029_v23 = vadd.f32 %v1789_v47, %v829_v4  ;;  %v1063_v32 = vmax.f32 %v999_v10, 0.0  ;;  %v1095_v3 = vmax.f32 %v1031_v35, 0.0 }
 0x13c   : > { %v1061_v49 = vmax.f32 %v997_v7, 0.0 }
 0x13d   : > { %v1093_v41 = vmax.f32 %v1029_v23, 0.0  ;;  %v1872_v62 = vpack.c.bf16 %v1063_v32, %v1062_v24  ;;  %v1952_v22 = vpack.c.bf16 %v1095_v3, %v1094_v21 }
 0x13e   : > { %v1867_v27 = vpack.c.bf16 %v1061_v49, %v1060_v30 }
 0x13f   : > { %v1947_v12 = vpack.c.bf16 %v1093_v41, %v1092_v60  ;;  %1999 = vst [vmem:[%s2440_s20 + $0x78] sm:$0xff] %v1872_v62   ;;  %2015 = vst [vmem:[%s2440_s20 + $0xf8] sm:$0xff] %v1952_v22  }
 0x140   : > { %1998 = vst [vmem:[%s2440_s20 + $0x70] sm:$0xff] %v1867_v27  }
 0x141   : > { %2014 = vst [vmem:[%s2440_s20 + $0xf0] sm:$0xff] %v1947_v12  }
 0x142 PF: > { %s14_s15 = sadd.s32 1, %s2206_s15  }
 0x143   : > { %p11_p4 = scmp.ge.s32.totalorder %s14_s15, 6  }
 0x145   :  { %13 = sbr.rel (!%p11_p4) target bundleno = 1 (0x1), region = 69 }

// kernel: _lambda_.22
= control target key start
LH: loop header
LB: loop body
LE: loop exit
PB: predicated region body
PF: predicated region fallthrough
CT: control target
= control target key end

     0   :  { %s782_s12 = smov 0   ;;  %s853_s0 = inlined_call_operand.vmem [shape: bf16[512,128], index: 0, kind: input, shape index: {}]   ;;  %s854_s1 = inlined_call_operand.vmem [shape: bf16[128,128], index: 1, kind: input, shape index: {}]   ;;  %s855_s2 = inlined_call_operand.vmem [shape: f32[1,128], index: 2, kind: input, shape index: {}]   ;;  %s856_s3 = inlined_call_operand.vmem [shape: bf16[512,128], index: 3, kind: output, shape index: {}]  }
   0x1 LB: > { %s559_s13 = sadd.s32 4294967295, %s760_s12   ;;  %p563_p0 = scmp.ge.s32.totalorder %s760_s12, 1  ;;  %s760_s12 = sphi %s782_s12, %s13_s12  }
   0x2   : > { %p138_p1 = scmp.lt.s32.totalorder %s760_s12, 5 }
   0x4   : > { %p139_p2 = pnand %p563_p0, %p138_p1 }
   0x5   : > { %v738_v0 = vld [vmem:[%s854_s1] sm:$0xff] (!%p139_p2)   ;;  %s564_s16 = sshll.u32 (!%p139_p2), %s559_s13, 4  ;;  %v739_v1 = vld [vmem:[%s854_s1 + $0x8] sm:$0xff] (!%p139_p2)   ;;  %v740_v2 = vld [vmem:[%s854_s1 + $0x10] sm:$0xff] (!%p139_p2)  }
   0x6   : > { %142 = sbr.rel (%p139_p2) target bundleno = 268 (0x10c), region = 32  ;;  %p163_p3 = scmp.lt.s32.totalorder (!%p139_p2), %s564_s16, 63  ;;  %682 = vmatprep.subr.bf16.mxu0 (!%p139_p2), %v738_v0  ;;  %714 = vmatprep.subr.bf16.mxu1 (!%p139_p2), %v738_v0  ;;  %v741_v3 = vld [vmem:[%s854_s1 + $0x18] sm:$0xff] (!%p139_p2)   ;;  %v742_v6 = vld [vmem:[%s854_s1 + $0x20] sm:$0xff] (!%p139_p2)   ;;  %v743_v7 = vld [vmem:[%s854_s1 + $0x28] sm:$0xff] (!%p139_p2)  }
   0x7   : > { %683 = vmatpush3.bf16.msra.mxu0 (!%p139_p2), %v738_v0  ;;  %722 = vmatpush3.bf16.msra.mxu1 (!%p139_p2), %v738_v0  ;;  %v744_v8 = vld [vmem:[%s854_s1 + $0x30] sm:$0xff] (!%p139_p2)   ;;  %v745_v9 = vld [vmem:[%s854_s1 + $0x38] sm:$0xff] (!%p139_p2)   ;;  %v568_v16 = vld [vmem:[%s855_s2] ss:$0 sm:$0xff] (!%p139_p2) }
   0x8   : > { %684 = vmatprep.subr.bf16.mxu0 (!%p139_p2), %v739_v1  ;;  %715 = vmatprep.subr.bf16.mxu1 (!%p139_p2), %v739_v1 }
   0xb   : > { %685 = vmatpush3.bf16.msra.mxu0 (!%p139_p2), %v739_v1  ;;  %723 = vmatpush3.bf16.msra.mxu1 (!%p139_p2), %v739_v1 }
   0xc   : > { %686 = vmatprep.subr.bf16.mxu0 (!%p139_p2), %v740_v2  ;;  %716 = vmatprep.subr.bf16.mxu1 (!%p139_p2), %v740_v2 }
   0xd   : > { %s858_s16 = smov (!%p163_p3, %s564_s16), 63 }
   0xe   : > { %s565_s21 = sshll.u32 %s858_s16, 2 }
   0xf   : > { %s807_s24 = scalar_lea.vmem %s853_s0, %s565_s21  ;;  %687 = vmatpush3.bf16.msra.mxu0 %v740_v2  ;;  %724 = vmatpush3.bf16.msra.mxu1 %v740_v2  ;;  %s840_s13 = scalar_lea.vmem %s856_s3, %s565_s21 }
  0x10   : > { %v746_v4 = vld [vmem:[%s807_s24] sm:$0xff]   ;;  %688 = vmatprep.subr.bf16.mxu0 %v741_v3  ;;  %717 = vmatprep.subr.bf16.mxu1 %v741_v3  ;;  %v748_v10 = vld [vmem:[%s807_s24 + $0x8] sm:$0xff]   ;;  %v750_v12 = vld [vmem:[%s807_s24 + $0x10] sm:$0xff]  }
  0x11   : > { %v747_v5 = vld [vmem:[%s807_s24 + $0x20] sm:$0xff]   ;;  %698 = vmatprep.mubr.bf16.mxu0 %v746_v4  ;;  %v749_v11 = vld [vmem:[%s807_s24 + $0x28] sm:$0xff]   ;;  %v751_v13 = vld [vmem:[%s807_s24 + $0x30] sm:$0xff]  }
  0x12   : > { %706 = vmatprep.mubr.bf16.mxu1 %v747_v5  ;;  %v752_v14 = vld [vmem:[%s807_s24 + $0x18] sm:$0xff]  }
  0x13   : > { %689 = vmatpush3.bf16.msra.mxu0 %v741_v3  ;;  %725 = vmatpush3.bf16.msra.mxu1 %v741_v3  ;;  %v753_v15 = vld [vmem:[%s807_s24 + $0x38] sm:$0xff]  }
  0x14   : > { %690 = vmatprep.subr.bf16.mxu0 %v742_v6  ;;  %718 = vmatprep.subr.bf16.mxu1 %v742_v6 }
  0x17   : > { %691 = vmatpush3.bf16.msra.mxu0 %v742_v6  ;;  %726 = vmatpush3.bf16.msra.mxu1 %v742_v6 }
  0x18   : > { %692 = vmatprep.subr.bf16.mxu0 %v743_v7  ;;  %719 = vmatprep.subr.bf16.mxu1 %v743_v7 }
  0x1b   : > { %693 = vmatpush3.bf16.msra.mxu0 %v743_v7  ;;  %727 = vmatpush3.bf16.msra.mxu1 %v743_v7 }
  0x1c   : > { %694 = vmatprep.subr.bf16.mxu0 %v744_v8  ;;  %720 = vmatprep.subr.bf16.mxu1 %v744_v8 }
  0x1f   : > { %695 = vmatpush3.bf16.msra.mxu0 %v744_v8  ;;  %728 = vmatpush3.bf16.msra.mxu1 %v744_v8 }
  0x20   : > { %696 = vmatprep.subr.bf16.mxu0 %v745_v9  ;;  %721 = vmatprep.subr.bf16.mxu1 %v745_v9 }
  0x23   : > { %697 = vmatpush3.bf16.msra.mxu0 %v745_v9  ;;  %729 = vmatpush3.bf16.msra.mxu1 %v745_v9 }
  0x26   : > { %699 = vmatmul.mubr.bf16.vlgmr.msra.gmra.mrb[0].mxu0 %v748_v10  ;;  %707 = vmatmul.mubr.bf16.vlgmr.msra.gmra.mrb[0].mxu1 %v749_v11 }
  0x27   : > { %702 = vmatprep.mubr.bf16.mxu0 %v750_v12  ;;  %710 = vmatprep.mubr.bf16.mxu1 %v751_v13 }
  0x2e   : > { %703 = vmatmul.mubr.bf16.gmra.mrb[4].mxu0 %v752_v14  ;;  %711 = vmatmul.mubr.bf16.gmra.mrb[4].mxu1 %v753_v15 }
  0xf9   : > { %v700_v17 = vpop.f32.mrb[0].mxu0  ;;  %v708_v18 = vpop.f32.mrb[0].mxu1 }
  0xfa   : > { %v353_v19 = vadd.f32 %v700_v17, %v568_v16  ;;  %v385_v20 = vadd.f32 %v708_v18, %v568_v16  ;;  %v344_v21 = vpop.f32.mrb[1].mxu0  ;;  %v376_v22 = vpop.f32.mrb[1].mxu1 }
  0xfb   : > { %v345_v23 = vadd.f32 %v568_v16, %v344_v21  ;;  %v377_v24 = vadd.f32 %v568_v16, %v376_v22  ;;  %v701_v25 = vpop.f32.mrb[2].mxu0  ;;  %v709_v26 = vpop.f32.mrb[2].mxu1 }
  0xfc   : > { %v356_v27 = vadd.f32 %v701_v25, %v568_v16  ;;  %v388_v28 = vadd.f32 %v709_v26, %v568_v16  ;;  %v347_v29 = vpop.f32.mrb[3].mxu0  ;;  %v379_v30 = vpop.f32.mrb[3].mxu1  ;;  %v409_v33 = vmax.f32 %v353_v19, 0.0  ;;  %v417_v34 = vmax.f32 %v385_v20, 0.0 }
  0xfd   : > { %v348_v31 = vadd.f32 %v568_v16, %v347_v29  ;;  %v380_v32 = vadd.f32 %v568_v16, %v379_v30  ;;  %v407_v37 = vmax.f32 %v345_v23, 0.0  ;;  %v415_v38 = vmax.f32 %v377_v24, 0.0 }
  0xfe   : > { %v410_v35 = vmax.f32 %v356_v27, 0.0  ;;  %v418_v36 = vmax.f32 %v388_v28, 0.0 }
  0xff   : > { %v408_v39 = vmax.f32 %v348_v31, 0.0  ;;  %v416_v40 = vmax.f32 %v380_v32, 0.0 }
 0x100   : > { %v627_v41 = vpack.c.bf16 %v410_v35, %v409_v33  ;;  %v647_v42 = vpack.c.bf16 %v418_v36, %v417_v34 }
 0x101   : > { %v622_v43 = vpack.c.bf16 %v408_v39, %v407_v37  ;;  %v642_v44 = vpack.c.bf16 %v416_v40, %v415_v38  ;;  %v704_v45 = vpop.f32.mrb[4].mxu0  ;;  %v712_v46 = vpop.f32.mrb[4].mxu1 }
 0x102   : > { %659 = vst [vmem:[%s840_s13 + $0x8] sm:$0xff] %v627_v41   ;;  %663 = vst [vmem:[%s840_s13 + $0x28] sm:$0xff] %v647_v42   ;;  %v369_v47 = vadd.f32 %v704_v45, %v568_v16  ;;  %v401_v48 = vadd.f32 %v712_v46, %v568_v16  ;;  %v360_v49 = vpop.f32.mrb[5].mxu0  ;;  %v392_v50 = vpop.f32.mrb[5].mxu1 }
 0x103   : > { %623 = vst [vmem:[%s840_s13] sm:$0xff] %v622_v43   ;;  %662 = vst [vmem:[%s840_s13 + $0x20] sm:$0xff] %v642_v44   ;;  %v361_v51 = vadd.f32 %v568_v16, %v360_v49  ;;  %v393_v52 = vadd.f32 %v568_v16, %v392_v50  ;;  %v705_v53 = vpop.f32.mrb[6].mxu0  ;;  %v713_v54 = vpop.f32.mrb[6].mxu1 }
 0x104   : > { %v372_v55 = vadd.f32 %v705_v53, %v568_v16  ;;  %v404_v56 = vadd.f32 %v713_v54, %v568_v16  ;;  %v363_v57 = vpop.f32.mrb[7].mxu0  ;;  %v395_v58 = vpop.f32.mrb[7].mxu1  ;;  %v413_v61 = vmax.f32 %v369_v47, 0.0  ;;  %v421_v62 = vmax.f32 %v401_v48, 0.0 }
 0x105   : > { %v364_v59 = vadd.f32 %v568_v16, %v363_v57  ;;  %v396_v60 = vadd.f32 %v568_v16, %v395_v58  ;;  %v411_v1 = vmax.f32 %v361_v51, 0.0  ;;  %v419_v2 = vmax.f32 %v393_v52, 0.0 }
 0x106   : > { %v414_v63 = vmax.f32 %v372_v55, 0.0  ;;  %v422_v0 = vmax.f32 %v404_v56, 0.0 }
 0x107   : > { %v412_v3 = vmax.f32 %v364_v59, 0.0  ;;  %v420_v4 = vmax.f32 %v396_v60, 0.0 }
 0x108   : > { %v637_v5 = vpack.c.bf16 %v414_v63, %v413_v61  ;;  %v657_v6 = vpack.c.bf16 %v422_v0, %v421_v62 }
 0x109   : > { %v632_v7 = vpack.c.bf16 %v412_v3, %v411_v1  ;;  %v652_v8 = vpack.c.bf16 %v420_v4, %v419_v2 }
 0x10a   : > { %661 = vst [vmem:[%s840_s13 + $0x18] sm:$0xff] %v637_v5   ;;  %665 = vst [vmem:[%s840_s13 + $0x38] sm:$0xff] %v657_v6  }
 0x10b   : > { %660 = vst [vmem:[%s840_s13 + $0x10] sm:$0xff] %v632_v7   ;;  %664 = vst [vmem:[%s840_s13 + $0x30] sm:$0xff] %v652_v8  }
 0x10c PF: > { %s13_s12 = sadd.s32 1, %s760_s12  }
 0x10d   : > { %p10_p4 = scmp.ge.s32.totalorder %s13_s12, 6  }
 0x10f   :  { %12 = sbr.rel (!%p10_p4) target bundleno = 1 (0x1), region = 62 }

// kernel: _lambda_.23
= control target key start
LH: loop header
LB: loop body
LE: loop exit
PB: predicated region body
PF: predicated region fallthrough
CT: control target
= control target key end

     0   :  { %s1384_s21 = smov 0   ;;  %s1570_s0 = inlined_call_operand.vmem [shape: bf16[512,256], index: 0, kind: input, shape index: {}]   ;;  %s1571_s1 = inlined_call_operand.vmem [shape: bf16[256,128], index: 1, kind: input, shape index: {}]   ;;  %s1572_s2 = inlined_call_operand.vmem [shape: f32[1,128], index: 2, kind: input, shape index: {}, may-alias: {2,5}]   ;;  %s1573_s3 = inlined_call_operand.vmem [shape: bf16[512,128], index: 3, kind: input, shape index: {}]   ;;  %s1574_s4 = inlined_call_operand.vmem [shape: bf16[128,128], index: 4, kind: input, shape index: {}]   ;;  %s1575_s5 = inlined_call_operand.vmem [shape: f32[1,128], index: 5, kind: input, shape index: {}, may-alias: {2,5}]   ;;  %s1576_s6 = inlined_call_operand.vmem [shape: bf16[512,128], index: 6, kind: output, shape index: {}]  }
   0x1 LB: > { %s1021_s22 = sadd.s32 4294967295, %s1347_s21   ;;  %p1025_p0 = scmp.ge.s32.totalorder %s1347_s21, 1  ;;  %s1347_s21 = sphi %s1384_s21, %s16_s21  }
   0x2   : > { %p225_p1 = scmp.lt.s32.totalorder %s1347_s21, 5 }
   0x4   : > { %p226_p2 = pnand %p1025_p0, %p225_p1 }
   0x5   : > { %v1285_v0 = vld [vmem:[%s1571_s1 + $0x40] sm:$0xff] (!%p226_p2)   ;;  %v1288_v3 = vld [vmem:[%s1571_s1 + $0x48] sm:$0xff] (!%p226_p2)   ;;  %v1291_v6 = vld [vmem:[%s1571_s1 + $0x50] sm:$0xff] (!%p226_p2)   ;;  %s1026_s17 = sshll.u32 (!%p226_p2), %s1021_s22, 4 }
   0x6   : > { %229 = sbr.rel (%p226_p2) target bundleno = 320 (0x140), region = 44  ;;  %v1286_v1 = vld [vmem:[%s1571_s1] sm:$0xff] (!%p226_p2)   ;;  %1165 = vmatprep.subr.bf16.mxu0 (!%p226_p2), %v1285_v0  ;;  %v1289_v4 = vld [vmem:[%s1571_s1 + $0x8] sm:$0xff] (!%p226_p2)   ;;  %v1292_v7 = vld [vmem:[%s1571_s1 + $0x10] sm:$0xff] (!%p226_p2)   ;;  %p262_p3 = scmp.lt.s32.totalorder (!%p226_p2), %s1026_s17, 63 }
   0x7   : > { %v1287_v2 = vld [vmem:[%s1574_s4] sm:$0xff] (!%p226_p2)   ;;  %1166 = vmatpush3.bf16.msra.mxu0 (!%p226_p2), %v1286_v1  ;;  %v1290_v5 = vld [vmem:[%s1574_s4 + $0x8] sm:$0xff] (!%p226_p2)   ;;  %v1293_v8 = vld [vmem:[%s1574_s4 + $0x10] sm:$0xff] (!%p226_p2)  }
   0x8   : > { %1245 = vmatprep.subr.bf16.mxu1 (!%p226_p2), %v1287_v2  ;;  %1167 = vmatprep.subr.bf16.mxu0 (!%p226_p2), %v1288_v3  ;;  %v1294_v9 = vld [vmem:[%s1571_s1 + $0x58] sm:$0xff] (!%p226_p2)   ;;  %v1297_v12 = vld [vmem:[%s1571_s1 + $0x60] sm:$0xff] (!%p226_p2)   ;;  %v1300_v15 = vld [vmem:[%s1571_s1 + $0x68] sm:$0xff] (!%p226_p2)  }
   0x9   : > { %1246 = vmatpush3.bf16.msra.mxu1 (!%p226_p2), %v1287_v2  ;;  %v1295_v10 = vld [vmem:[%s1571_s1 + $0x18] sm:$0xff] (!%p226_p2)   ;;  %v1299_v13 = vld [vmem:[%s1574_s4 + $0x20] sm:$0xff] (!%p226_p2)   ;;  %v1302_v16 = vld [vmem:[%s1574_s4 + $0x28] sm:$0xff] (!%p226_p2)  }
   0xa   : > { %1247 = vmatprep.subr.bf16.mxu1 (!%p226_p2), %v1290_v5  ;;  %v1296_v11 = vld [vmem:[%s1574_s4 + $0x18] sm:$0xff] (!%p226_p2)   ;;  %v1298_v14 = vld [vmem:[%s1571_s1 + $0x20] sm:$0xff] (!%p226_p2)   ;;  %v1301_v17 = vld [vmem:[%s1571_s1 + $0x28] sm:$0xff] (!%p226_p2)  }
   0xb   : > { %1168 = vmatpush3.bf16.msra.mxu0 (!%p226_p2), %v1289_v4  ;;  %v1303_v18 = vld [vmem:[%s1571_s1 + $0x70] sm:$0xff] (!%p226_p2)   ;;  %v1306_v21 = vld [vmem:[%s1571_s1 + $0x78] sm:$0xff] (!%p226_p2)   ;;  %v1507_v49 = vld [vmem:[%s1572_s2] ss:$0 sm:$0xff] (!%p226_p2) }
   0xc   : > { %1169 = vmatprep.subr.bf16.mxu0 (!%p226_p2), %v1291_v6  ;;  %v1304_v19 = vld [vmem:[%s1571_s1 + $0x30] sm:$0xff] (!%p226_p2)   ;;  %v1308_v22 = vld [vmem:[%s1574_s4 + $0x38] sm:$0xff] (!%p226_p2)   ;;  %v1512_v51 = vld [vmem:[%s1575_s5] ss:$0 sm:$0xff] (!%p226_p2) }
   0xd   : > { %1248 = vmatpush3.bf16.msra.mxu1 %v1290_v5  ;;  %s1578_s17 = smov (!%p262_p3, %s1026_s17), 63  ;;  %v1305_v20 = vld [vmem:[%s1574_s4 + $0x30] sm:$0xff]   ;;  %v1307_v25 = vld [vmem:[%s1571_s1 + $0x38] sm:$0xff]  }
   0xe   : > { %1249 = vmatprep.subr.bf16.mxu1 %v1293_v8  ;;  %s1101_s13 = sshll.u32 %s1578_s17, 3  ;;  %s1030_s16 = sshll.u32 %s1578_s17, 2 }
   0xf   : > { %1170 = vmatpush3.bf16.msra.mxu0 %v1292_v7  ;;  %s1462_s26 = scalar_lea.vmem %s1570_s0, %s1101_s13  ;;  %s1472_s30 = scalar_lea.vmem %s1573_s3, %s1030_s16 }
  0x10   : > { %1171 = vmatprep.subr.bf16.mxu0 %v1294_v9  ;;  %v1311_v23 = vld [vmem:[%s1462_s26 + $0x4] ss:$8 sps:$4 sm:$0xff]   ;;  %v1309_v26 = vld [vmem:[%s1462_s26] ss:$8 sps:$4 sm:$0xff]   ;;  %v1314_v27 = vld [vmem:[%s1462_s26 + $0x14] ss:$8 sps:$4 sm:$0xff]   ;;  %s1524_s19 = scalar_lea.vmem %s1576_s6, %s1030_s16 }
  0x11   : > { %1250 = vmatpush3.bf16.msra.mxu1 %v1293_v8  ;;  %v1312_v24 = vld [vmem:[%s1472_s30] sm:$0xff]   ;;  %544 = vmatprep.mubr.bf16.mxu0 %v1311_v23  ;;  %v1313_v28 = vld [vmem:[%s1472_s30 + $0x8] sm:$0xff]   ;;  %v1320_v29 = vld [vmem:[%s1472_s30 + $0x10] sm:$0xff]  }
  0x12   : > { %1251 = vmatprep.subr.bf16.mxu1 %v1296_v11  ;;  %1261 = vmatprep.mubr.bf16.mxu1 %v1312_v24  ;;  %v1316_v30 = vld [vmem:[%s1462_s26 + $0x10] ss:$8 sps:$4 sm:$0xff]   ;;  %v1317_v31 = vld [vmem:[%s1462_s26 + $0x24] ss:$8 sps:$4 sm:$0xff]   ;;  %v1319_v34 = vld [vmem:[%s1462_s26 + $0x20] ss:$8 sps:$4 sm:$0xff]  }
  0x13   : > { %1172 = vmatpush3.bf16.msra.mxu0 %v1295_v10  ;;  %v1321_v32 = vld [vmem:[%s1472_s30 + $0x18] sm:$0xff]   ;;  %v1328_v33 = vld [vmem:[%s1472_s30 + $0x20] sm:$0xff]   ;;  %v1329_v36 = vld [vmem:[%s1472_s30 + $0x28] sm:$0xff]  }
  0x14   : > { %1173 = vmatprep.subr.bf16.mxu0 %v1297_v12  ;;  %v1322_v35 = vld [vmem:[%s1462_s26 + $0x34] ss:$8 sps:$4 sm:$0xff]   ;;  %v1324_v38 = vld [vmem:[%s1462_s26 + $0x30] ss:$8 sps:$4 sm:$0xff]   ;;  %v1325_v39 = vld [vmem:[%s1462_s26 + $0x44] ss:$8 sps:$4 sm:$0xff]  }
  0x15   : > { %1252 = vmatpush3.bf16.msra.mxu1 %v1296_v11  ;;  %v1336_v37 = vld [vmem:[%s1472_s30 + $0x30] sm:$0xff]   ;;  %v1337_v40 = vld [vmem:[%s1472_s30 + $0x38] sm:$0xff]   ;;  %v1327_v41 = vld [vmem:[%s1462_s26 + $0x40] ss:$8 sps:$4 sm:$0xff]  }
  0x16   : > { %1253 = vmatprep.subr.bf16.mxu1 %v1299_v13  ;;  %v1330_v42 = vld [vmem:[%s1462_s26 + $0x54] ss:$8 sps:$4 sm:$0xff]   ;;  %v1332_v43 = vld [vmem:[%s1462_s26 + $0x50] ss:$8 sps:$4 sm:$0xff]   ;;  %v1333_v44 = vld [vmem:[%s1462_s26 + $0x64] ss:$8 sps:$4 sm:$0xff]  }
  0x17   : > { %1174 = vmatpush3.bf16.msra.mxu0 %v1298_v14  ;;  %v1335_v45 = vld [vmem:[%s1462_s26 + $0x60] ss:$8 sps:$4 sm:$0xff]   ;;  %v1338_v46 = vld [vmem:[%s1462_s26 + $0x74] ss:$8 sps:$4 sm:$0xff]   ;;  %v1340_v47 = vld [vmem:[%s1462_s26 + $0x70] ss:$8 sps:$4 sm:$0xff]  }
  0x18   : > { %1175 = vmatprep.subr.bf16.mxu0 %v1300_v15 }
  0x19   : > { %1254 = vmatpush3.bf16.msra.mxu1 %v1299_v13 }
  0x1a   : > { %1255 = vmatprep.subr.bf16.mxu1 %v1302_v16 }
  0x1b   : > { %1176 = vmatpush3.bf16.msra.mxu0 %v1301_v17 }
  0x1c   : > { %1177 = vmatprep.subr.bf16.mxu0 %v1303_v18 }
  0x1d   : > { %1256 = vmatpush3.bf16.msra.mxu1 %v1302_v16 }
  0x1e   : > { %1257 = vmatprep.subr.bf16.mxu1 %v1305_v20 }
  0x1f   : > { %1178 = vmatpush3.bf16.msra.mxu0 %v1304_v19 }
  0x20   : > { %1179 = vmatprep.subr.bf16.mxu0 %v1306_v21 }
  0x21   : > { %1258 = vmatpush3.bf16.msra.mxu1 %v1305_v20 }
  0x22   : > { %1259 = vmatprep.subr.bf16.mxu1 %v1308_v22 }
  0x23   : > { %1180 = vmatpush3.bf16.msra.mxu0 %v1307_v25 }
  0x25   : > { %1260 = vmatpush3.bf16.msra.mxu1 %v1308_v22 }
  0x26   : > { %545 = vmatmul.mubr.bf16.vlgmr.msra.gmra.mrb[0].mxu0 %v1309_v26 }
  0x27   : > { %552 = vmatprep.mubr.bf16.mxu0 %v1314_v27 }
  0x28   : > { %1262 = vmatmul.mubr.bf16.vlgmr.msra.gmra.mrb[0].mxu1 %v1313_v28 }
  0x29   : > { %1265 = vmatprep.mubr.bf16.mxu1 %v1320_v29 }
  0x2e   : > { %553 = vmatmul.mubr.bf16.gmra.mrb[4].mxu0 %v1316_v30 }
  0x2f   : > { %560 = vmatprep.mubr.bf16.mxu0 %v1317_v31 }
  0x30   : > { %1266 = vmatmul.mubr.bf16.gmra.mrb[4].mxu1 %v1321_v32 }
  0x31   : > { %1269 = vmatprep.mubr.bf16.mxu1 %v1328_v33 }
  0x36   : > { %561 = vmatmul.mubr.bf16.gmra.mrb[8].mxu0 %v1319_v34 }
  0x37   : > { %568 = vmatprep.mubr.bf16.mxu0 %v1322_v35 }
  0x38   : > { %1270 = vmatmul.mubr.bf16.gmra.mrb[8].mxu1 %v1329_v36 }
  0x39   : > { %1273 = vmatprep.mubr.bf16.mxu1 %v1336_v37 }
  0x3e   : > { %569 = vmatmul.mubr.bf16.gmra.mrb[12].mxu0 %v1324_v38 }
  0x3f   : > { %576 = vmatprep.mubr.bf16.mxu0 %v1325_v39 }
  0x40   : > { %1274 = vmatmul.mubr.bf16.gmra.mrb[12].mxu1 %v1337_v40 }
  0x46   : > { %577 = vmatmul.mubr.bf16.gmra.mrb[16].mxu0 %v1327_v41 }
  0x47   : > { %584 = vmatprep.mubr.bf16.mxu0 %v1330_v42 }
  0x4e   : > { %585 = vmatmul.mubr.bf16.gmra.mrb[20].mxu0 %v1332_v43 }
  0x4f   : > { %592 = vmatprep.mubr.bf16.mxu0 %v1333_v44 }
  0x56   : > { %593 = vmatmul.mubr.bf16.gmra.mrb[24].mxu0 %v1335_v45 }
  0x57   : > { %600 = vmatprep.mubr.bf16.mxu0 %v1338_v46 }
  0x5e   : > { %601 = vmatmul.mubr.bf16.gmra.mrb[28].mxu0 %v1340_v47 }
  0xf9   : > { %v1181_v48 = vpop.f32.mrb[0].mxu0 }
  0xfa   : > { %v1182_v50 = vpop.f32.mrb[1].mxu0 }
  0xfb   : > { %v1183_v52 = vadd.f32 %v1182_v50, %v1181_v48  ;;  %v1184_v53 = vpop.f32.mrb[2].mxu0  ;;  %v1263_v54 = vpop.f32.mrb[0].mxu1 }
  0xfc   : > { %v1185_v55 = vpop.f32.mrb[3].mxu0  ;;  %v778_v56 = vpop.f32.mrb[1].mxu1  ;;  %v787_v4 = vadd.f32 %v1263_v54, %v1512_v51 }
  0xfd   : > { %v547_v57 = vadd.f32 %v1183_v52, %v1507_v49  ;;  %v1186_v58 = vadd.f32 %v1185_v55, %v1184_v53  ;;  %v779_v59 = vadd.f32 %v1512_v51, %v778_v56  ;;  %v1264_v60 = vpop.f32.mrb[2].mxu1 }
  0xfe   : > { %v781_v61 = vpop.f32.mrb[3].mxu1  ;;  %v790_v12 = vadd.f32 %v1264_v60, %v1512_v51 }
  0xff   : > { %v550_v62 = vadd.f32 %v1186_v58, %v1507_v49  ;;  %v841_v63 = vadd.f32 %v779_v59, %v547_v57  ;;  %v782_v0 = vadd.f32 %v1512_v51, %v781_v61 }
 0x101   : > { %v842_v1 = vadd.f32 %v782_v0, %v550_v62  ;;  %v1187_v2 = vpop.f32.mrb[4].mxu0  ;;  %v857_v5 = vmax.f32 %v841_v63, 0.0 }
 0x102   : > { %v1188_v3 = vpop.f32.mrb[5].mxu0 }
 0x103   : > { %v858_v6 = vmax.f32 %v842_v1, 0.0  ;;  %v1189_v7 = vadd.f32 %v1188_v3, %v1187_v2  ;;  %v1190_v8 = vpop.f32.mrb[6].mxu0  ;;  %v1267_v9 = vpop.f32.mrb[4].mxu1 }
 0x104   : > { %v1191_v10 = vpop.f32.mrb[7].mxu0  ;;  %v794_v11 = vpop.f32.mrb[5].mxu1  ;;  %v803_v42 = vadd.f32 %v1267_v9, %v1512_v51 }
 0x105   : > { %v1121_v13 = vpack.c.bf16 %v858_v6, %v857_v5  ;;  %v555_v14 = vadd.f32 %v1189_v7, %v1507_v49  ;;  %v1192_v15 = vadd.f32 %v1191_v10, %v1190_v8  ;;  %v1268_v16 = vpop.f32.mrb[6].mxu1  ;;  %v795_v27 = vadd.f32 %v1512_v51, %v794_v11 }
 0x106   : > { %v797_v17 = vpop.f32.mrb[7].mxu1  ;;  %v806_v52 = vadd.f32 %v1268_v16, %v1512_v51 }
 0x107   : > { %1122 = vst [vmem:[%s1524_s19] sm:$0xff] %v1121_v13   ;;  %v843_v18 = vadd.f32 %v787_v4, %v555_v14  ;;  %v558_v19 = vadd.f32 %v1192_v15, %v1507_v49  ;;  %v798_v34 = vadd.f32 %v1512_v51, %v797_v17 }
 0x109   : > { %v844_v20 = vadd.f32 %v790_v12, %v558_v19  ;;  %v1193_v21 = vpop.f32.mrb[8].mxu0  ;;  %v859_v23 = vmax.f32 %v843_v18, 0.0 }
 0x10a   : > { %v1194_v22 = vpop.f32.mrb[9].mxu0 }
 0x10b   : > { %v860_v24 = vmax.f32 %v844_v20, 0.0  ;;  %v1195_v25 = vadd.f32 %v1194_v22, %v1193_v21  ;;  %v1196_v26 = vpop.f32.mrb[10].mxu0  ;;  %v1271_v28 = vpop.f32.mrb[8].mxu1 }
 0x10c   : > { %v1197_v29 = vpop.f32.mrb[11].mxu0  ;;  %v810_v30 = vpop.f32.mrb[9].mxu1  ;;  %v819_v14 = vadd.f32 %v1271_v28, %v1512_v51 }
 0x10d   : > { %v1126_v31 = vpack.c.bf16 %v860_v24, %v859_v23  ;;  %v563_v32 = vadd.f32 %v1195_v25, %v1507_v49  ;;  %v1198_v33 = vadd.f32 %v1197_v29, %v1196_v26  ;;  %v1272_v35 = vpop.f32.mrb[10].mxu1  ;;  %v811_v3 = vadd.f32 %v1512_v51, %v810_v30 }
 0x10e   : > { %v813_v36 = vpop.f32.mrb[11].mxu1  ;;  %v822_v20 = vadd.f32 %v1272_v35, %v1512_v51 }
 0x10f   : > { %1158 = vst [vmem:[%s1524_s19 + $0x8] sm:$0xff] %v1126_v31   ;;  %v566_v37 = vadd.f32 %v1198_v33, %v1507_v49  ;;  %v845_v38 = vadd.f32 %v795_v27, %v563_v32  ;;  %v814_v8 = vadd.f32 %v1512_v51, %v813_v36 }
 0x111   : > { %v846_v39 = vadd.f32 %v798_v34, %v566_v37  ;;  %v1199_v40 = vpop.f32.mrb[12].mxu0  ;;  %v861_v43 = vmax.f32 %v845_v38, 0.0 }
 0x112   : > { %v1200_v41 = vpop.f32.mrb[13].mxu0 }
 0x113   : > { %v862_v44 = vmax.f32 %v846_v39, 0.0  ;;  %v1201_v45 = vadd.f32 %v1200_v41, %v1199_v40  ;;  %v1202_v46 = vpop.f32.mrb[14].mxu0  ;;  %v1536_v47 = vpop.f32.mrb[12].mxu1 }
 0x114   : > { %v1203_v48 = vpop.f32.mrb[15].mxu0  ;;  %v826_v50 = vpop.f32.mrb[13].mxu1 }
 0x115   : > { %v1131_v53 = vpack.c.bf16 %v862_v44, %v861_v43  ;;  %v571_v54 = vadd.f32 %v1201_v45, %v1507_v49  ;;  %v1204_v55 = vadd.f32 %v1203_v48, %v1202_v46  ;;  %v1540_v56 = vpop.f32.mrb[14].mxu1  ;;  %v827_v33 = vadd.f32 %v1512_v51, %v826_v50 }
 0x116   : > { %v829_v57 = vpop.f32.mrb[15].mxu1  ;;  %v835_v44 = vadd.f32 %v1536_v47, %v1512_v51 }
 0x117   : > { %1159 = vst [vmem:[%s1524_s19 + $0x10] sm:$0xff] %v1131_v53   ;;  %v847_v58 = vadd.f32 %v803_v42, %v571_v54  ;;  %v574_v59 = vadd.f32 %v1204_v55, %v1507_v49  ;;  %v830_v38 = vadd.f32 %v1512_v51, %v829_v57  ;;  %v838_v57 = vadd.f32 %v1540_v56, %v1512_v51 }
 0x119   : > { %v848_v60 = vadd.f32 %v806_v52, %v574_v59  ;;  %v1205_v61 = vpop.f32.mrb[16].mxu0  ;;  %v863_v63 = vmax.f32 %v847_v58, 0.0 }
 0x11a   : > { %v1206_v62 = vpop.f32.mrb[17].mxu0 }
 0x11b   : > { %v864_v0 = vmax.f32 %v848_v60, 0.0  ;;  %v1207_v1 = vadd.f32 %v1206_v62, %v1205_v61  ;;  %v1208_v2 = vpop.f32.mrb[18].mxu0 }
 0x11c   : > { %v1209_v4 = vpop.f32.mrb[19].mxu0 }
 0x11d   : > { %v1136_v5 = vpack.c.bf16 %v864_v0, %v863_v63  ;;  %v579_v6 = vadd.f32 %v1207_v1, %v1507_v49  ;;  %v1210_v7 = vadd.f32 %v1209_v4, %v1208_v2 }
 0x11f   : > { %1160 = vst [vmem:[%s1524_s19 + $0x18] sm:$0xff] %v1136_v5   ;;  %v582_v9 = vadd.f32 %v1210_v7, %v1507_v49  ;;  %v849_v10 = vadd.f32 %v811_v3, %v579_v6 }
 0x121   : > { %v850_v11 = vadd.f32 %v814_v8, %v582_v9  ;;  %v1211_v12 = vpop.f32.mrb[20].mxu0  ;;  %v865_v15 = vmax.f32 %v849_v10, 0.0 }
 0x122   : > { %v1212_v13 = vpop.f32.mrb[21].mxu0 }
 0x123   : > { %v866_v16 = vmax.f32 %v850_v11, 0.0  ;;  %v1213_v17 = vadd.f32 %v1212_v13, %v1211_v12  ;;  %v1214_v18 = vpop.f32.mrb[22].mxu0 }
 0x124   : > { %v1215_v19 = vpop.f32.mrb[23].mxu0 }
 0x125   : > { %v1141_v21 = vpack.c.bf16 %v866_v16, %v865_v15  ;;  %v587_v22 = vadd.f32 %v1213_v17, %v1507_v49  ;;  %v1216_v23 = vadd.f32 %v1215_v19, %v1214_v18 }
 0x127   : > { %1161 = vst [vmem:[%s1524_s19 + $0x20] sm:$0xff] %v1141_v21   ;;  %v851_v24 = vadd.f32 %v819_v14, %v587_v22  ;;  %v590_v25 = vadd.f32 %v1216_v23, %v1507_v49 }
 0x129   : > { %v852_v26 = vadd.f32 %v822_v20, %v590_v25  ;;  %v1217_v27 = vpop.f32.mrb[24].mxu0  ;;  %v867_v28 = vmax.f32 %v851_v24, 0.0 }
 0x12a   : > { %v1218_v29 = vpop.f32.mrb[25].mxu0 }
 0x12b   : > { %v868_v30 = vmax.f32 %v852_v26, 0.0  ;;  %v1219_v31 = vadd.f32 %v1218_v29, %v1217_v27  ;;  %v1220_v32 = vpop.f32.mrb[26].mxu0 }
 0x12c   : > { %v1221_v34 = vpop.f32.mrb[27].mxu0 }
 0x12d   : > { %v1146_v35 = vpack.c.bf16 %v868_v30, %v867_v28  ;;  %v595_v36 = vadd.f32 %v1219_v31, %v1507_v49  ;;  %v1222_v37 = vadd.f32 %v1221_v34, %v1220_v32 }
 0x12f   : > { %1162 = vst [vmem:[%s1524_s19 + $0x28] sm:$0xff] %v1146_v35   ;;  %v598_v39 = vadd.f32 %v1222_v37, %v1507_v49  ;;  %v853_v40 = vadd.f32 %v827_v33, %v595_v36 }
 0x131   : > { %v854_v41 = vadd.f32 %v830_v38, %v598_v39  ;;  %v1223_v42 = vpop.f32.mrb[28].mxu0  ;;  %v869_v45 = vmax.f32 %v853_v40, 0.0 }
 0x132   : > { %v1224_v43 = vpop.f32.mrb[29].mxu0 }
 0x133   : > { %v870_v46 = vmax.f32 %v854_v41, 0.0  ;;  %v1225_v48 = vadd.f32 %v1224_v43, %v1223_v42  ;;  %v1226_v50 = vpop.f32.mrb[30].mxu0 }
 0x134   : > { %v1227_v52 = vpop.f32.mrb[31].mxu0 }
 0x135   : > { %v1151_v53 = vpack.c.bf16 %v870_v46, %v869_v45  ;;  %v603_v54 = vadd.f32 %v1225_v48, %v1507_v49  ;;  %v1228_v55 = vadd.f32 %v1227_v52, %v1226_v50 }
 0x137   : > { %1163 = vst [vmem:[%s1524_s19 + $0x30] sm:$0xff] %v1151_v53   ;;  %v855_v58 = vadd.f32 %v835_v44, %v603_v54  ;;  %v606_v59 = vadd.f32 %v1228_v55, %v1507_v49 }
 0x139   : > { %v856_v60 = vadd.f32 %v838_v57, %v606_v59  ;;  %v871_v61 = vmax.f32 %v855_v58, 0.0 }
 0x13b   : > { %v872_v47 = vmax.f32 %v856_v60, 0.0 }
 0x13d   : > { %v1156_v62 = vpack.c.bf16 %v872_v47, %v871_v61 }
 0x13f   : > { %1164 = vst [vmem:[%s1524_s19 + $0x38] sm:$0xff] %v1156_v62  }
 0x140 PF: > { %s16_s21 = sadd.s32 1, %s1347_s21  }
 0x141   : > { %p13_p4 = scmp.ge.s32.totalorder %s16_s21, 6  }
 0x143   :  { %15 = sbr.rel (!%p13_p4) target bundleno = 1 (0x1), region = 77 }

// kernel: _lambda_.24
= control target key start
LH: loop header
LB: loop body
LE: loop exit
PB: predicated region body
PF: predicated region fallthrough
CT: control target
= control target key end

     0   :  { %s939_s12 = smov 0   ;;  %s1057_s0 = inlined_call_operand.vmem [shape: bf16[512,256], index: 0, kind: input, shape index: {}]   ;;  %s1058_s1 = inlined_call_operand.vmem [shape: bf16[256,128], index: 1, kind: input, shape index: {}]   ;;  %s1059_s2 = inlined_call_operand.vmem [shape: f32[1,128], index: 2, kind: input, shape index: {}]   ;;  %s1060_s3 = inlined_call_operand.vmem [shape: bf16[512,128], index: 3, kind: output, shape index: {}]  }
   0x1 LB: > { %s658_s13 = sadd.s32 4294967295, %s917_s12   ;;  %p662_p0 = scmp.ge.s32.totalorder %s917_s12, 1  ;;  %s917_s12 = sphi %s939_s12, %s13_s12  }
   0x2   : > { %p139_p1 = scmp.lt.s32.totalorder %s917_s12, 5 }
   0x4   : > { %p140_p2 = pnand %p662_p0, %p139_p1 }
   0x5   : > { %v871_v0 = vld [vmem:[%s1058_s1 + $0x40] sm:$0xff] (!%p140_p2)   ;;  %s663_s16 = sshll.u32 (!%p140_p2), %s658_s13, 4  ;;  %v873_v2 = vld [vmem:[%s1058_s1 + $0x48] sm:$0xff] (!%p140_p2)   ;;  %v875_v4 = vld [vmem:[%s1058_s1 + $0x50] sm:$0xff] (!%p140_p2)  }
   0x6   : > { %143 = sbr.rel (%p140_p2) target bundleno = 287 (0x11f), region = 32  ;;  %v872_v1 = vld [vmem:[%s1058_s1] sm:$0xff] (!%p140_p2)   ;;  %783 = vmatprep.subr.bf16.mxu0 (!%p140_p2), %v871_v0  ;;  %847 = vmatprep.subr.bf16.mxu1 (!%p140_p2), %v871_v0  ;;  %v874_v3 = vld [vmem:[%s1058_s1 + $0x8] sm:$0xff] (!%p140_p2)   ;;  %p165_p3 = scmp.lt.s32.totalorder (!%p140_p2), %s663_s16, 63  ;;  %v876_v5 = vld [vmem:[%s1058_s1 + $0x10] sm:$0xff] (!%p140_p2)  }
   0x7   : > { %784 = vmatpush3.bf16.msra.mxu0 (!%p140_p2), %v872_v1  ;;  %855 = vmatpush3.bf16.msra.mxu1 (!%p140_p2), %v872_v1  ;;  %v877_v6 = vld [vmem:[%s1058_s1 + $0x58] sm:$0xff] (!%p140_p2)   ;;  %v879_v8 = vld [vmem:[%s1058_s1 + $0x60] sm:$0xff] (!%p140_p2)   ;;  %v881_v10 = vld [vmem:[%s1058_s1 + $0x68] sm:$0xff] (!%p140_p2)  }
   0x8   : > { %785 = vmatprep.subr.bf16.mxu0 (!%p140_p2), %v873_v2  ;;  %848 = vmatprep.subr.bf16.mxu1 (!%p140_p2), %v873_v2  ;;  %v878_v7 = vld [vmem:[%s1058_s1 + $0x18] sm:$0xff] (!%p140_p2)   ;;  %v880_v9 = vld [vmem:[%s1058_s1 + $0x20] sm:$0xff] (!%p140_p2)   ;;  %v882_v13 = vld [vmem:[%s1058_s1 + $0x28] sm:$0xff] (!%p140_p2)  }
   0x9   : > { %v883_v14 = vld [vmem:[%s1058_s1 + $0x70] sm:$0xff] (!%p140_p2)   ;;  %v885_v16 = vld [vmem:[%s1058_s1 + $0x78] sm:$0xff] (!%p140_p2)   ;;  %v1022_v34 = vld [vmem:[%s1059_s2] ss:$0 sm:$0xff] (!%p140_p2) }
   0xa   : > { %v884_v15 = vld [vmem:[%s1058_s1 + $0x30] sm:$0xff] (!%p140_p2)   ;;  %v886_v17 = vld [vmem:[%s1058_s1 + $0x38] sm:$0xff] (!%p140_p2)  }
   0xb   : > { %786 = vmatpush3.bf16.msra.mxu0 (!%p140_p2), %v874_v3  ;;  %856 = vmatpush3.bf16.msra.mxu1 (!%p140_p2), %v874_v3 }
   0xc   : > { %787 = vmatprep.subr.bf16.mxu0 (!%p140_p2), %v875_v4  ;;  %849 = vmatprep.subr.bf16.mxu1 (!%p140_p2), %v875_v4 }
   0xd   : > { %s1062_s16 = smov (!%p165_p3, %s663_s16), 63 }
   0xe   : > { %s719_s4 = sshll.u32 %s1062_s16, 3  ;;  %s667_s28 = sshll.u32 %s1062_s16, 2 }
   0xf   : > { %788 = vmatpush3.bf16.msra.mxu0 %v876_v5  ;;  %857 = vmatpush3.bf16.msra.mxu1 %v876_v5  ;;  %s980_s9 = scalar_lea.vmem %s1057_s0, %s719_s4  ;;  %s1032_s4 = scalar_lea.vmem %s1060_s3, %s667_s28 }
  0x10   : > { %789 = vmatprep.subr.bf16.mxu0 %v877_v6  ;;  %850 = vmatprep.subr.bf16.mxu1 %v877_v6  ;;  %v889_v11 = vld [vmem:[%s980_s9 + $0x4] ss:$8 sps:$4 sm:$0xff]   ;;  %v887_v18 = vld [vmem:[%s980_s9] ss:$8 sps:$4 sm:$0xff]   ;;  %v893_v20 = vld [vmem:[%s980_s9 + $0x14] ss:$8 sps:$4 sm:$0xff]  }
  0x11   : > { %v892_v12 = vld [vmem:[%s980_s9 + $0x44] ss:$8 sps:$4 sm:$0xff]   ;;  %441 = vmatprep.mubr.bf16.mxu0 %v889_v11  ;;  %v890_v19 = vld [vmem:[%s980_s9 + $0x40] ss:$8 sps:$4 sm:$0xff]   ;;  %v895_v21 = vld [vmem:[%s980_s9 + $0x54] ss:$8 sps:$4 sm:$0xff]  }
  0x12   : > { %473 = vmatprep.mubr.bf16.mxu1 %v892_v12  ;;  %v897_v22 = vld [vmem:[%s980_s9 + $0x10] ss:$8 sps:$4 sm:$0xff]   ;;  %v899_v24 = vld [vmem:[%s980_s9 + $0x24] ss:$8 sps:$4 sm:$0xff]   ;;  %v903_v26 = vld [vmem:[%s980_s9 + $0x20] ss:$8 sps:$4 sm:$0xff]  }
  0x13   : > { %790 = vmatpush3.bf16.msra.mxu0 %v878_v7  ;;  %858 = vmatpush3.bf16.msra.mxu1 %v878_v7  ;;  %v898_v23 = vld [vmem:[%s980_s9 + $0x50] ss:$8 sps:$4 sm:$0xff]   ;;  %v901_v25 = vld [vmem:[%s980_s9 + $0x64] ss:$8 sps:$4 sm:$0xff]   ;;  %v904_v27 = vld [vmem:[%s980_s9 + $0x60] ss:$8 sps:$4 sm:$0xff]  }
  0x14   : > { %791 = vmatprep.subr.bf16.mxu0 %v879_v8  ;;  %851 = vmatprep.subr.bf16.mxu1 %v879_v8  ;;  %v905_v28 = vld [vmem:[%s980_s9 + $0x34] ss:$8 sps:$4 sm:$0xff]   ;;  %v909_v30 = vld [vmem:[%s980_s9 + $0x30] ss:$8 sps:$4 sm:$0xff]  }
  0x15   : > { %v907_v29 = vld [vmem:[%s980_s9 + $0x74] ss:$8 sps:$4 sm:$0xff]   ;;  %v910_v31 = vld [vmem:[%s980_s9 + $0x70] ss:$8 sps:$4 sm:$0xff]  }
  0x17   : > { %792 = vmatpush3.bf16.msra.mxu0 %v880_v9  ;;  %859 = vmatpush3.bf16.msra.mxu1 %v880_v9 }
  0x18   : > { %793 = vmatprep.subr.bf16.mxu0 %v881_v10  ;;  %852 = vmatprep.subr.bf16.mxu1 %v881_v10 }
  0x1b   : > { %794 = vmatpush3.bf16.msra.mxu0 %v882_v13  ;;  %860 = vmatpush3.bf16.msra.mxu1 %v882_v13 }
  0x1c   : > { %795 = vmatprep.subr.bf16.mxu0 %v883_v14  ;;  %853 = vmatprep.subr.bf16.mxu1 %v883_v14 }
  0x1f   : > { %796 = vmatpush3.bf16.msra.mxu0 %v884_v15  ;;  %861 = vmatpush3.bf16.msra.mxu1 %v884_v15 }
  0x20   : > { %797 = vmatprep.subr.bf16.mxu0 %v885_v16  ;;  %854 = vmatprep.subr.bf16.mxu1 %v885_v16 }
  0x23   : > { %798 = vmatpush3.bf16.msra.mxu0 %v886_v17  ;;  %862 = vmatpush3.bf16.msra.mxu1 %v886_v17 }
  0x26   : > { %442 = vmatmul.mubr.bf16.vlgmr.msra.gmra.mrb[0].mxu0 %v887_v18  ;;  %474 = vmatmul.mubr.bf16.vlgmr.msra.gmra.mrb[0].mxu1 %v890_v19 }
  0x27   : > { %449 = vmatprep.mubr.bf16.mxu0 %v893_v20  ;;  %481 = vmatprep.mubr.bf16.mxu1 %v895_v21 }
  0x2e   : > { %450 = vmatmul.mubr.bf16.gmra.mrb[4].mxu0 %v897_v22  ;;  %482 = vmatmul.mubr.bf16.gmra.mrb[4].mxu1 %v898_v23 }
  0x2f   : > { %457 = vmatprep.mubr.bf16.mxu0 %v899_v24  ;;  %489 = vmatprep.mubr.bf16.mxu1 %v901_v25 }
  0x36   : > { %458 = vmatmul.mubr.bf16.gmra.mrb[8].mxu0 %v903_v26  ;;  %490 = vmatmul.mubr.bf16.gmra.mrb[8].mxu1 %v904_v27 }
  0x37   : > { %465 = vmatprep.mubr.bf16.mxu0 %v905_v28  ;;  %497 = vmatprep.mubr.bf16.mxu1 %v907_v29 }
  0x3e   : > { %466 = vmatmul.mubr.bf16.gmra.mrb[12].mxu0 %v909_v30  ;;  %498 = vmatmul.mubr.bf16.gmra.mrb[12].mxu1 %v910_v31 }
  0xf9   : > { %v799_v32 = vpop.f32.mrb[0].mxu0  ;;  %v823_v33 = vpop.f32.mrb[0].mxu1 }
  0xfa   : > { %v800_v35 = vpop.f32.mrb[1].mxu0  ;;  %v824_v36 = vpop.f32.mrb[1].mxu1 }
  0xfb   : > { %v801_v37 = vadd.f32 %v800_v35, %v799_v32  ;;  %v825_v38 = vadd.f32 %v824_v36, %v823_v33  ;;  %v802_v39 = vpop.f32.mrb[2].mxu0  ;;  %v826_v40 = vpop.f32.mrb[2].mxu1 }
  0xfc   : > { %v803_v41 = vpop.f32.mrb[3].mxu0  ;;  %v827_v42 = vpop.f32.mrb[3].mxu1 }
  0xfd   : > { %v444_v43 = vadd.f32 %v801_v37, %v1022_v34  ;;  %v476_v44 = vadd.f32 %v825_v38, %v1022_v34  ;;  %v804_v45 = vadd.f32 %v803_v41, %v802_v39  ;;  %v828_v46 = vadd.f32 %v827_v42, %v826_v40 }
  0xff   : > { %v447_v47 = vadd.f32 %v804_v45, %v1022_v34  ;;  %v479_v48 = vadd.f32 %v828_v46, %v1022_v34  ;;  %v506_v49 = vmax.f32 %v444_v43, 0.0  ;;  %v514_v50 = vmax.f32 %v476_v44, 0.0 }
 0x101   : > { %v507_v51 = vmax.f32 %v447_v47, 0.0  ;;  %v515_v52 = vmax.f32 %v479_v48, 0.0  ;;  %v805_v53 = vpop.f32.mrb[4].mxu0  ;;  %v829_v54 = vpop.f32.mrb[4].mxu1 }
 0x102   : > { %v806_v55 = vpop.f32.mrb[5].mxu0  ;;  %v830_v56 = vpop.f32.mrb[5].mxu1 }
 0x103   : > { %v739_v57 = vpack.c.bf16 %v507_v51, %v506_v49  ;;  %v759_v58 = vpack.c.bf16 %v515_v52, %v514_v50  ;;  %v807_v59 = vadd.f32 %v806_v55, %v805_v53  ;;  %v831_v60 = vadd.f32 %v830_v56, %v829_v54  ;;  %v808_v61 = vpop.f32.mrb[6].mxu0  ;;  %v832_v62 = vpop.f32.mrb[6].mxu1 }
 0x104   : > { %v809_v63 = vpop.f32.mrb[7].mxu0  ;;  %v833_v0 = vpop.f32.mrb[7].mxu1 }
 0x105   : > { %740 = vst [vmem:[%s1032_s4] sm:$0xff] %v739_v57   ;;  %779 = vst [vmem:[%s1032_s4 + $0x20] sm:$0xff] %v759_v58   ;;  %v452_v1 = vadd.f32 %v807_v59, %v1022_v34  ;;  %v484_v2 = vadd.f32 %v831_v60, %v1022_v34  ;;  %v810_v3 = vadd.f32 %v809_v63, %v808_v61 }
 0x106   : > { %v834_v4 = vadd.f32 %v833_v0, %v832_v62 }
 0x107   : > { %v455_v5 = vadd.f32 %v810_v3, %v1022_v34  ;;  %v508_v7 = vmax.f32 %v452_v1, 0.0  ;;  %v516_v8 = vmax.f32 %v484_v2, 0.0 }
 0x108   : > { %v487_v6 = vadd.f32 %v834_v4, %v1022_v34 }
 0x109   : > { %v509_v9 = vmax.f32 %v455_v5, 0.0  ;;  %v811_v11 = vpop.f32.mrb[8].mxu0  ;;  %v835_v12 = vpop.f32.mrb[8].mxu1 }
 0x10a   : > { %v517_v10 = vmax.f32 %v487_v6, 0.0  ;;  %v812_v13 = vpop.f32.mrb[9].mxu0  ;;  %v836_v14 = vpop.f32.mrb[9].mxu1 }
 0x10b   : > { %v744_v15 = vpack.c.bf16 %v509_v9, %v508_v7  ;;  %v813_v17 = vadd.f32 %v812_v13, %v811_v11  ;;  %v837_v18 = vadd.f32 %v836_v14, %v835_v12  ;;  %v814_v19 = vpop.f32.mrb[10].mxu0  ;;  %v838_v20 = vpop.f32.mrb[10].mxu1 }
 0x10c   : > { %v764_v16 = vpack.c.bf16 %v517_v10, %v516_v8  ;;  %v815_v21 = vpop.f32.mrb[11].mxu0  ;;  %v839_v22 = vpop.f32.mrb[11].mxu1 }
 0x10d   : > { %776 = vst [vmem:[%s1032_s4 + $0x8] sm:$0xff] %v744_v15   ;;  %v460_v23 = vadd.f32 %v813_v17, %v1022_v34  ;;  %v492_v24 = vadd.f32 %v837_v18, %v1022_v34  ;;  %v816_v25 = vadd.f32 %v815_v21, %v814_v19  ;;  %v840_v26 = vadd.f32 %v839_v22, %v838_v20 }
 0x10e   : > { %780 = vst [vmem:[%s1032_s4 + $0x28] sm:$0xff] %v764_v16  }
 0x10f   : > { %v463_v27 = vadd.f32 %v816_v25, %v1022_v34  ;;  %v495_v28 = vadd.f32 %v840_v26, %v1022_v34  ;;  %v510_v29 = vmax.f32 %v460_v23, 0.0  ;;  %v518_v30 = vmax.f32 %v492_v24, 0.0 }
 0x111   : > { %v511_v31 = vmax.f32 %v463_v27, 0.0  ;;  %v519_v32 = vmax.f32 %v495_v28, 0.0  ;;  %v817_v33 = vpop.f32.mrb[12].mxu0  ;;  %v841_v35 = vpop.f32.mrb[12].mxu1 }
 0x112   : > { %v818_v36 = vpop.f32.mrb[13].mxu0  ;;  %v842_v37 = vpop.f32.mrb[13].mxu1 }
 0x113   : > { %v749_v38 = vpack.c.bf16 %v511_v31, %v510_v29  ;;  %v769_v39 = vpack.c.bf16 %v519_v32, %v518_v30  ;;  %v819_v40 = vadd.f32 %v818_v36, %v817_v33  ;;  %v843_v41 = vadd.f32 %v842_v37, %v841_v35  ;;  %v820_v42 = vpop.f32.mrb[14].mxu0  ;;  %v844_v43 = vpop.f32.mrb[14].mxu1 }
 0x114   : > { %v821_v44 = vpop.f32.mrb[15].mxu0  ;;  %v845_v45 = vpop.f32.mrb[15].mxu1 }
 0x115   : > { %777 = vst [vmem:[%s1032_s4 + $0x10] sm:$0xff] %v749_v38   ;;  %781 = vst [vmem:[%s1032_s4 + $0x30] sm:$0xff] %v769_v39   ;;  %v468_v46 = vadd.f32 %v819_v40, %v1022_v34  ;;  %v500_v47 = vadd.f32 %v843_v41, %v1022_v34  ;;  %v822_v48 = vadd.f32 %v821_v44, %v820_v42 }
 0x116   : > { %v846_v49 = vadd.f32 %v845_v45, %v844_v43 }
 0x117   : > { %v471_v50 = vadd.f32 %v822_v48, %v1022_v34  ;;  %v512_v52 = vmax.f32 %v468_v46, 0.0  ;;  %v520_v53 = vmax.f32 %v500_v47, 0.0 }
 0x118   : > { %v503_v51 = vadd.f32 %v846_v49, %v1022_v34 }
 0x119   : > { %v513_v54 = vmax.f32 %v471_v50, 0.0 }
 0x11a   : > { %v521_v55 = vmax.f32 %v503_v51, 0.0 }
 0x11b   : > { %v754_v56 = vpack.c.bf16 %v513_v54, %v512_v52 }
 0x11c   : > { %v774_v57 = vpack.c.bf16 %v521_v55, %v520_v53 }
 0x11d   : > { %778 = vst [vmem:[%s1032_s4 + $0x18] sm:$0xff] %v754_v56  }
 0x11e   : > { %782 = vst [vmem:[%s1032_s4 + $0x38] sm:$0xff] %v774_v57  }
 0x11f PF: > { %s13_s12 = sadd.s32 1, %s917_s12  }
 0x120   : > { %p10_p4 = scmp.ge.s32.totalorder %s13_s12, 6  }
 0x122   :  { %12 = sbr.rel (!%p10_p4) target bundleno = 1 (0x1), region = 62 }

// kernel: _lambda_.25
= control target key start
LH: loop header
LB: loop body
LE: loop exit
PB: predicated region body
PF: predicated region fallthrough
CT: control target
= control target key end

     0   :  { %s1094_s15 = smov 0   ;;  %s1229_s0 = inlined_call_operand.vmem [shape: bf16[512,256], index: 0, kind: input, shape index: {}]   ;;  %s1230_s1 = inlined_call_operand.vmem [shape: bf16[256,128], index: 1, kind: input, shape index: {}]   ;;  %s1231_s2 = inlined_call_operand.vmem [shape: f32[1,128], index: 2, kind: input, shape index: {}]   ;;  %s1232_s3 = inlined_call_operand.vmem [shape: bf16[512,128], index: 3, kind: input, shape index: {}]   ;;  %s1233_s4 = inlined_call_operand.vmem [shape: bf16[512,128], index: 4, kind: output, shape index: {}]  }
   0x1 LB: > { %s767_s16 = sadd.s32 4294967295, %s1067_s15   ;;  %p771_p0 = scmp.ge.s32.totalorder %s1067_s15, 1  ;;  %s1067_s15 = sphi %s1094_s15, %s14_s15  }
   0x2   : > { %p175_p1 = scmp.lt.s32.totalorder %s1067_s15, 5 }
   0x4   : > { %p176_p2 = pnand %p771_p0, %p175_p1 }
   0x5   : > { %v1021_v0 = vld [vmem:[%s1230_s1 + $0x40] sm:$0xff] (!%p176_p2)   ;;  %s772_s19 = sshll.u32 (!%p176_p2), %s767_s16, 4  ;;  %v1023_v2 = vld [vmem:[%s1230_s1 + $0x48] sm:$0xff] (!%p176_p2)   ;;  %v1025_v4 = vld [vmem:[%s1230_s1 + $0x50] sm:$0xff] (!%p176_p2)  }
   0x6   : > { %179 = sbr.rel (%p176_p2) target bundleno = 289 (0x121), region = 36  ;;  %v1022_v1 = vld [vmem:[%s1230_s1] sm:$0xff] (!%p176_p2)   ;;  %933 = vmatprep.subr.bf16.mxu0 (!%p176_p2), %v1021_v0  ;;  %997 = vmatprep.subr.bf16.mxu1 (!%p176_p2), %v1021_v0  ;;  %v1024_v3 = vld [vmem:[%s1230_s1 + $0x8] sm:$0xff] (!%p176_p2)   ;;  %p208_p3 = scmp.lt.s32.totalorder (!%p176_p2), %s772_s19, 63  ;;  %v1026_v5 = vld [vmem:[%s1230_s1 + $0x10] sm:$0xff] (!%p176_p2)  }
   0x7   : > { %934 = vmatpush3.bf16.msra.mxu0 (!%p176_p2), %v1022_v1  ;;  %1005 = vmatpush3.bf16.msra.mxu1 (!%p176_p2), %v1022_v1  ;;  %v1027_v6 = vld [vmem:[%s1230_s1 + $0x58] sm:$0xff] (!%p176_p2)   ;;  %v1029_v8 = vld [vmem:[%s1230_s1 + $0x60] sm:$0xff] (!%p176_p2)   ;;  %v1031_v10 = vld [vmem:[%s1230_s1 + $0x68] sm:$0xff] (!%p176_p2)  }
   0x8   : > { %935 = vmatprep.subr.bf16.mxu0 (!%p176_p2), %v1023_v2  ;;  %998 = vmatprep.subr.bf16.mxu1 (!%p176_p2), %v1023_v2  ;;  %v1028_v7 = vld [vmem:[%s1230_s1 + $0x18] sm:$0xff] (!%p176_p2)   ;;  %v1030_v9 = vld [vmem:[%s1230_s1 + $0x20] sm:$0xff] (!%p176_p2)   ;;  %v1032_v13 = vld [vmem:[%s1230_s1 + $0x28] sm:$0xff] (!%p176_p2)  }
   0x9   : > { %v1033_v14 = vld [vmem:[%s1230_s1 + $0x70] sm:$0xff] (!%p176_p2)   ;;  %v1035_v16 = vld [vmem:[%s1230_s1 + $0x78] sm:$0xff] (!%p176_p2)   ;;  %v1187_v36 = vld [vmem:[%s1231_s2] ss:$0 sm:$0xff] (!%p176_p2) }
   0xa   : > { %v1034_v15 = vld [vmem:[%s1230_s1 + $0x30] sm:$0xff] (!%p176_p2)   ;;  %v1036_v17 = vld [vmem:[%s1230_s1 + $0x38] sm:$0xff] (!%p176_p2)  }
   0xb   : > { %936 = vmatpush3.bf16.msra.mxu0 (!%p176_p2), %v1024_v3  ;;  %1006 = vmatpush3.bf16.msra.mxu1 (!%p176_p2), %v1024_v3 }
   0xc   : > { %937 = vmatprep.subr.bf16.mxu0 (!%p176_p2), %v1025_v4  ;;  %999 = vmatprep.subr.bf16.mxu1 (!%p176_p2), %v1025_v4 }
   0xd   : > { %s1235_s19 = smov (!%p208_p3, %s772_s19), 63 }
   0xe   : > { %s830_s8 = sshll.u32 %s1235_s19, 3  ;;  %s776_s30 = sshll.u32 %s1235_s19, 2 }
   0xf   : > { %938 = vmatpush3.bf16.msra.mxu0 %v1026_v5  ;;  %1007 = vmatpush3.bf16.msra.mxu1 %v1026_v5  ;;  %s1135_s13 = scalar_lea.vmem %s1229_s0, %s830_s8  ;;  %s1180_s7 = scalar_lea.vmem %s1232_s3, %s776_s30 }
  0x10   : > { %939 = vmatprep.subr.bf16.mxu0 %v1027_v6  ;;  %1000 = vmatprep.subr.bf16.mxu1 %v1027_v6  ;;  %v1039_v11 = vld [vmem:[%s1135_s13 + $0x4] ss:$8 sps:$4 sm:$0xff]   ;;  %v1037_v18 = vld [vmem:[%s1135_s13] ss:$8 sps:$4 sm:$0xff]   ;;  %v1043_v20 = vld [vmem:[%s1135_s13 + $0x14] ss:$8 sps:$4 sm:$0xff]   ;;  %s1200_s12 = scalar_lea.vmem %s1233_s4, %s776_s30 }
  0x11   : > { %v1042_v12 = vld [vmem:[%s1135_s13 + $0x44] ss:$8 sps:$4 sm:$0xff]   ;;  %490 = vmatprep.mubr.bf16.mxu0 %v1039_v11  ;;  %v1040_v19 = vld [vmem:[%s1135_s13 + $0x40] ss:$8 sps:$4 sm:$0xff]   ;;  %v1045_v21 = vld [vmem:[%s1135_s13 + $0x54] ss:$8 sps:$4 sm:$0xff]  }
  0x12   : > { %522 = vmatprep.mubr.bf16.mxu1 %v1042_v12  ;;  %v1047_v22 = vld [vmem:[%s1135_s13 + $0x10] ss:$8 sps:$4 sm:$0xff]   ;;  %v1049_v24 = vld [vmem:[%s1135_s13 + $0x24] ss:$8 sps:$4 sm:$0xff]   ;;  %v1053_v26 = vld [vmem:[%s1135_s13 + $0x20] ss:$8 sps:$4 sm:$0xff]  }
  0x13   : > { %940 = vmatpush3.bf16.msra.mxu0 %v1028_v7  ;;  %1008 = vmatpush3.bf16.msra.mxu1 %v1028_v7  ;;  %v1048_v23 = vld [vmem:[%s1135_s13 + $0x50] ss:$8 sps:$4 sm:$0xff]   ;;  %v1051_v25 = vld [vmem:[%s1135_s13 + $0x64] ss:$8 sps:$4 sm:$0xff]   ;;  %v1054_v27 = vld [vmem:[%s1135_s13 + $0x60] ss:$8 sps:$4 sm:$0xff]  }
  0x14   : > { %941 = vmatprep.subr.bf16.mxu0 %v1029_v8  ;;  %1001 = vmatprep.subr.bf16.mxu1 %v1029_v8  ;;  %v1055_v28 = vld [vmem:[%s1135_s13 + $0x34] ss:$8 sps:$4 sm:$0xff]   ;;  %v1059_v30 = vld [vmem:[%s1135_s13 + $0x30] ss:$8 sps:$4 sm:$0xff]   ;;  %v848_v32 = vld [vmem:[%s1180_s7] sm:$0xff]  }
  0x15   : > { %v1057_v29 = vld [vmem:[%s1135_s13 + $0x74] ss:$8 sps:$4 sm:$0xff]   ;;  %v1060_v31 = vld [vmem:[%s1135_s13 + $0x70] ss:$8 sps:$4 sm:$0xff]   ;;  %v922_v33 = vld [vmem:[%s1180_s7 + $0x20] sm:$0xff]   ;;  %v849_v40 = vunpack.c.l.bf16 %v848_v32  ;;  %v850_v46 = vunpack.c.h.bf16 %v848_v32 }
  0x16   : > { %v865_v42 = vunpack.c.l.bf16 %v922_v33  ;;  %v866_v48 = vunpack.c.h.bf16 %v922_v33  ;;  %v919_v61 = vld [vmem:[%s1180_s7 + $0x8] sm:$0xff]  }
  0x17   : > { %942 = vmatpush3.bf16.msra.mxu0 %v1030_v9  ;;  %1009 = vmatpush3.bf16.msra.mxu1 %v1030_v9  ;;  %v923_v62 = vld [vmem:[%s1180_s7 + $0x28] sm:$0xff]   ;;  %v853_v9 = vunpack.c.l.bf16 %v919_v61 }
  0x18   : > { %943 = vmatprep.subr.bf16.mxu0 %v1031_v10  ;;  %1002 = vmatprep.subr.bf16.mxu1 %v1031_v10  ;;  %v869_v10 = vunpack.c.l.bf16 %v923_v62 }
  0x1b   : > { %944 = vmatpush3.bf16.msra.mxu0 %v1032_v13  ;;  %1010 = vmatpush3.bf16.msra.mxu1 %v1032_v13 }
  0x1c   : > { %945 = vmatprep.subr.bf16.mxu0 %v1033_v14  ;;  %1003 = vmatprep.subr.bf16.mxu1 %v1033_v14 }
  0x1f   : > { %946 = vmatpush3.bf16.msra.mxu0 %v1034_v15  ;;  %1011 = vmatpush3.bf16.msra.mxu1 %v1034_v15 }
  0x20   : > { %947 = vmatprep.subr.bf16.mxu0 %v1035_v16  ;;  %1004 = vmatprep.subr.bf16.mxu1 %v1035_v16 }
  0x23   : > { %948 = vmatpush3.bf16.msra.mxu0 %v1036_v17  ;;  %1012 = vmatpush3.bf16.msra.mxu1 %v1036_v17 }
  0x26   : > { %491 = vmatmul.mubr.bf16.vlgmr.msra.gmra.mrb[0].mxu0 %v1037_v18  ;;  %523 = vmatmul.mubr.bf16.vlgmr.msra.gmra.mrb[0].mxu1 %v1040_v19  ;;  %v854_v18 = vunpack.c.h.bf16 %v919_v61 }
  0x27   : > { %498 = vmatprep.mubr.bf16.mxu0 %v1043_v20  ;;  %530 = vmatprep.mubr.bf16.mxu1 %v1045_v21  ;;  %v870_v20 = vunpack.c.h.bf16 %v923_v62  ;;  %v920_v21 = vld [vmem:[%s1180_s7 + $0x10] sm:$0xff]   ;;  %v921_v62 = vld [vmem:[%s1180_s7 + $0x18] sm:$0xff]  }
  0x28   : > { %v857_v32 = vunpack.c.l.bf16 %v920_v21 }
  0x2e   : > { %499 = vmatmul.mubr.bf16.gmra.mrb[4].mxu0 %v1047_v22  ;;  %531 = vmatmul.mubr.bf16.gmra.mrb[4].mxu1 %v1048_v23  ;;  %v924_v22 = vld [vmem:[%s1180_s7 + $0x30] sm:$0xff]  }
  0x2f   : > { %506 = vmatprep.mubr.bf16.mxu0 %v1049_v24  ;;  %538 = vmatprep.mubr.bf16.mxu1 %v1051_v25 }
  0x36   : > { %507 = vmatmul.mubr.bf16.gmra.mrb[8].mxu0 %v1053_v26  ;;  %539 = vmatmul.mubr.bf16.gmra.mrb[8].mxu1 %v1054_v27 }
  0x37   : > { %514 = vmatprep.mubr.bf16.mxu0 %v1055_v28  ;;  %546 = vmatprep.mubr.bf16.mxu1 %v1057_v29 }
  0x3e   : > { %515 = vmatmul.mubr.bf16.gmra.mrb[12].mxu0 %v1059_v30  ;;  %547 = vmatmul.mubr.bf16.gmra.mrb[12].mxu1 %v1060_v31 }
  0xf9   : > { %v949_v34 = vpop.f32.mrb[0].mxu0  ;;  %v973_v35 = vpop.f32.mrb[0].mxu1 }
  0xfa   : > { %v950_v37 = vpop.f32.mrb[1].mxu0  ;;  %v974_v38 = vpop.f32.mrb[1].mxu1 }
  0xfb   : > { %v951_v39 = vadd.f32 %v950_v37, %v949_v34  ;;  %v975_v41 = vadd.f32 %v974_v38, %v973_v35  ;;  %v952_v43 = vpop.f32.mrb[2].mxu0  ;;  %v976_v44 = vpop.f32.mrb[2].mxu1  ;;  %v873_v34 = vunpack.c.l.bf16 %v924_v22 }
  0xfc   : > { %v953_v45 = vpop.f32.mrb[3].mxu0  ;;  %v977_v47 = vpop.f32.mrb[3].mxu1 }
  0xfd   : > { %v493_v49 = vadd.f32 %v951_v39, %v1187_v36  ;;  %v525_v50 = vadd.f32 %v975_v41, %v1187_v36  ;;  %v954_v51 = vadd.f32 %v953_v45, %v952_v43  ;;  %v978_v52 = vadd.f32 %v977_v47, %v976_v44 }
  0xfe   : > { %v874_v41 = vunpack.c.h.bf16 %v924_v22 }
  0xff   : > { %v587_v53 = vadd.f32 %v849_v40, %v493_v49  ;;  %v595_v54 = vadd.f32 %v865_v42, %v525_v50  ;;  %v496_v55 = vadd.f32 %v954_v51, %v1187_v36  ;;  %v528_v56 = vadd.f32 %v978_v52, %v1187_v36 }
 0x100   : > { %v858_v40 = vunpack.c.h.bf16 %v920_v21 }
 0x101   : > { %v588_v57 = vadd.f32 %v850_v46, %v496_v55  ;;  %v596_v58 = vadd.f32 %v866_v48, %v528_v56  ;;  %v955_v59 = vpop.f32.mrb[4].mxu0  ;;  %v979_v60 = vpop.f32.mrb[4].mxu1  ;;  %v603_v63 = vmax.f32 %v587_v53, 0.0  ;;  %v611_v0 = vmax.f32 %v595_v54, 0.0 }
 0x102   : > { %v956_v1 = vpop.f32.mrb[5].mxu0  ;;  %v980_v2 = vpop.f32.mrb[5].mxu1 }
 0x103   : > { %v604_v3 = vmax.f32 %v588_v57, 0.0  ;;  %v612_v4 = vmax.f32 %v596_v58, 0.0  ;;  %v957_v5 = vadd.f32 %v956_v1, %v955_v59  ;;  %v981_v6 = vadd.f32 %v980_v2, %v979_v60  ;;  %v958_v7 = vpop.f32.mrb[6].mxu0  ;;  %v982_v8 = vpop.f32.mrb[6].mxu1 }
 0x104   : > { %v959_v11 = vpop.f32.mrb[7].mxu0  ;;  %v983_v12 = vpop.f32.mrb[7].mxu1 }
 0x105   : > { %v882_v13 = vpack.c.bf16 %v604_v3, %v603_v63  ;;  %v902_v14 = vpack.c.bf16 %v612_v4, %v611_v0  ;;  %v501_v15 = vadd.f32 %v957_v5, %v1187_v36  ;;  %v533_v16 = vadd.f32 %v981_v6, %v1187_v36  ;;  %v925_v63 = vld [vmem:[%s1180_s7 + $0x38] sm:$0xff]  }
 0x106   : > { %v960_v17 = vadd.f32 %v959_v11, %v958_v7  ;;  %v984_v19 = vadd.f32 %v983_v12, %v982_v8  ;;  %v877_v11 = vunpack.c.l.bf16 %v925_v63  ;;  %v878_v21 = vunpack.c.h.bf16 %v925_v63 }
 0x107   : > { %883 = vst [vmem:[%s1200_s12] sm:$0xff] %v882_v13   ;;  %929 = vst [vmem:[%s1200_s12 + $0x20] sm:$0xff] %v902_v14   ;;  %v589_v23 = vadd.f32 %v853_v9, %v501_v15  ;;  %v597_v24 = vadd.f32 %v869_v10, %v533_v16  ;;  %v861_v10 = vunpack.c.l.bf16 %v921_v62 }
 0x108   : > { %v504_v25 = vadd.f32 %v960_v17, %v1187_v36  ;;  %v536_v26 = vadd.f32 %v984_v19, %v1187_v36  ;;  %v862_v19 = vunpack.c.h.bf16 %v921_v62 }
 0x109   : > { %v961_v27 = vpop.f32.mrb[8].mxu0  ;;  %v985_v28 = vpop.f32.mrb[8].mxu1  ;;  %v605_v42 = vmax.f32 %v589_v23, 0.0  ;;  %v613_v43 = vmax.f32 %v597_v24, 0.0 }
 0x10a   : > { %v590_v29 = vadd.f32 %v854_v18, %v504_v25  ;;  %v598_v30 = vadd.f32 %v870_v20, %v536_v26  ;;  %v962_v31 = vpop.f32.mrb[9].mxu0  ;;  %v986_v33 = vpop.f32.mrb[9].mxu1 }
 0x10b   : > { %v963_v35 = vadd.f32 %v962_v31, %v961_v27  ;;  %v987_v37 = vadd.f32 %v986_v33, %v985_v28  ;;  %v964_v38 = vpop.f32.mrb[10].mxu0  ;;  %v988_v39 = vpop.f32.mrb[10].mxu1 }
 0x10c   : > { %v606_v44 = vmax.f32 %v590_v29, 0.0  ;;  %v614_v45 = vmax.f32 %v598_v30, 0.0  ;;  %v965_v46 = vpop.f32.mrb[11].mxu0  ;;  %v989_v47 = vpop.f32.mrb[11].mxu1 }
 0x10d   : > { %v509_v48 = vadd.f32 %v963_v35, %v1187_v36  ;;  %v541_v49 = vadd.f32 %v987_v37, %v1187_v36  ;;  %v966_v50 = vadd.f32 %v965_v46, %v964_v38  ;;  %v990_v51 = vadd.f32 %v989_v47, %v988_v39 }
 0x10e   : > { %v887_v52 = vpack.c.bf16 %v606_v44, %v605_v42  ;;  %v907_v53 = vpack.c.bf16 %v614_v45, %v613_v43 }
 0x10f   : > { %v591_v54 = vadd.f32 %v857_v32, %v509_v48  ;;  %v599_v55 = vadd.f32 %v873_v34, %v541_v49  ;;  %v512_v56 = vadd.f32 %v966_v50, %v1187_v36  ;;  %v544_v57 = vadd.f32 %v990_v51, %v1187_v36 }
 0x110   : > { %926 = vst [vmem:[%s1200_s12 + $0x8] sm:$0xff] %v887_v52   ;;  %930 = vst [vmem:[%s1200_s12 + $0x28] sm:$0xff] %v907_v53  }
 0x111   : > { %v592_v58 = vadd.f32 %v858_v40, %v512_v56  ;;  %v600_v59 = vadd.f32 %v874_v41, %v544_v57  ;;  %v967_v60 = vpop.f32.mrb[12].mxu0  ;;  %v991_v61 = vpop.f32.mrb[12].mxu1  ;;  %v607_v0 = vmax.f32 %v591_v54, 0.0  ;;  %v615_v1 = vmax.f32 %v599_v55, 0.0 }
 0x112   : > { %v968_v2 = vpop.f32.mrb[13].mxu0  ;;  %v992_v3 = vpop.f32.mrb[13].mxu1 }
 0x113   : > { %v608_v4 = vmax.f32 %v592_v58, 0.0  ;;  %v616_v5 = vmax.f32 %v600_v59, 0.0  ;;  %v969_v6 = vadd.f32 %v968_v2, %v967_v60  ;;  %v993_v7 = vadd.f32 %v992_v3, %v991_v61  ;;  %v970_v8 = vpop.f32.mrb[14].mxu0  ;;  %v994_v9 = vpop.f32.mrb[14].mxu1 }
 0x114   : > { %v971_v12 = vpop.f32.mrb[15].mxu0  ;;  %v995_v13 = vpop.f32.mrb[15].mxu1 }
 0x115   : > { %v892_v14 = vpack.c.bf16 %v608_v4, %v607_v0  ;;  %v912_v15 = vpack.c.bf16 %v616_v5, %v615_v1  ;;  %v517_v16 = vadd.f32 %v969_v6, %v1187_v36  ;;  %v549_v17 = vadd.f32 %v993_v7, %v1187_v36 }
 0x116   : > { %v972_v18 = vadd.f32 %v971_v12, %v970_v8  ;;  %v996_v20 = vadd.f32 %v995_v13, %v994_v9 }
 0x117   : > { %927 = vst [vmem:[%s1200_s12 + $0x10] sm:$0xff] %v892_v14   ;;  %931 = vst [vmem:[%s1200_s12 + $0x30] sm:$0xff] %v912_v15   ;;  %v593_v22 = vadd.f32 %v861_v10, %v517_v16  ;;  %v601_v23 = vadd.f32 %v877_v11, %v549_v17 }
 0x118   : > { %v520_v24 = vadd.f32 %v972_v18, %v1187_v36  ;;  %v552_v25 = vadd.f32 %v996_v20, %v1187_v36 }
 0x119   : > { %v609_v28 = vmax.f32 %v593_v22, 0.0  ;;  %v617_v29 = vmax.f32 %v601_v23, 0.0 }
 0x11a   : > { %v594_v26 = vadd.f32 %v862_v19, %v520_v24  ;;  %v602_v27 = vadd.f32 %v878_v21, %v552_v25 }
 0x11c   : > { %v610_v30 = vmax.f32 %v594_v26, 0.0  ;;  %v618_v31 = vmax.f32 %v602_v27, 0.0 }
 0x11e   : > { %v897_v32 = vpack.c.bf16 %v610_v30, %v609_v28  ;;  %v917_v33 = vpack.c.bf16 %v618_v31, %v617_v29 }
 0x120   : > { %928 = vst [vmem:[%s1200_s12 + $0x18] sm:$0xff] %v897_v32   ;;  %932 = vst [vmem:[%s1200_s12 + $0x38] sm:$0xff] %v917_v33  }
 0x121 PF: > { %s14_s15 = sadd.s32 1, %s1067_s15  }
 0x122   : > { %p11_p4 = scmp.ge.s32.totalorder %s14_s15, 6  }
 0x124   :  { %13 = sbr.rel (!%p11_p4) target bundleno = 1 (0x1), region = 69 }

// kernel: _lambda_.26
= control target key start
LH: loop header
LB: loop body
LE: loop exit
PB: predicated region body
PF: predicated region fallthrough
CT: control target
= control target key end

     0   :  { %s621_s12 = smov 0   ;;  %s693_s0 = inlined_call_operand.vmem [shape: bf16[128,256], index: 0, kind: input, shape index: {}]   ;;  %s694_s1 = inlined_call_operand.vmem [shape: bf16[256,128], index: 1, kind: input, shape index: {}]   ;;  %s695_s2 = inlined_call_operand.vmem [shape: f32[1,128], index: 2, kind: input, shape index: {}]   ;;  %s696_s3 = inlined_call_operand.vmem [shape: bf16[128,128], index: 3, kind: output, shape index: {}]  }
   0x1 LB: > { %s466_s13 = sadd.s32 4294967295, %s599_s12   ;;  %p470_p0 = scmp.ge.s32.totalorder %s599_s12, 1  ;;  %s599_s12 = sphi %s621_s12, %s13_s12  }
   0x2   : > { %p139_p1 = scmp.lt.s32.totalorder %s599_s12, 5 }
   0x4   : > { %p140_p2 = pnand %p470_p0, %p139_p1 }
   0x5   : > { %v571_v0 = vld [vmem:[%s694_s1 + $0x40] sm:$0xff] (!%p140_p2)   ;;  %s471_s16 = sshll.u32 (!%p140_p2), %s466_s13, 2  ;;  %v573_v2 = vld [vmem:[%s694_s1 + $0x48] sm:$0xff] (!%p140_p2)   ;;  %v575_v4 = vld [vmem:[%s694_s1 + $0x50] sm:$0xff] (!%p140_p2)  }
   0x6   : > { %143 = sbr.rel (%p140_p2) target bundleno = 262 (0x106), region = 32  ;;  %v572_v1 = vld [vmem:[%s694_s1] sm:$0xff] (!%p140_p2)   ;;  %519 = vmatprep.subr.bf16.mxu0 (!%p140_p2), %v571_v0  ;;  %547 = vmatprep.subr.bf16.mxu1 (!%p140_p2), %v571_v0  ;;  %v574_v3 = vld [vmem:[%s694_s1 + $0x8] sm:$0xff] (!%p140_p2)   ;;  %p165_p3 = scmp.lt.s32.totalorder (!%p140_p2), %s471_s16, 15  ;;  %v576_v5 = vld [vmem:[%s694_s1 + $0x10] sm:$0xff] (!%p140_p2)  }
   0x7   : > { %520 = vmatpush3.bf16.msra.mxu0 (!%p140_p2), %v572_v1  ;;  %555 = vmatpush3.bf16.msra.mxu1 (!%p140_p2), %v572_v1  ;;  %v577_v6 = vld [vmem:[%s694_s1 + $0x58] sm:$0xff] (!%p140_p2)   ;;  %v579_v8 = vld [vmem:[%s694_s1 + $0x60] sm:$0xff] (!%p140_p2)   ;;  %v581_v10 = vld [vmem:[%s694_s1 + $0x68] sm:$0xff] (!%p140_p2)  }
   0x8   : > { %521 = vmatprep.subr.bf16.mxu0 (!%p140_p2), %v573_v2  ;;  %548 = vmatprep.subr.bf16.mxu1 (!%p140_p2), %v573_v2  ;;  %v578_v7 = vld [vmem:[%s694_s1 + $0x18] sm:$0xff] (!%p140_p2)   ;;  %v580_v9 = vld [vmem:[%s694_s1 + $0x20] sm:$0xff] (!%p140_p2)   ;;  %v582_v13 = vld [vmem:[%s694_s1 + $0x28] sm:$0xff] (!%p140_p2)  }
   0x9   : > { %v583_v14 = vld [vmem:[%s694_s1 + $0x70] sm:$0xff] (!%p140_p2)   ;;  %v585_v16 = vld [vmem:[%s694_s1 + $0x78] sm:$0xff] (!%p140_p2)   ;;  %v476_v22 = vld [vmem:[%s695_s2] ss:$0 sm:$0xff] (!%p140_p2) }
   0xa   : > { %v584_v15 = vld [vmem:[%s694_s1 + $0x30] sm:$0xff] (!%p140_p2)   ;;  %v586_v17 = vld [vmem:[%s694_s1 + $0x38] sm:$0xff] (!%p140_p2)  }
   0xb   : > { %522 = vmatpush3.bf16.msra.mxu0 (!%p140_p2), %v574_v3  ;;  %556 = vmatpush3.bf16.msra.mxu1 (!%p140_p2), %v574_v3 }
   0xc   : > { %523 = vmatprep.subr.bf16.mxu0 (!%p140_p2), %v575_v4  ;;  %549 = vmatprep.subr.bf16.mxu1 (!%p140_p2), %v575_v4 }
   0xd   : > { %s698_s16 = smov (!%p165_p3, %s471_s16), 15 }
   0xe   : > { %s503_s4 = sshll.u32 %s698_s16, 3  ;;  %s475_s28 = sshll.u32 %s698_s16, 2 }
   0xf   : > { %524 = vmatpush3.bf16.msra.mxu0 %v576_v5  ;;  %557 = vmatpush3.bf16.msra.mxu1 %v576_v5  ;;  %s169_s9 = scalar_lea.vmem %s693_s0, %s503_s4  ;;  %s175_s4 = scalar_lea.vmem %s696_s3, %s475_s28 }
  0x10   : > { %525 = vmatprep.subr.bf16.mxu0 %v577_v6  ;;  %550 = vmatprep.subr.bf16.mxu1 %v577_v6  ;;  %v589_v11 = vld [vmem:[%s169_s9 + $0x4] ss:$8 sps:$4 sm:$0xff]   ;;  %v592_v12 = vld [vmem:[%s169_s9 + $0x14] ss:$8 sps:$4 sm:$0xff]   ;;  %v587_v18 = vld [vmem:[%s169_s9] ss:$8 sps:$4 sm:$0xff]  }
  0x11   : > { %369 = vmatprep.mubr.bf16.mxu0 %v589_v11  ;;  %377 = vmatprep.mubr.bf16.mxu1 %v592_v12  ;;  %v590_v19 = vld [vmem:[%s169_s9 + $0x10] ss:$8 sps:$4 sm:$0xff]  }
  0x13   : > { %526 = vmatpush3.bf16.msra.mxu0 %v578_v7  ;;  %558 = vmatpush3.bf16.msra.mxu1 %v578_v7 }
  0x14   : > { %527 = vmatprep.subr.bf16.mxu0 %v579_v8  ;;  %551 = vmatprep.subr.bf16.mxu1 %v579_v8 }
  0x17   : > { %528 = vmatpush3.bf16.msra.mxu0 %v580_v9  ;;  %559 = vmatpush3.bf16.msra.mxu1 %v580_v9 }
  0x18   : > { %529 = vmatprep.subr.bf16.mxu0 %v581_v10  ;;  %552 = vmatprep.subr.bf16.mxu1 %v581_v10 }
  0x1b   : > { %530 = vmatpush3.bf16.msra.mxu0 %v582_v13  ;;  %560 = vmatpush3.bf16.msra.mxu1 %v582_v13 }
  0x1c   : > { %531 = vmatprep.subr.bf16.mxu0 %v583_v14  ;;  %553 = vmatprep.subr.bf16.mxu1 %v583_v14 }
  0x1f   : > { %532 = vmatpush3.bf16.msra.mxu0 %v584_v15  ;;  %561 = vmatpush3.bf16.msra.mxu1 %v584_v15 }
  0x20   : > { %533 = vmatprep.subr.bf16.mxu0 %v585_v16  ;;  %554 = vmatprep.subr.bf16.mxu1 %v585_v16 }
  0x23   : > { %534 = vmatpush3.bf16.msra.mxu0 %v586_v17  ;;  %562 = vmatpush3.bf16.msra.mxu1 %v586_v17 }
  0x26   : > { %370 = vmatmul.mubr.bf16.vlgmr.msra.gmra.mrb[0].mxu0 %v587_v18  ;;  %378 = vmatmul.mubr.bf16.vlgmr.msra.gmra.mrb[0].mxu1 %v590_v19 }
  0xf9   : > { %v535_v20 = vpop.f32.mrb[0].mxu0  ;;  %v541_v21 = vpop.f32.mrb[0].mxu1 }
  0xfa   : > { %v536_v23 = vpop.f32.mrb[1].mxu0  ;;  %v542_v24 = vpop.f32.mrb[1].mxu1 }
  0xfb   : > { %v537_v25 = vadd.f32 %v536_v23, %v535_v20  ;;  %v543_v26 = vadd.f32 %v542_v24, %v541_v21  ;;  %v538_v27 = vpop.f32.mrb[2].mxu0  ;;  %v544_v28 = vpop.f32.mrb[2].mxu1 }
  0xfc   : > { %v539_v29 = vpop.f32.mrb[3].mxu0  ;;  %v545_v30 = vpop.f32.mrb[3].mxu1 }
  0xfd   : > { %v372_v31 = vadd.f32 %v537_v25, %v476_v22  ;;  %v380_v32 = vadd.f32 %v543_v26, %v476_v22  ;;  %v540_v33 = vadd.f32 %v539_v29, %v538_v27  ;;  %v546_v34 = vadd.f32 %v545_v30, %v544_v28 }
  0xff   : > { %v375_v35 = vadd.f32 %v540_v33, %v476_v22  ;;  %v383_v36 = vadd.f32 %v546_v34, %v476_v22  ;;  %v386_v37 = vmax.f32 %v372_v31, 0.0  ;;  %v388_v38 = vmax.f32 %v380_v32, 0.0 }
 0x101   : > { %v387_v39 = vmax.f32 %v375_v35, 0.0  ;;  %v389_v40 = vmax.f32 %v383_v36, 0.0 }
 0x103   : > { %v511_v41 = vpack.c.bf16 %v387_v39, %v386_v37  ;;  %v516_v42 = vpack.c.bf16 %v389_v40, %v388_v38 }
 0x105   : > { %512 = vst [vmem:[%s175_s4] sm:$0xff] %v511_v41   ;;  %518 = vst [vmem:[%s175_s4 + $0x8] sm:$0xff] %v516_v42  }
 0x106 PF: > { %s13_s12 = sadd.s32 1, %s599_s12  }
 0x107   : > { %p10_p4 = scmp.ge.s32.totalorder %s13_s12, 6  }
 0x109   :  { %12 = sbr.rel (!%p10_p4) target bundleno = 1 (0x1), region = 62 }

// kernel: _lambda_.28
= control target key start
LH: loop header
LB: loop body
LE: loop exit
PB: predicated region body
PF: predicated region fallthrough
CT: control target
= control target key end

     0   :  { %s783_s12 = smov 0   ;;  %s879_s0 = inlined_call_operand.vmem [shape: bf16[128,384], index: 0, kind: input, shape index: {}]   ;;  %s880_s1 = inlined_call_operand.vmem [shape: bf16[384,128], index: 1, kind: input, shape index: {}]   ;;  %s881_s2 = inlined_call_operand.vmem [shape: f32[1,128], index: 2, kind: input, shape index: {}]   ;;  %s882_s3 = inlined_call_operand.vmem [shape: bf16[128,128], index: 3, kind: output, shape index: {}]  }
   0x1 LB: > { %s595_s13 = sadd.s32 4294967295, %s761_s12   ;;  %p599_p0 = scmp.ge.s32.totalorder %s761_s12, 1  ;;  %s761_s12 = sphi %s783_s12, %s13_s12  }
   0x2   : > { %p139_p1 = scmp.lt.s32.totalorder %s761_s12, 5 }
   0x4   : > { %p140_p2 = pnand %p599_p0, %p139_p1 }
   0x5   : > { %v723_v0 = vld [vmem:[%s880_s1 + $0x40] sm:$0xff] (!%p140_p2)   ;;  %v725_v2 = vld [vmem:[%s880_s1 + $0x48] sm:$0xff] (!%p140_p2)   ;;  %v728_v5 = vld [vmem:[%s880_s1 + $0x50] sm:$0xff] (!%p140_p2)   ;;  %s600_s28 = sshll.u32 (!%p140_p2), %s595_s13, 2 }
   0x6   : > { %143 = sbr.rel (%p140_p2) target bundleno = 272 (0x110), region = 32  ;;  %v724_v1 = vld [vmem:[%s880_s1] sm:$0xff] (!%p140_p2)   ;;  %656 = vmatprep.subr.bf16.mxu0 (!%p140_p2), %v723_v0  ;;  %v727_v4 = vld [vmem:[%s880_s1 + $0x8] sm:$0xff] (!%p140_p2)   ;;  %v730_v7 = vld [vmem:[%s880_s1 + $0x10] sm:$0xff] (!%p140_p2)   ;;  %p165_p3 = scmp.lt.s32.totalorder (!%p140_p2), %s600_s28, 15 }
   0x7   : > { %657 = vmatpush3.bf16.msra.mxu0 (!%p140_p2), %v724_v1  ;;  %v726_v3 = vld [vmem:[%s880_s1 + $0x80] sm:$0xff] (!%p140_p2)   ;;  %v729_v6 = vld [vmem:[%s880_s1 + $0x88] sm:$0xff] (!%p140_p2)   ;;  %v731_v8 = vld [vmem:[%s880_s1 + $0x58] sm:$0xff] (!%p140_p2)  }
   0x8   : > { %658 = vmatprep.subr.bf16.mxu0 (!%p140_p2), %v725_v2  ;;  %694 = vmatprep.subr.bf16.mxu1 (!%p140_p2), %v726_v3  ;;  %v732_v9 = vld [vmem:[%s880_s1 + $0x90] sm:$0xff] (!%p140_p2)   ;;  %v733_v10 = vld [vmem:[%s880_s1 + $0x18] sm:$0xff] (!%p140_p2)   ;;  %v734_v11 = vld [vmem:[%s880_s1 + $0x60] sm:$0xff] (!%p140_p2)  }
   0x9   : > { %695 = vmatpush3.bf16.msra.mxu1 (!%p140_p2), %v726_v3  ;;  %v735_v12 = vld [vmem:[%s880_s1 + $0x98] sm:$0xff] (!%p140_p2)   ;;  %v736_v13 = vld [vmem:[%s880_s1 + $0x20] sm:$0xff] (!%p140_p2)   ;;  %v737_v15 = vld [vmem:[%s880_s1 + $0x68] sm:$0xff] (!%p140_p2)  }
   0xa   : > { %696 = vmatprep.subr.bf16.mxu1 (!%p140_p2), %v729_v6  ;;  %v738_v14 = vld [vmem:[%s880_s1 + $0xa0] sm:$0xff] (!%p140_p2)   ;;  %v739_v16 = vld [vmem:[%s880_s1 + $0x28] sm:$0xff] (!%p140_p2)   ;;  %v740_v18 = vld [vmem:[%s880_s1 + $0x70] sm:$0xff] (!%p140_p2)  }
   0xb   : > { %659 = vmatpush3.bf16.msra.mxu0 (!%p140_p2), %v727_v4  ;;  %v741_v17 = vld [vmem:[%s880_s1 + $0xa8] sm:$0xff] (!%p140_p2)   ;;  %v742_v19 = vld [vmem:[%s880_s1 + $0x30] sm:$0xff] (!%p140_p2)   ;;  %v743_v20 = vld [vmem:[%s880_s1 + $0x78] sm:$0xff] (!%p140_p2)  }
   0xc   : > { %660 = vmatprep.subr.bf16.mxu0 (!%p140_p2), %v728_v5  ;;  %v744_v21 = vld [vmem:[%s880_s1 + $0xb0] sm:$0xff] (!%p140_p2)   ;;  %v745_v23 = vld [vmem:[%s880_s1 + $0x38] sm:$0xff] (!%p140_p2)   ;;  %v604_v32 = vld [vmem:[%s881_s2] ss:$0 sm:$0xff] (!%p140_p2) }
   0xd   : > { %697 = vmatpush3.bf16.msra.mxu1 %v729_v6  ;;  %s884_s28 = smov (!%p165_p3, %s600_s28), 15  ;;  %v749_v25 = vld [vmem:[%s880_s1 + $0xb8] sm:$0xff]  }
   0xe   : > { %698 = vmatprep.subr.bf16.mxu1 %v732_v9  ;;  %s714_s21 = smul.u32 12, %s884_s28  ;;  %s603_s18 = sshll.u32 %s884_s28, 2 }
   0xf   : > { %661 = vmatpush3.bf16.msra.mxu0 %v730_v7 }
  0x10   : > { %662 = vmatprep.subr.bf16.mxu0 %v731_v8  ;;  %s169_s6 = scalar_lea.vmem %s879_s0, %s714_s21  ;;  %s175_s21 = scalar_lea.vmem %s882_s3, %s603_s18 }
  0x11   : > { %699 = vmatpush3.bf16.msra.mxu1 %v732_v9  ;;  %v748_v22 = vld [vmem:[%s169_s6 + $0x4] ss:$12 sps:$4 sm:$0xff]   ;;  %v750_v24 = vld [vmem:[%s169_s6 + $0x8] ss:$12 sps:$4 sm:$0xff]   ;;  %v746_v26 = vld [vmem:[%s169_s6] ss:$12 sps:$4 sm:$0xff]  }
  0x12   : > { %700 = vmatprep.subr.bf16.mxu1 %v735_v12  ;;  %449 = vmatprep.mubr.bf16.mxu0 %v748_v22  ;;  %v752_v27 = vld [vmem:[%s169_s6 + $0x1c] ss:$12 sps:$4 sm:$0xff]   ;;  %v751_v28 = vld [vmem:[%s169_s6 + $0x20] ss:$12 sps:$4 sm:$0xff]   ;;  %v754_v29 = vld [vmem:[%s169_s6 + $0x18] ss:$12 sps:$4 sm:$0xff]  }
  0x13   : > { %663 = vmatpush3.bf16.msra.mxu0 %v733_v10  ;;  %710 = vmatprep.mubr.bf16.mxu1 %v750_v24 }
  0x14   : > { %664 = vmatprep.subr.bf16.mxu0 %v734_v11 }
  0x15   : > { %701 = vmatpush3.bf16.msra.mxu1 %v735_v12 }
  0x16   : > { %702 = vmatprep.subr.bf16.mxu1 %v738_v14 }
  0x17   : > { %665 = vmatpush3.bf16.msra.mxu0 %v736_v13 }
  0x18   : > { %666 = vmatprep.subr.bf16.mxu0 %v737_v15 }
  0x19   : > { %703 = vmatpush3.bf16.msra.mxu1 %v738_v14 }
  0x1a   : > { %704 = vmatprep.subr.bf16.mxu1 %v741_v17 }
  0x1b   : > { %667 = vmatpush3.bf16.msra.mxu0 %v739_v16 }
  0x1c   : > { %668 = vmatprep.subr.bf16.mxu0 %v740_v18 }
  0x1d   : > { %705 = vmatpush3.bf16.msra.mxu1 %v741_v17 }
  0x1e   : > { %706 = vmatprep.subr.bf16.mxu1 %v744_v21 }
  0x1f   : > { %669 = vmatpush3.bf16.msra.mxu0 %v742_v19 }
  0x20   : > { %670 = vmatprep.subr.bf16.mxu0 %v743_v20 }
  0x21   : > { %707 = vmatpush3.bf16.msra.mxu1 %v744_v21 }
  0x22   : > { %708 = vmatprep.subr.bf16.mxu1 %v749_v25 }
  0x23   : > { %671 = vmatpush3.bf16.msra.mxu0 %v745_v23 }
  0x25   : > { %709 = vmatpush3.bf16.msra.mxu1 %v749_v25 }
  0x26   : > { %450 = vmatmul.mubr.bf16.vlgmr.msra.gmra.mrb[0].mxu0 %v746_v26 }
  0x27   : > { %457 = vmatprep.mubr.bf16.mxu0 %v752_v27 }
  0x28   : > { %711 = vmatmul.mubr.bf16.vlgmr.msra.gmra.mrb[0].mxu1 %v751_v28 }
  0x2e   : > { %458 = vmatmul.mubr.bf16.gmra.mrb[4].mxu0 %v754_v29 }
  0xf9   : > { %v672_v30 = vpop.f32.mrb[0].mxu0 }
  0xfa   : > { %v673_v31 = vpop.f32.mrb[1].mxu0 }
  0xfb   : > { %v674_v33 = vadd.f32 %v673_v31, %v672_v30  ;;  %v675_v34 = vpop.f32.mrb[2].mxu0  ;;  %v712_v36 = vpop.f32.mrb[0].mxu1 }
  0xfc   : > { %v676_v35 = vpop.f32.mrb[3].mxu0  ;;  %v500_v39 = vpop.f32.mrb[1].mxu1 }
  0xfd   : > { %v677_v37 = vadd.f32 %v676_v35, %v675_v34  ;;  %v452_v38 = vadd.f32 %v674_v33, %v604_v32  ;;  %v713_v40 = vpop.f32.mrb[2].mxu1 }
  0xfe   : > { %v503_v43 = vpop.f32.mrb[3].mxu1 }
  0xff   : > { %v501_v41 = vadd.f32 %v500_v39, %v452_v38  ;;  %v455_v42 = vadd.f32 %v677_v37, %v604_v32 }
 0x101   : > { %v504_v44 = vadd.f32 %v503_v43, %v455_v42  ;;  %v678_v45 = vpop.f32.mrb[4].mxu0  ;;  %v515_v47 = vmax.f32 %v501_v41, 0.0 }
 0x102   : > { %v679_v46 = vpop.f32.mrb[5].mxu0 }
 0x103   : > { %v516_v48 = vmax.f32 %v504_v44, 0.0  ;;  %v680_v49 = vadd.f32 %v679_v46, %v678_v45  ;;  %v681_v50 = vpop.f32.mrb[6].mxu0 }
 0x104   : > { %v682_v51 = vpop.f32.mrb[7].mxu0 }
 0x105   : > { %v648_v52 = vpack.c.bf16 %v516_v48, %v515_v47  ;;  %v460_v53 = vadd.f32 %v680_v49, %v604_v32  ;;  %v683_v54 = vadd.f32 %v682_v51, %v681_v50 }
 0x107   : > { %649 = vst [vmem:[%s175_s21] sm:$0xff] %v648_v52   ;;  %v509_v55 = vadd.f32 %v712_v36, %v460_v53  ;;  %v463_v56 = vadd.f32 %v683_v54, %v604_v32 }
 0x109   : > { %v512_v57 = vadd.f32 %v713_v40, %v463_v56  ;;  %v517_v58 = vmax.f32 %v509_v55, 0.0 }
 0x10b   : > { %v518_v59 = vmax.f32 %v512_v57, 0.0 }
 0x10d   : > { %v653_v60 = vpack.c.bf16 %v518_v59, %v517_v58 }
 0x10f   : > { %655 = vst [vmem:[%s175_s21 + $0x8] sm:$0xff] %v653_v60  }
 0x110 PF: > { %s13_s12 = sadd.s32 1, %s761_s12  }
 0x111   : > { %p10_p4 = scmp.ge.s32.totalorder %s13_s12, 6  }
 0x113   :  { %12 = sbr.rel (!%p10_p4) target bundleno = 1 (0x1), region = 62 }

// kernel: _lambda_.27
= control target key start
LH: loop header
LB: loop body
LE: loop exit
PB: predicated region body
PF: predicated region fallthrough
CT: control target
= control target key end

     0   :  { %s1118_s21 = smov 0   ;;  %s1256_s0 = inlined_call_operand.vmem [shape: bf16[128,384], index: 0, kind: input, shape index: {}]   ;;  %s1257_s1 = inlined_call_operand.vmem [shape: bf16[384,128], index: 1, kind: input, shape index: {}]   ;;  %s1258_s2 = inlined_call_operand.vmem [shape: f32[1,128], index: 2, kind: input, shape index: {}, may-alias: {2,5}]   ;;  %s1259_s3 = inlined_call_operand.vmem [shape: bf16[128,128], index: 3, kind: input, shape index: {}]   ;;  %s1260_s4 = inlined_call_operand.vmem [shape: bf16[128,128], index: 4, kind: input, shape index: {}]   ;;  %s1261_s5 = inlined_call_operand.vmem [shape: f32[1,128], index: 5, kind: input, shape index: {}, may-alias: {2,5}]   ;;  %s1262_s6 = inlined_call_operand.vmem [shape: bf16[128,128], index: 6, kind: output, shape index: {}]  }
   0x1 LB: > { %s850_s22 = sadd.s32 4294967295, %s1081_s21   ;;  %p854_p0 = scmp.ge.s32.totalorder %s1081_s21, 1  ;;  %s1081_s21 = sphi %s1118_s21, %s16_s21  }
   0x2   : > { %p225_p1 = scmp.lt.s32.totalorder %s1081_s21, 5 }
   0x4   : > { %p226_p2 = pnand %p854_p0, %p225_p1 }
   0x5   : > { %v1033_v0 = vld [vmem:[%s1257_s1 + $0x80] sm:$0xff] (!%p226_p2)   ;;  %s855_s25 = sshll.u32 (!%p226_p2), %s850_s22, 2  ;;  %v1034_v1 = vld [vmem:[%s1257_s1 + $0x88] sm:$0xff] (!%p226_p2)   ;;  %v1035_v2 = vld [vmem:[%s1257_s1 + $0x90] sm:$0xff] (!%p226_p2)  }
   0x6   : > { %229 = sbr.rel (%p226_p2) target bundleno = 292 (0x124), region = 44  ;;  %972 = vmatprep.subr.bf16.mxu1 (!%p226_p2), %v1033_v0  ;;  %p262_p3 = scmp.lt.s32.totalorder (!%p226_p2), %s855_s25, 15  ;;  %v1037_v3 = vld [vmem:[%s1257_s1 + $0x40] sm:$0xff] (!%p226_p2)   ;;  %v1036_v5 = vld [vmem:[%s1257_s1 + $0x98] sm:$0xff] (!%p226_p2)   ;;  %v1040_v6 = vld [vmem:[%s1257_s1 + $0x48] sm:$0xff] (!%p226_p2)  }
   0x7   : > { %973 = vmatpush3.bf16.msra.mxu1 (!%p226_p2), %v1033_v0  ;;  %v1038_v4 = vld [vmem:[%s1257_s1] sm:$0xff] (!%p226_p2)   ;;  %924 = vmatprep.subr.bf16.mxu0 (!%p226_p2), %v1037_v3  ;;  %v1041_v7 = vld [vmem:[%s1257_s1 + $0x8] sm:$0xff] (!%p226_p2)   ;;  %v1043_v8 = vld [vmem:[%s1257_s1 + $0x50] sm:$0xff] (!%p226_p2)  }
   0x8   : > { %974 = vmatprep.subr.bf16.mxu1 (!%p226_p2), %v1034_v1  ;;  %925 = vmatpush3.bf16.msra.mxu0 (!%p226_p2), %v1038_v4  ;;  %v1044_v9 = vld [vmem:[%s1257_s1 + $0x10] sm:$0xff] (!%p226_p2)   ;;  %v1039_v10 = vld [vmem:[%s1257_s1 + $0xa0] sm:$0xff] (!%p226_p2)   ;;  %v1046_v11 = vld [vmem:[%s1257_s1 + $0x58] sm:$0xff] (!%p226_p2)  }
   0x9   : > { %926 = vmatprep.subr.bf16.mxu0 (!%p226_p2), %v1040_v6  ;;  %v1042_v12 = vld [vmem:[%s1257_s1 + $0xa8] sm:$0xff] (!%p226_p2)   ;;  %v1047_v13 = vld [vmem:[%s1257_s1 + $0x18] sm:$0xff] (!%p226_p2)   ;;  %v1049_v14 = vld [vmem:[%s1257_s1 + $0x60] sm:$0xff] (!%p226_p2)  }
   0xa   : > { %v1050_v16 = vld [vmem:[%s1257_s1 + $0x20] sm:$0xff] (!%p226_p2)   ;;  %v1045_v17 = vld [vmem:[%s1257_s1 + $0xb0] sm:$0xff] (!%p226_p2)   ;;  %v1054_v18 = vld [vmem:[%s1257_s1 + $0x68] sm:$0xff] (!%p226_p2)  }
   0xb   : > { %975 = vmatpush3.bf16.msra.mxu1 (!%p226_p2), %v1034_v1  ;;  %v1048_v19 = vld [vmem:[%s1257_s1 + $0xb8] sm:$0xff] (!%p226_p2)   ;;  %v1055_v20 = vld [vmem:[%s1257_s1 + $0x28] sm:$0xff] (!%p226_p2)   ;;  %v1057_v21 = vld [vmem:[%s1257_s1 + $0x70] sm:$0xff] (!%p226_p2)  }
   0xc   : > { %976 = vmatprep.subr.bf16.mxu1 (!%p226_p2), %v1035_v2  ;;  %927 = vmatpush3.bf16.msra.mxu0 (!%p226_p2), %v1041_v7  ;;  %v1052_v22 = vld [vmem:[%s1260_s4] sm:$0xff] (!%p226_p2)   ;;  %v1058_v23 = vld [vmem:[%s1257_s1 + $0x30] sm:$0xff] (!%p226_p2)   ;;  %v1060_v24 = vld [vmem:[%s1257_s1 + $0x78] sm:$0xff] (!%p226_p2)  }
   0xd   : > { %s1264_s25 = smov (!%p262_p3, %s855_s25), 15  ;;  %928 = vmatprep.subr.bf16.mxu0 %v1043_v8  ;;  %v1061_v26 = vld [vmem:[%s1257_s1 + $0x38] sm:$0xff]   ;;  %v1056_v28 = vld [vmem:[%s1260_s4 + $0x8] sm:$0xff]   ;;  %v1059_v31 = vld [vmem:[%s1260_s4 + $0x10] sm:$0xff]  }
   0xe   : > { %s1024_s20 = smul.u32 12, %s1264_s25  ;;  %s858_s11 = sshll.u32 %s1264_s25, 2  ;;  %v1062_v33 = vld [vmem:[%s1260_s4 + $0x18] sm:$0xff]   ;;  %v1066_v35 = vld [vmem:[%s1260_s4 + $0x20] sm:$0xff]   ;;  %v1067_v36 = vld [vmem:[%s1260_s4 + $0x28] sm:$0xff]  }
   0xf   : > { %977 = vmatpush3.bf16.msra.mxu1 %v1035_v2  ;;  %s272_s16 = scalar_lea.vmem %s1259_s3, %s858_s11  ;;  %v1071_v37 = vld [vmem:[%s1260_s4 + $0x30] sm:$0xff]   ;;  %v1072_v38 = vld [vmem:[%s1260_s4 + $0x38] sm:$0xff]   ;;  %v861_v52 = vld [vmem:[%s1258_s2] ss:$0 sm:$0xff]  ;;  %s278_s14 = scalar_lea.vmem %s1262_s6, %s858_s11 }
  0x10   : > { %978 = vmatprep.subr.bf16.mxu1 %v1036_v5  ;;  %929 = vmatpush3.bf16.msra.mxu0 %v1044_v9  ;;  %s1174_s9 = scalar_lea.vmem %s1256_s0, %s1024_s20  ;;  %v1073_v32 = vld [vmem:[%s272_s16] sm:$0xff]   ;;  %v1074_v39 = vld [vmem:[%s272_s16 + $0x8] sm:$0xff]  }
  0x11   : > { %930 = vmatprep.subr.bf16.mxu0 %v1046_v11  ;;  %v1051_v15 = vld [vmem:[%s1174_s9 + $0x8] ss:$12 sps:$4 sm:$0xff]   ;;  %v1053_v25 = vld [vmem:[%s1174_s9 + $0x20] ss:$12 sps:$4 sm:$0xff]   ;;  %v1065_v27 = vld [vmem:[%s1174_s9 + $0x4] ss:$12 sps:$4 sm:$0xff]  }
  0x12   : > { %988 = vmatprep.mubr.bf16.mxu1 %v1051_v15  ;;  %552 = vmatprep.mubr.bf16.mxu0 %v1065_v27  ;;  %v1063_v29 = vld [vmem:[%s1174_s9] ss:$12 sps:$4 sm:$0xff]   ;;  %v1068_v30 = vld [vmem:[%s1174_s9 + $0x1c] ss:$12 sps:$4 sm:$0xff]   ;;  %v1070_v34 = vld [vmem:[%s1174_s9 + $0x18] ss:$12 sps:$4 sm:$0xff]  }
  0x13   : > { %979 = vmatpush3.bf16.msra.mxu1 %v1036_v5  ;;  %v892_v56 = vld [vmem:[%s1261_s5] ss:$0 sm:$0xff] }
  0x14   : > { %980 = vmatprep.subr.bf16.mxu1 %v1039_v10  ;;  %931 = vmatpush3.bf16.msra.mxu0 %v1047_v13 }
  0x15   : > { %932 = vmatprep.subr.bf16.mxu0 %v1049_v14 }
  0x17   : > { %981 = vmatpush3.bf16.msra.mxu1 %v1039_v10 }
  0x18   : > { %982 = vmatprep.subr.bf16.mxu1 %v1042_v12  ;;  %933 = vmatpush3.bf16.msra.mxu0 %v1050_v16 }
  0x19   : > { %934 = vmatprep.subr.bf16.mxu0 %v1054_v18 }
  0x1b   : > { %983 = vmatpush3.bf16.msra.mxu1 %v1042_v12 }
  0x1c   : > { %984 = vmatprep.subr.bf16.mxu1 %v1045_v17  ;;  %935 = vmatpush3.bf16.msra.mxu0 %v1055_v20 }
  0x1d   : > { %936 = vmatprep.subr.bf16.mxu0 %v1057_v21 }
  0x1f   : > { %985 = vmatpush3.bf16.msra.mxu1 %v1045_v17 }
  0x20   : > { %986 = vmatprep.subr.bf16.mxu1 %v1048_v19  ;;  %937 = vmatpush3.bf16.msra.mxu0 %v1058_v23 }
  0x21   : > { %938 = vmatprep.subr.bf16.mxu0 %v1060_v24 }
  0x23   : > { %987 = vmatpush3.bf16.msra.mxu1 %v1048_v19 }
  0x24   : > { %992 = vmatprep.subr.bf16.mxu1 %v1052_v22  ;;  %939 = vmatpush3.bf16.msra.mxu0 %v1061_v26 }
  0x26   : > { %989 = vmatmul.mubr.bf16.vlgmr.msra.gmra.mrb[0].mxu1 %v1053_v25 }
  0x27   : > { %993 = vmatpush3.bf16.msra.mxu1 %v1052_v22  ;;  %553 = vmatmul.mubr.bf16.vlgmr.msra.gmra.mrb[0].mxu0 %v1063_v29 }
  0x28   : > { %994 = vmatprep.subr.bf16.mxu1 %v1056_v28  ;;  %560 = vmatprep.mubr.bf16.mxu0 %v1068_v30 }
  0x29   : > { %1008 = vmatprep.mubr.bf16.mxu1 %v1073_v32 }
  0x2b   : > { %995 = vmatpush3.bf16.msra.mxu1 %v1056_v28 }
  0x2c   : > { %996 = vmatprep.subr.bf16.mxu1 %v1059_v31 }
  0x2f   : > { %997 = vmatpush3.bf16.msra.mxu1 %v1059_v31  ;;  %561 = vmatmul.mubr.bf16.gmra.mrb[4].mxu0 %v1070_v34 }
  0x30   : > { %998 = vmatprep.subr.bf16.mxu1 %v1062_v33 }
  0x33   : > { %999 = vmatpush3.bf16.msra.mxu1 %v1062_v33 }
  0x34   : > { %1000 = vmatprep.subr.bf16.mxu1 %v1066_v35 }
  0x37   : > { %1001 = vmatpush3.bf16.msra.mxu1 %v1066_v35 }
  0x38   : > { %1002 = vmatprep.subr.bf16.mxu1 %v1067_v36 }
  0x3b   : > { %1003 = vmatpush3.bf16.msra.mxu1 %v1067_v36 }
  0x3c   : > { %1004 = vmatprep.subr.bf16.mxu1 %v1071_v37 }
  0x3f   : > { %1005 = vmatpush3.bf16.msra.mxu1 %v1071_v37 }
  0x40   : > { %1006 = vmatprep.subr.bf16.mxu1 %v1072_v38 }
  0x43   : > { %1007 = vmatpush3.bf16.msra.mxu1 %v1072_v38 }
  0x46   : > { %1009 = vmatmul.mubr.bf16.vlgmr.msra.gmra.mrb[0].mxu1 %v1074_v39 }
  0xfa   : > { %v940_v40 = vpop.f32.mrb[0].mxu0 }
  0xfb   : > { %v941_v41 = vpop.f32.mrb[1].mxu0 }
  0xfc   : > { %v942_v42 = vadd.f32 %v941_v41, %v940_v40  ;;  %v943_v43 = vpop.f32.mrb[2].mxu0 }
  0xfd   : > { %v944_v44 = vpop.f32.mrb[3].mxu0 }
  0xfe   : > { %v945_v45 = vadd.f32 %v944_v44, %v943_v43  ;;  %v555_v58 = vadd.f32 %v942_v42, %v861_v52 }
 0x100   : > { %v558_v54 = vadd.f32 %v945_v45, %v861_v52 }
 0x102   : > { %v946_v46 = vpop.f32.mrb[4].mxu0  ;;  %v1018_v0 = vadd.f32 %v892_v56, %v558_v54 }
 0x103   : > { %v947_v47 = vpop.f32.mrb[5].mxu0 }
 0x104   : > { %v948_v48 = vadd.f32 %v947_v47, %v946_v46  ;;  %v949_v49 = vpop.f32.mrb[6].mxu0 }
 0x105   : > { %v950_v50 = vpop.f32.mrb[7].mxu0 }
 0x106   : > { %v951_v51 = vadd.f32 %v950_v50, %v949_v49  ;;  %v563_v55 = vadd.f32 %v948_v48, %v861_v52 }
 0x108   : > { %v566_v53 = vadd.f32 %v951_v51, %v861_v52 }
 0x10a   : > { %v1016_v61 = vadd.f32 %v892_v56, %v566_v53 }
 0x119   : > { %v1010_v57 = vpop.f32.mrb[0].mxu1 }
 0x11a   : > { %v1012_v59 = vadd.f32 %v1010_v57, %v563_v55  ;;  %v739_v60 = vpop.f32.mrb[1].mxu1 }
 0x11b   : > { %v1014_v62 = vadd.f32 %v739_v60, %v555_v58  ;;  %v1011_v63 = vpop.f32.mrb[2].mxu1 }
 0x11c   : > { %v1013_v1 = vadd.f32 %v1012_v59, %v892_v56  ;;  %v1017_v2 = vadd.f32 %v1016_v61, %v1011_v63  ;;  %v742_v3 = vpop.f32.mrb[3].mxu1 }
 0x11d   : > { %v1015_v4 = vadd.f32 %v1014_v62, %v892_v56  ;;  %v1019_v5 = vadd.f32 %v1018_v0, %v742_v3 }
 0x11e   : > { %v760_v6 = vmax.f32 %v1013_v1, 0.0  ;;  %v761_v7 = vmax.f32 %v1017_v2, 0.0 }
 0x11f   : > { %v758_v8 = vmax.f32 %v1015_v4, 0.0  ;;  %v759_v9 = vmax.f32 %v1019_v5, 0.0 }
 0x120   : > { %v921_v10 = vpack.c.bf16 %v761_v7, %v760_v6 }
 0x121   : > { %v916_v11 = vpack.c.bf16 %v759_v9, %v758_v8 }
 0x122   : > { %923 = vst [vmem:[%s278_s14 + $0x8] sm:$0xff] %v921_v10  }
 0x123   : > { %917 = vst [vmem:[%s278_s14] sm:$0xff] %v916_v11  }
 0x124 PF: > { %s16_s21 = sadd.s32 1, %s1081_s21  }
 0x125   : > { %p13_p4 = scmp.ge.s32.totalorder %s16_s21, 6  }
 0x127   :  { %15 = sbr.rel (!%p13_p4) target bundleno = 1 (0x1), region = 77 }

// kernel: _lambda_.29
= control target key start
LH: loop header
LB: loop body
LE: loop exit
PB: predicated region body
PF: predicated region fallthrough
CT: control target
= control target key end

     0   :  { %s872_s15 = smov 0   ;;  %s975_s0 = inlined_call_operand.vmem [shape: bf16[128,384], index: 0, kind: input, shape index: {}]   ;;  %s976_s1 = inlined_call_operand.vmem [shape: bf16[384,128], index: 1, kind: input, shape index: {}]   ;;  %s977_s2 = inlined_call_operand.vmem [shape: f32[1,128], index: 2, kind: input, shape index: {}]   ;;  %s978_s3 = inlined_call_operand.vmem [shape: bf16[128,128], index: 3, kind: input, shape index: {}]   ;;  %s979_s4 = inlined_call_operand.vmem [shape: bf16[128,128], index: 4, kind: output, shape index: {}]  }
   0x1 LB: > { %s668_s16 = sadd.s32 4294967295, %s845_s15   ;;  %p672_p0 = scmp.ge.s32.totalorder %s845_s15, 1  ;;  %s845_s15 = sphi %s872_s15, %s14_s15  }
   0x2   : > { %p175_p1 = scmp.lt.s32.totalorder %s845_s15, 5 }
   0x4   : > { %p176_p2 = pnand %p672_p0, %p175_p1 }
   0x5   : > { %v807_v0 = vld [vmem:[%s976_s1 + $0x40] sm:$0xff] (!%p176_p2)   ;;  %v809_v2 = vld [vmem:[%s976_s1 + $0x48] sm:$0xff] (!%p176_p2)   ;;  %v812_v5 = vld [vmem:[%s976_s1 + $0x50] sm:$0xff] (!%p176_p2)   ;;  %s673_s5 = sshll.u32 (!%p176_p2), %s668_s16, 2 }
   0x6   : > { %179 = sbr.rel (%p176_p2) target bundleno = 274 (0x112), region = 36  ;;  %v808_v1 = vld [vmem:[%s976_s1] sm:$0xff] (!%p176_p2)   ;;  %740 = vmatprep.subr.bf16.mxu0 (!%p176_p2), %v807_v0  ;;  %v811_v4 = vld [vmem:[%s976_s1 + $0x8] sm:$0xff] (!%p176_p2)   ;;  %v814_v7 = vld [vmem:[%s976_s1 + $0x10] sm:$0xff] (!%p176_p2)   ;;  %p208_p3 = scmp.lt.s32.totalorder (!%p176_p2), %s673_s5, 15 }
   0x7   : > { %741 = vmatpush3.bf16.msra.mxu0 (!%p176_p2), %v808_v1  ;;  %v810_v3 = vld [vmem:[%s976_s1 + $0x80] sm:$0xff] (!%p176_p2)   ;;  %v813_v6 = vld [vmem:[%s976_s1 + $0x88] sm:$0xff] (!%p176_p2)   ;;  %v815_v8 = vld [vmem:[%s976_s1 + $0x58] sm:$0xff] (!%p176_p2)  }
   0x8   : > { %742 = vmatprep.subr.bf16.mxu0 (!%p176_p2), %v809_v2  ;;  %778 = vmatprep.subr.bf16.mxu1 (!%p176_p2), %v810_v3  ;;  %v816_v9 = vld [vmem:[%s976_s1 + $0x90] sm:$0xff] (!%p176_p2)   ;;  %v817_v10 = vld [vmem:[%s976_s1 + $0x18] sm:$0xff] (!%p176_p2)   ;;  %v818_v11 = vld [vmem:[%s976_s1 + $0x60] sm:$0xff] (!%p176_p2)  }
   0x9   : > { %779 = vmatpush3.bf16.msra.mxu1 (!%p176_p2), %v810_v3  ;;  %v819_v12 = vld [vmem:[%s976_s1 + $0x98] sm:$0xff] (!%p176_p2)   ;;  %v820_v13 = vld [vmem:[%s976_s1 + $0x20] sm:$0xff] (!%p176_p2)   ;;  %v821_v15 = vld [vmem:[%s976_s1 + $0x68] sm:$0xff] (!%p176_p2)  }
   0xa   : > { %780 = vmatprep.subr.bf16.mxu1 (!%p176_p2), %v813_v6  ;;  %v822_v14 = vld [vmem:[%s976_s1 + $0xa0] sm:$0xff] (!%p176_p2)   ;;  %v823_v16 = vld [vmem:[%s976_s1 + $0x28] sm:$0xff] (!%p176_p2)   ;;  %v824_v18 = vld [vmem:[%s976_s1 + $0x70] sm:$0xff] (!%p176_p2)  }
   0xb   : > { %743 = vmatpush3.bf16.msra.mxu0 (!%p176_p2), %v811_v4  ;;  %v825_v17 = vld [vmem:[%s976_s1 + $0xa8] sm:$0xff] (!%p176_p2)   ;;  %v826_v19 = vld [vmem:[%s976_s1 + $0x30] sm:$0xff] (!%p176_p2)   ;;  %v827_v20 = vld [vmem:[%s976_s1 + $0x78] sm:$0xff] (!%p176_p2)  }
   0xc   : > { %744 = vmatprep.subr.bf16.mxu0 (!%p176_p2), %v812_v5  ;;  %v828_v21 = vld [vmem:[%s976_s1 + $0xb0] sm:$0xff] (!%p176_p2)   ;;  %v829_v23 = vld [vmem:[%s976_s1 + $0x38] sm:$0xff] (!%p176_p2)   ;;  %v679_v32 = vld [vmem:[%s977_s2] ss:$0 sm:$0xff] (!%p176_p2) }
   0xd   : > { %781 = vmatpush3.bf16.msra.mxu1 %v813_v6  ;;  %s981_s5 = smov (!%p208_p3, %s673_s5), 15  ;;  %v833_v25 = vld [vmem:[%s976_s1 + $0xb8] sm:$0xff]  }
   0xe   : > { %782 = vmatprep.subr.bf16.mxu1 %v816_v9  ;;  %s798_s25 = smul.u32 12, %s981_s5  ;;  %s676_s21 = sshll.u32 %s981_s5, 2 }
   0xf   : > { %745 = vmatpush3.bf16.msra.mxu0 %v814_v7  ;;  %s218_s24 = scalar_lea.vmem %s978_s3, %s676_s21  ;;  %s224_s29 = scalar_lea.vmem %s979_s4, %s676_s21 }
  0x10   : > { %746 = vmatprep.subr.bf16.mxu0 %v815_v8  ;;  %s212_s11 = scalar_lea.vmem %s975_s0, %s798_s25  ;;  %v721_v33 = vld [vmem:[%s218_s24] sm:$0xff]   ;;  %v738_v47 = vld [vmem:[%s218_s24 + $0x8] sm:$0xff]  }
  0x11   : > { %783 = vmatpush3.bf16.msra.mxu1 %v816_v9  ;;  %v832_v22 = vld [vmem:[%s212_s11 + $0x4] ss:$12 sps:$4 sm:$0xff]   ;;  %v834_v24 = vld [vmem:[%s212_s11 + $0x8] ss:$12 sps:$4 sm:$0xff]   ;;  %v830_v26 = vld [vmem:[%s212_s11] ss:$12 sps:$4 sm:$0xff]   ;;  %v722_v41 = vunpack.c.l.bf16 %v721_v33  ;;  %v723_v46 = vunpack.c.h.bf16 %v721_v33  ;;  %v726_v55 = vunpack.c.l.bf16 %v738_v47  ;;  %v727_v0 = vunpack.c.h.bf16 %v738_v47 }
  0x12   : > { %784 = vmatprep.subr.bf16.mxu1 %v819_v12  ;;  %498 = vmatprep.mubr.bf16.mxu0 %v832_v22  ;;  %v836_v27 = vld [vmem:[%s212_s11 + $0x1c] ss:$12 sps:$4 sm:$0xff]   ;;  %v835_v28 = vld [vmem:[%s212_s11 + $0x20] ss:$12 sps:$4 sm:$0xff]   ;;  %v838_v29 = vld [vmem:[%s212_s11 + $0x18] ss:$12 sps:$4 sm:$0xff]  }
  0x13   : > { %747 = vmatpush3.bf16.msra.mxu0 %v817_v10  ;;  %794 = vmatprep.mubr.bf16.mxu1 %v834_v24 }
  0x14   : > { %748 = vmatprep.subr.bf16.mxu0 %v818_v11 }
  0x15   : > { %785 = vmatpush3.bf16.msra.mxu1 %v819_v12 }
  0x16   : > { %786 = vmatprep.subr.bf16.mxu1 %v822_v14 }
  0x17   : > { %749 = vmatpush3.bf16.msra.mxu0 %v820_v13 }
  0x18   : > { %750 = vmatprep.subr.bf16.mxu0 %v821_v15 }
  0x19   : > { %787 = vmatpush3.bf16.msra.mxu1 %v822_v14 }
  0x1a   : > { %788 = vmatprep.subr.bf16.mxu1 %v825_v17 }
  0x1b   : > { %751 = vmatpush3.bf16.msra.mxu0 %v823_v16 }
  0x1c   : > { %752 = vmatprep.subr.bf16.mxu0 %v824_v18 }
  0x1d   : > { %789 = vmatpush3.bf16.msra.mxu1 %v825_v17 }
  0x1e   : > { %790 = vmatprep.subr.bf16.mxu1 %v828_v21 }
  0x1f   : > { %753 = vmatpush3.bf16.msra.mxu0 %v826_v19 }
  0x20   : > { %754 = vmatprep.subr.bf16.mxu0 %v827_v20 }
  0x21   : > { %791 = vmatpush3.bf16.msra.mxu1 %v828_v21 }
  0x22   : > { %792 = vmatprep.subr.bf16.mxu1 %v833_v25 }
  0x23   : > { %755 = vmatpush3.bf16.msra.mxu0 %v829_v23 }
  0x25   : > { %793 = vmatpush3.bf16.msra.mxu1 %v833_v25 }
  0x26   : > { %499 = vmatmul.mubr.bf16.vlgmr.msra.gmra.mrb[0].mxu0 %v830_v26 }
  0x27   : > { %506 = vmatprep.mubr.bf16.mxu0 %v836_v27 }
  0x28   : > { %795 = vmatmul.mubr.bf16.vlgmr.msra.gmra.mrb[0].mxu1 %v835_v28 }
  0x2e   : > { %507 = vmatmul.mubr.bf16.gmra.mrb[4].mxu0 %v838_v29 }
  0xf9   : > { %v756_v30 = vpop.f32.mrb[0].mxu0 }
  0xfa   : > { %v757_v31 = vpop.f32.mrb[1].mxu0 }
  0xfb   : > { %v758_v34 = vadd.f32 %v757_v31, %v756_v30  ;;  %v759_v35 = vpop.f32.mrb[2].mxu0  ;;  %v796_v37 = vpop.f32.mrb[0].mxu1 }
  0xfc   : > { %v760_v36 = vpop.f32.mrb[3].mxu0  ;;  %v549_v40 = vpop.f32.mrb[1].mxu1 }
  0xfd   : > { %v761_v38 = vadd.f32 %v760_v36, %v759_v35  ;;  %v501_v39 = vadd.f32 %v758_v34, %v679_v32  ;;  %v797_v42 = vpop.f32.mrb[2].mxu1 }
  0xfe   : > { %v552_v45 = vpop.f32.mrb[3].mxu1 }
  0xff   : > { %v550_v43 = vadd.f32 %v549_v40, %v501_v39  ;;  %v504_v44 = vadd.f32 %v761_v38, %v679_v32 }
 0x101   : > { %v572_v48 = vadd.f32 %v722_v41, %v550_v43  ;;  %v553_v49 = vadd.f32 %v552_v45, %v504_v44  ;;  %v762_v50 = vpop.f32.mrb[4].mxu0 }
 0x102   : > { %v763_v51 = vpop.f32.mrb[5].mxu0 }
 0x103   : > { %v573_v52 = vadd.f32 %v723_v46, %v553_v49  ;;  %v764_v53 = vadd.f32 %v763_v51, %v762_v50  ;;  %v765_v54 = vpop.f32.mrb[6].mxu0  ;;  %v576_v57 = vmax.f32 %v572_v48, 0.0 }
 0x104   : > { %v766_v56 = vpop.f32.mrb[7].mxu0 }
 0x105   : > { %v577_v58 = vmax.f32 %v573_v52, 0.0  ;;  %v509_v59 = vadd.f32 %v764_v53, %v679_v32  ;;  %v767_v60 = vadd.f32 %v766_v56, %v765_v54 }
 0x107   : > { %v731_v61 = vpack.c.bf16 %v577_v58, %v576_v57  ;;  %v558_v62 = vadd.f32 %v796_v37, %v509_v59  ;;  %v512_v63 = vadd.f32 %v767_v60, %v679_v32 }
 0x109   : > { %732 = vst [vmem:[%s224_s29] sm:$0xff] %v731_v61   ;;  %v574_v1 = vadd.f32 %v726_v55, %v558_v62  ;;  %v561_v2 = vadd.f32 %v797_v42, %v512_v63 }
 0x10b   : > { %v575_v3 = vadd.f32 %v727_v0, %v561_v2  ;;  %v578_v4 = vmax.f32 %v574_v1, 0.0 }
 0x10d   : > { %v579_v5 = vmax.f32 %v575_v3, 0.0 }
 0x10f   : > { %v736_v6 = vpack.c.bf16 %v579_v5, %v578_v4 }
 0x111   : > { %739 = vst [vmem:[%s224_s29 + $0x8] sm:$0xff] %v736_v6  }
 0x112 PF: > { %s14_s15 = sadd.s32 1, %s845_s15  }
 0x113   : > { %p11_p4 = scmp.ge.s32.totalorder %s14_s15, 6  }
 0x115   :  { %13 = sbr.rel (!%p11_p4) target bundleno = 1 (0x1), region = 69 }

// kernel: _lambda_.30
= control target key start
LH: loop header
LB: loop body
LE: loop exit
PB: predicated region body
PF: predicated region fallthrough
CT: control target
= control target key end

     0   :  { %s715_s12 = smov 0   ;;  %s811_s0 = inlined_call_operand.vmem [shape: bf16[32,384], index: 0, kind: input, shape index: {}]   ;;  %s812_s1 = inlined_call_operand.vmem [shape: bf16[384,128], index: 1, kind: input, shape index: {}]   ;;  %s813_s2 = inlined_call_operand.vmem [shape: f32[1,128], index: 2, kind: input, shape index: {}]   ;;  %s814_s3 = inlined_call_operand.vmem [shape: bf16[32,128], index: 3, kind: output, shape index: {}]  }
   0x1 LB: > { %s547_s13 = sadd.s32 4294967295, %s691_s12   ;;  %p551_p0 = scmp.ge.s32.totalorder %s691_s12, 1  ;;  %s691_s12 = sphi %s715_s12, %s13_s12  }
   0x2   : > { %p139_p1 = scmp.lt.s32.totalorder %s691_s12, 3 }
   0x4   : > { %p140_p2 = pnand %p551_p0, %p139_p1 }
   0x5   : > { %v657_v0 = vld [vmem:[%s812_s1 + $0x40] sm:$0xff] (!%p140_p2)   ;;  %v693_v2 = vmov (!%p140_p2), 0.0   ;;  %v660_v4 = vld [vmem:[%s812_s1 + $0x48] sm:$0xff] (!%p140_p2)   ;;  %vm694_vm0 = vmmov (!%p140_p2), 0   ;;  %v663_v7 = vld [vmem:[%s812_s1 + $0x50] sm:$0xff] (!%p140_p2)   ;;  %s552_s28 = sshll.u32 (!%p140_p2), %s547_s13, 1 }
   0x6   : > { %143 = sbr.rel (%p140_p2) target bundleno = 264 (0x108), region = 32  ;;  %v658_v1 = vld [vmem:[%s812_s1] sm:$0xff] (!%p140_p2)   ;;  %626 = vmatprep.subr.bf16.mxu1 (!%p140_p2), %v693_v2  ;;  %595 = vmatprep.subr.bf16.mxu0 (!%p140_p2), %v657_v0  ;;  %v661_v5 = vld [vmem:[%s812_s1 + $0x8] sm:$0xff] (!%p140_p2)   ;;  %v664_v8 = vld [vmem:[%s812_s1 + $0x10] sm:$0xff] (!%p140_p2)   ;;  %p165_p3 = scmp.lt.s32.totalorder (!%p140_p2), %s552_s28, 3 }
   0x7   : > { %v659_v3 = vld [vmem:[%s812_s1 + $0x80] sm:$0xff] (!%p140_p2)   ;;  %596 = vmatpush3.bf16.msra.mxu0 (!%p140_p2), %v658_v1  ;;  %642 = vmatprep.mubr.msk.bf16.mxu1 (!%p140_p2), %vm694_vm0, %v693_v2  ;;  %v662_v6 = vld [vmem:[%s812_s1 + $0x88] sm:$0xff] (!%p140_p2)   ;;  %v665_v9 = vld [vmem:[%s812_s1 + $0x90] sm:$0xff] (!%p140_p2)  }
   0x8   : > { %627 = vmatpush3.bf16.msra.mxu1 (!%p140_p2), %v659_v3  ;;  %597 = vmatprep.subr.bf16.mxu0 (!%p140_p2), %v660_v4  ;;  %v666_v10 = vld [vmem:[%s812_s1 + $0x58] sm:$0xff] (!%p140_p2)   ;;  %v669_v13 = vld [vmem:[%s812_s1 + $0x60] sm:$0xff] (!%p140_p2)   ;;  %v672_v16 = vld [vmem:[%s812_s1 + $0x68] sm:$0xff] (!%p140_p2)  }
   0x9   : > { %628 = vmatprep.subr.bf16.mxu1 (!%p140_p2), %v693_v2  ;;  %v667_v11 = vld [vmem:[%s812_s1 + $0x18] sm:$0xff] (!%p140_p2)   ;;  %v670_v14 = vld [vmem:[%s812_s1 + $0x20] sm:$0xff] (!%p140_p2)   ;;  %v673_v17 = vld [vmem:[%s812_s1 + $0x28] sm:$0xff] (!%p140_p2)  }
   0xa   : > { %v668_v12 = vld [vmem:[%s812_s1 + $0x98] sm:$0xff] (!%p140_p2)   ;;  %v671_v15 = vld [vmem:[%s812_s1 + $0xa0] sm:$0xff] (!%p140_p2)   ;;  %v674_v18 = vld [vmem:[%s812_s1 + $0xa8] sm:$0xff] (!%p140_p2)  }
   0xb   : > { %598 = vmatpush3.bf16.msra.mxu0 (!%p140_p2), %v661_v5  ;;  %v675_v19 = vld [vmem:[%s812_s1 + $0x70] sm:$0xff] (!%p140_p2)   ;;  %v678_v22 = vld [vmem:[%s812_s1 + $0x78] sm:$0xff] (!%p140_p2)   ;;  %v556_v30 = vld [vmem:[%s813_s2] ss:$0 sm:$0xff] (!%p140_p2) }
   0xc   : > { %629 = vmatpush3.bf16.msra.mxu1 (!%p140_p2), %v662_v6  ;;  %599 = vmatprep.subr.bf16.mxu0 (!%p140_p2), %v663_v7  ;;  %v676_v20 = vld [vmem:[%s812_s1 + $0x30] sm:$0xff] (!%p140_p2)   ;;  %v679_v24 = vld [vmem:[%s812_s1 + $0x38] sm:$0xff] (!%p140_p2)  }
   0xd   : > { %630 = vmatprep.subr.bf16.mxu1 %v693_v2  ;;  %s816_s28 = smov (!%p165_p3, %s552_s28), 3  ;;  %v677_v21 = vld [vmem:[%s812_s1 + $0xb0] sm:$0xff]   ;;  %v683_v25 = vld [vmem:[%s812_s1 + $0xb8] sm:$0xff]  }
   0xe   : > { %s646_s21 = smul.u32 12, %s816_s28  ;;  %s555_s18 = sshll.u32 %s816_s28, 2 }
   0xf   : > { %600 = vmatpush3.bf16.msra.mxu0 %v664_v8 }
  0x10   : > { %631 = vmatpush3.bf16.msra.mxu1 %v665_v9  ;;  %601 = vmatprep.subr.bf16.mxu0 %v666_v10  ;;  %s169_s6 = scalar_lea.vmem %s811_s0, %s646_s21  ;;  %s175_s21 = scalar_lea.vmem %s814_s3, %s555_s18 }
  0x11   : > { %632 = vmatprep.subr.bf16.mxu1 %v693_v2  ;;  %v682_v23 = vld [vmem:[%s169_s6 + $0x4] ss:$12 sps:$4 sm:$0xff]   ;;  %v680_v26 = vld [vmem:[%s169_s6] ss:$12 sps:$4 sm:$0xff]   ;;  %v684_v27 = vld [vmem:[%s169_s6 + $0x8] ss:$12 sps:$4 sm:$0xff]  }
  0x12   : > { %429 = vmatprep.mubr.bf16.mxu0 %v682_v23 }
  0x13   : > { %602 = vmatpush3.bf16.msra.mxu0 %v667_v11 }
  0x14   : > { %633 = vmatpush3.bf16.msra.mxu1 %v668_v12  ;;  %603 = vmatprep.subr.bf16.mxu0 %v669_v13 }
  0x15   : > { %634 = vmatprep.subr.bf16.mxu1 %v693_v2 }
  0x17   : > { %604 = vmatpush3.bf16.msra.mxu0 %v670_v14 }
  0x18   : > { %635 = vmatpush3.bf16.msra.mxu1 %v671_v15  ;;  %605 = vmatprep.subr.bf16.mxu0 %v672_v16 }
  0x19   : > { %636 = vmatprep.subr.bf16.mxu1 %v693_v2 }
  0x1b   : > { %606 = vmatpush3.bf16.msra.mxu0 %v673_v17 }
  0x1c   : > { %637 = vmatpush3.bf16.msra.mxu1 %v674_v18  ;;  %607 = vmatprep.subr.bf16.mxu0 %v675_v19 }
  0x1d   : > { %638 = vmatprep.subr.bf16.mxu1 %v693_v2 }
  0x1f   : > { %608 = vmatpush3.bf16.msra.mxu0 %v676_v20 }
  0x20   : > { %639 = vmatpush3.bf16.msra.mxu1 %v677_v21  ;;  %609 = vmatprep.subr.bf16.mxu0 %v678_v22 }
  0x21   : > { %640 = vmatprep.subr.bf16.mxu1 %v693_v2 }
  0x23   : > { %610 = vmatpush3.bf16.msra.mxu0 %v679_v24 }
  0x24   : > { %641 = vmatpush3.bf16.msra.mxu1 %v683_v25 }
  0x26   : > { %430 = vmatmul.mubr.bf16.vlgmr.msra.gmra.mrb[0].mxu0 %v680_v26 }
  0x27   : > { %643 = vmatmul.mubr.bf16.vlgmr.msra.gmra.mrb[0].mxu1 %v684_v27 }
  0xf9   : > { %v611_v28 = vpop.f32.mrb[0].mxu0 }
  0xfa   : > { %v612_v29 = vpop.f32.mrb[1].mxu0  ;;  %v472_v31 = vpop.f32.mrb[0].mxu1 }
  0xfb   : > { %v613_v32 = vadd.f32 %v612_v29, %v611_v28  ;;  %v614_v33 = vpop.f32.mrb[2].mxu0  ;;  %v644_v34 = vpop.f32.mrb[1].mxu1 }
  0xfc   : > { %v615_v35 = vpop.f32.mrb[3].mxu0  ;;  %v475_v36 = vpop.f32.mrb[2].mxu1 }
  0xfd   : > { %v432_v37 = vadd.f32 %v613_v32, %v556_v30  ;;  %v616_v38 = vadd.f32 %v615_v35, %v614_v33  ;;  %v645_v39 = vpop.f32.mrb[3].mxu1 }
  0xff   : > { %v473_v40 = vadd.f32 %v472_v31, %v432_v37  ;;  %v435_v41 = vadd.f32 %v616_v38, %v556_v30 }
 0x101   : > { %v476_v42 = vadd.f32 %v475_v36, %v435_v41  ;;  %v479_v43 = vmax.f32 %v473_v40, 0.0 }
 0x103   : > { %v480_v44 = vmax.f32 %v476_v42, 0.0 }
 0x105   : > { %v593_v45 = vpack.c.bf16 %v480_v44, %v479_v43 }
 0x107   : > { %594 = vst [vmem:[%s175_s21] sm:$0xff] %v593_v45  }
 0x108 PF: > { %s13_s12 = sadd.s32 1, %s691_s12  }
 0x109   : > { %p10_p4 = scmp.ge.s32.totalorder %s13_s12, 4  }
 0x10b   :  { %12 = sbr.rel (!%p10_p4) target bundleno = 1 (0x1), region = 62 }

// kernel: _lambda_.31
= control target key start
LH: loop header
LB: loop body
LE: loop exit
PB: predicated region body
PF: predicated region fallthrough
CT: control target
= control target key end

     0   :  { %s1265_s21 = smov 0   ;;  %s1470_s0 = inlined_call_operand.vmem [shape: bf16[32,640], index: 0, kind: input, shape index: {}]   ;;  %s1471_s1 = inlined_call_operand.vmem [shape: bf16[640,128], index: 1, kind: input, shape index: {}]   ;;  %s1472_s2 = inlined_call_operand.vmem [shape: f32[1,128], index: 2, kind: input, shape index: {}, may-alias: {2,5}]   ;;  %s1473_s3 = inlined_call_operand.vmem [shape: bf16[32,128], index: 3, kind: input, shape index: {}]   ;;  %s1474_s4 = inlined_call_operand.vmem [shape: bf16[128,128], index: 4, kind: input, shape index: {}]   ;;  %s1475_s5 = inlined_call_operand.vmem [shape: f32[1,128], index: 5, kind: input, shape index: {}, may-alias: {2,5}]   ;;  %s1476_s6 = inlined_call_operand.vmem [shape: bf16[32,128], index: 6, kind: output, shape index: {}]  }
   0x1 LB: > { %s965_s22 = sadd.s32 4294967295, %s1226_s21   ;;  %p969_p0 = scmp.ge.s32.totalorder %s1226_s21, 1  ;;  %s1226_s21 = sphi %s1265_s21, %s16_s21  }
   0x2   : > { %p225_p1 = scmp.lt.s32.totalorder %s1226_s21, 3 }
   0x4   : > { %p226_p2 = pnand %p969_p0, %p225_p1 }
   0x5   : > { %v1164_v0 = vld [vmem:[%s1471_s1 + $0x40] sm:$0xff] (!%p226_p2)   ;;  %v1228_v1 = vmov (!%p226_p2), 0.0   ;;  %v1167_v4 = vld [vmem:[%s1471_s1 + $0x48] sm:$0xff] (!%p226_p2)   ;;  %vm1229_vm0 = vmmov (!%p226_p2), 0   ;;  %v1170_v7 = vld [vmem:[%s1471_s1 + $0x50] sm:$0xff] (!%p226_p2)   ;;  %s970_s15 = sshll.u32 (!%p226_p2), %s965_s22, 1 }
   0x6   : > { %229 = sbr.rel (%p226_p2) target bundleno = 299 (0x12b), region = 44  ;;  %1105 = vmatprep.subr.bf16.mxu0 (!%p226_p2), %v1228_v1  ;;  %v1165_v2 = vld [vmem:[%s1471_s1 + $0x100] sm:$0xff] (!%p226_p2)   ;;  %1043 = vmatprep.subr.bf16.mxu1 (!%p226_p2), %v1164_v0  ;;  %v1168_v5 = vld [vmem:[%s1471_s1 + $0x108] sm:$0xff] (!%p226_p2)   ;;  %v1171_v8 = vld [vmem:[%s1471_s1 + $0x110] sm:$0xff] (!%p226_p2)   ;;  %p262_p3 = scmp.lt.s32.totalorder (!%p226_p2), %s970_s15, 3 }
   0x7   : > { %v1166_v3 = vld [vmem:[%s1471_s1] sm:$0xff] (!%p226_p2)   ;;  %1106 = vmatpush3.bf16.msra.mxu0 (!%p226_p2), %v1165_v2  ;;  %v1169_v6 = vld [vmem:[%s1471_s1 + $0x8] sm:$0xff] (!%p226_p2)   ;;  %1121 = vmatprep.mubr.msk.bf16.mxu0 (!%p226_p2), %vm1229_vm0, %v1228_v1  ;;  %v1172_v9 = vld [vmem:[%s1471_s1 + $0x10] sm:$0xff] (!%p226_p2)  }
   0x8   : > { %1044 = vmatpush3.bf16.msra.mxu1 (!%p226_p2), %v1166_v3  ;;  %1107 = vmatprep.subr.bf16.mxu0 (!%p226_p2), %v1228_v1  ;;  %v1173_v10 = vld [vmem:[%s1471_s1 + $0x58] sm:$0xff] (!%p226_p2)   ;;  %v1176_v13 = vld [vmem:[%s1471_s1 + $0x60] sm:$0xff] (!%p226_p2)   ;;  %v1179_v16 = vld [vmem:[%s1471_s1 + $0x68] sm:$0xff] (!%p226_p2)  }
   0x9   : > { %1045 = vmatprep.subr.bf16.mxu1 (!%p226_p2), %v1167_v4  ;;  %v1174_v11 = vld [vmem:[%s1471_s1 + $0x118] sm:$0xff] (!%p226_p2)   ;;  %v1177_v14 = vld [vmem:[%s1471_s1 + $0x120] sm:$0xff] (!%p226_p2)   ;;  %v1180_v17 = vld [vmem:[%s1471_s1 + $0x128] sm:$0xff] (!%p226_p2)  }
   0xa   : > { %v1175_v12 = vld [vmem:[%s1471_s1 + $0x18] sm:$0xff] (!%p226_p2)   ;;  %v1178_v15 = vld [vmem:[%s1471_s1 + $0x20] sm:$0xff] (!%p226_p2)   ;;  %v1181_v18 = vld [vmem:[%s1471_s1 + $0x28] sm:$0xff] (!%p226_p2)  }
   0xb   : > { %1108 = vmatpush3.bf16.msra.mxu0 (!%p226_p2), %v1168_v5  ;;  %v1182_v19 = vld [vmem:[%s1471_s1 + $0x70] sm:$0xff] (!%p226_p2)   ;;  %v1185_v22 = vld [vmem:[%s1471_s1 + $0x78] sm:$0xff] (!%p226_p2)   ;;  %v1191_v27 = vld [vmem:[%s1471_s1 + $0xc0] sm:$0xff] (!%p226_p2)  }
   0xc   : > { %1046 = vmatpush3.bf16.msra.mxu1 (!%p226_p2), %v1169_v6  ;;  %1109 = vmatprep.subr.bf16.mxu0 (!%p226_p2), %v1228_v1  ;;  %v1183_v20 = vld [vmem:[%s1471_s1 + $0x130] sm:$0xff] (!%p226_p2)   ;;  %v1186_v24 = vld [vmem:[%s1471_s1 + $0x138] sm:$0xff] (!%p226_p2)   ;;  %v1193_v29 = vld [vmem:[%s1474_s4] sm:$0xff] (!%p226_p2)  }
   0xd   : > { %1047 = vmatprep.subr.bf16.mxu1 %v1170_v7  ;;  %s1478_s15 = smov (!%p262_p3, %s970_s15), 3  ;;  %v1184_v21 = vld [vmem:[%s1471_s1 + $0x30] sm:$0xff]   ;;  %v1187_v25 = vld [vmem:[%s1471_s1 + $0x38] sm:$0xff]   ;;  %v1194_v30 = vld [vmem:[%s1471_s1 + $0x80] sm:$0xff]  }
   0xe   : > { %s1153_s9 = smul.u32 20, %s1478_s15  ;;  %v1195_v31 = vld [vmem:[%s1471_s1 + $0xc8] sm:$0xff]   ;;  %v1198_v34 = vld [vmem:[%s1471_s1 + $0xd0] sm:$0xff]   ;;  %v1201_v37 = vld [vmem:[%s1471_s1 + $0xd8] sm:$0xff]   ;;  %s973_s14 = sshll.u32 %s1478_s15, 2 }
   0xf   : > { %1110 = vmatpush3.bf16.msra.mxu0 %v1171_v8  ;;  %v1196_v32 = vld [vmem:[%s1474_s4 + $0x8] sm:$0xff]   ;;  %v1199_v35 = vld [vmem:[%s1474_s4 + $0x10] sm:$0xff]   ;;  %v1202_v38 = vld [vmem:[%s1474_s4 + $0x18] sm:$0xff]   ;;  %s272_s24 = scalar_lea.vmem %s1473_s3, %s973_s14  ;;  %s278_s26 = scalar_lea.vmem %s1476_s6, %s973_s14 }
  0x10   : > { %1048 = vmatpush3.bf16.msra.mxu1 %v1172_v9  ;;  %1111 = vmatprep.subr.bf16.mxu0 %v1228_v1  ;;  %s1347_s23 = scalar_lea.vmem %s1470_s0, %s1153_s9  ;;  %v1197_v33 = vld [vmem:[%s1471_s1 + $0x88] sm:$0xff]   ;;  %v1200_v36 = vld [vmem:[%s1471_s1 + $0x90] sm:$0xff]   ;;  %v1203_v39 = vld [vmem:[%s1471_s1 + $0x98] sm:$0xff]  }
  0x11   : > { %1049 = vmatprep.subr.bf16.mxu1 %v1173_v10  ;;  %v1190_v23 = vld [vmem:[%s1347_s23 + $0x4] ss:$20 sps:$4 sm:$0xff]   ;;  %v1188_v26 = vld [vmem:[%s1347_s23] ss:$20 sps:$4 sm:$0xff]   ;;  %v1207_v43 = vld [vmem:[%s1471_s1 + $0xe8] sm:$0xff]  }
  0x12   : > { %672 = vmatprep.mubr.bf16.mxu1 %v1190_v23  ;;  %v1192_v28 = vld [vmem:[%s1347_s23 + $0x10] ss:$20 sps:$4 sm:$0xff]   ;;  %v1208_v44 = vld [vmem:[%s1474_s4 + $0x28] sm:$0xff]   ;;  %v1213_v50 = vld [vmem:[%s1471_s1 + $0xf8] sm:$0xff]  }
  0x13   : > { %1112 = vmatpush3.bf16.msra.mxu0 %v1174_v11  ;;  %v1204_v40 = vld [vmem:[%s1471_s1 + $0xe0] sm:$0xff]   ;;  %v1209_v46 = vld [vmem:[%s1471_s1 + $0xa8] sm:$0xff]   ;;  %v1210_v47 = vld [vmem:[%s1471_s1 + $0xf0] sm:$0xff]  }
  0x14   : > { %1050 = vmatpush3.bf16.msra.mxu1 %v1175_v12  ;;  %1113 = vmatprep.subr.bf16.mxu0 %v1228_v1  ;;  %v1205_v41 = vld [vmem:[%s1474_s4 + $0x20] sm:$0xff]   ;;  %v1211_v48 = vld [vmem:[%s1474_s4 + $0x30] sm:$0xff]   ;;  %v1214_v51 = vld [vmem:[%s1474_s4 + $0x38] sm:$0xff]  }
  0x15   : > { %1051 = vmatprep.subr.bf16.mxu1 %v1176_v13  ;;  %v1206_v42 = vld [vmem:[%s1471_s1 + $0xa0] sm:$0xff]   ;;  %v1212_v49 = vld [vmem:[%s1471_s1 + $0xb0] sm:$0xff]   ;;  %v1215_v52 = vld [vmem:[%s1471_s1 + $0xb8] sm:$0xff]  }
  0x16   : > { %v1218_v45 = vld [vmem:[%s1347_s23 + $0xc] ss:$20 sps:$4 sm:$0xff]   ;;  %v1216_v54 = vld [vmem:[%s1347_s23 + $0x8] ss:$20 sps:$4 sm:$0xff]  }
  0x17   : > { %1114 = vmatpush3.bf16.msra.mxu0 %v1177_v14  ;;  %v1219_v53 = vld [vmem:[%s272_s24] sm:$0xff]  }
  0x18   : > { %1052 = vmatpush3.bf16.msra.mxu1 %v1178_v15  ;;  %1115 = vmatprep.subr.bf16.mxu0 %v1228_v1  ;;  %v976_v61 = vld [vmem:[%s1472_s2] ss:$0 sm:$0xff] }
  0x19   : > { %1053 = vmatprep.subr.bf16.mxu1 %v1179_v16  ;;  %v1022_v7 = vld [vmem:[%s1475_s5] ss:$0 sm:$0xff] }
  0x1b   : > { %1116 = vmatpush3.bf16.msra.mxu0 %v1180_v17 }
  0x1c   : > { %1054 = vmatpush3.bf16.msra.mxu1 %v1181_v18  ;;  %1117 = vmatprep.subr.bf16.mxu0 %v1228_v1 }
  0x1d   : > { %1055 = vmatprep.subr.bf16.mxu1 %v1182_v19 }
  0x1f   : > { %1118 = vmatpush3.bf16.msra.mxu0 %v1183_v20 }
  0x20   : > { %1056 = vmatpush3.bf16.msra.mxu1 %v1184_v21  ;;  %1119 = vmatprep.subr.bf16.mxu0 %v1228_v1 }
  0x21   : > { %1057 = vmatprep.subr.bf16.mxu1 %v1185_v22 }
  0x23   : > { %1120 = vmatpush3.bf16.msra.mxu0 %v1186_v24 }
  0x24   : > { %1058 = vmatpush3.bf16.msra.mxu1 %v1187_v25  ;;  %1125 = vmatprep.subr.bf16.mxu0 %v1228_v1 }
  0x25   : > { %1065 = vmatprep.subr.bf16.mxu1 %v1191_v27 }
  0x26   : > { %1122 = vmatmul.mubr.bf16.vlgmr.msra.gmra.mrb[0].mxu0 %v1192_v28 }
  0x27   : > { %673 = vmatmul.mubr.bf16.vlgmr.msra.gmra.mrb[0].mxu1 %v1188_v26  ;;  %1126 = vmatpush3.bf16.msra.mxu0 %v1193_v29 }
  0x28   : > { %1066 = vmatpush3.bf16.msra.mxu1 %v1194_v30  ;;  %1127 = vmatprep.subr.bf16.mxu0 %v1228_v1 }
  0x29   : > { %1067 = vmatprep.subr.bf16.mxu1 %v1195_v31  ;;  %1141 = vmatprep.mubr.msk.bf16.mxu0 %vm1229_vm0, %v1228_v1 }
  0x2a   : > { %713 = vmatprep.mubr.bf16.mxu1 %v1218_v45 }
  0x2b   : > { %1128 = vmatpush3.bf16.msra.mxu0 %v1196_v32 }
  0x2c   : > { %1068 = vmatpush3.bf16.msra.mxu1 %v1197_v33  ;;  %1129 = vmatprep.subr.bf16.mxu0 %v1228_v1 }
  0x2d   : > { %1069 = vmatprep.subr.bf16.mxu1 %v1198_v34 }
  0x2f   : > { %1130 = vmatpush3.bf16.msra.mxu0 %v1199_v35 }
  0x30   : > { %1070 = vmatpush3.bf16.msra.mxu1 %v1200_v36  ;;  %1131 = vmatprep.subr.bf16.mxu0 %v1228_v1 }
  0x31   : > { %1071 = vmatprep.subr.bf16.mxu1 %v1201_v37 }
  0x33   : > { %1132 = vmatpush3.bf16.msra.mxu0 %v1202_v38 }
  0x34   : > { %1072 = vmatpush3.bf16.msra.mxu1 %v1203_v39  ;;  %1133 = vmatprep.subr.bf16.mxu0 %v1228_v1 }
  0x35   : > { %1073 = vmatprep.subr.bf16.mxu1 %v1204_v40 }
  0x37   : > { %1134 = vmatpush3.bf16.msra.mxu0 %v1205_v41 }
  0x38   : > { %1074 = vmatpush3.bf16.msra.mxu1 %v1206_v42  ;;  %1135 = vmatprep.subr.bf16.mxu0 %v1228_v1 }
  0x39   : > { %1075 = vmatprep.subr.bf16.mxu1 %v1207_v43 }
  0x3b   : > { %1136 = vmatpush3.bf16.msra.mxu0 %v1208_v44 }
  0x3c   : > { %1076 = vmatpush3.bf16.msra.mxu1 %v1209_v46  ;;  %1137 = vmatprep.subr.bf16.mxu0 %v1228_v1 }
  0x3d   : > { %1077 = vmatprep.subr.bf16.mxu1 %v1210_v47 }
  0x3f   : > { %1138 = vmatpush3.bf16.msra.mxu0 %v1211_v48 }
  0x40   : > { %1078 = vmatpush3.bf16.msra.mxu1 %v1212_v49  ;;  %1139 = vmatprep.subr.bf16.mxu0 %v1228_v1 }
  0x41   : > { %1079 = vmatprep.subr.bf16.mxu1 %v1213_v50 }
  0x43   : > { %1140 = vmatpush3.bf16.msra.mxu0 %v1214_v51 }
  0x44   : > { %1080 = vmatpush3.bf16.msra.mxu1 %v1215_v52 }
  0x46   : > { %1142 = vmatmul.mubr.bf16.vlgmr.msra.gmra.mrb[0].mxu0 %v1219_v53 }
  0x47   : > { %714 = vmatmul.mubr.bf16.vlgmr.msra.gmra.mrb[4].mxu1 %v1216_v54 }
  0xfa   : > { %v1059_v55 = vpop.f32.mrb[0].mxu1 }
  0xfb   : > { %v1060_v56 = vpop.f32.mrb[1].mxu1 }
  0xfc   : > { %v1061_v57 = vadd.f32 %v1060_v56, %v1059_v55  ;;  %v1062_v58 = vpop.f32.mrb[2].mxu1 }
  0xfd   : > { %v1063_v59 = vpop.f32.mrb[3].mxu1 }
  0xfe   : > { %v1064_v60 = vadd.f32 %v1063_v59, %v1062_v58  ;;  %v675_v3 = vadd.f32 %v1061_v57, %v976_v61 }
 0x100   : > { %v678_v9 = vadd.f32 %v1064_v60, %v976_v61 }
 0x119   : > { %v876_v62 = vpop.f32.mrb[0].mxu0 }
 0x11a   : > { %v1081_v63 = vpop.f32.mrb[4].mxu1  ;;  %v1143_v0 = vpop.f32.mrb[1].mxu0 }
 0x11b   : > { %v1082_v1 = vpop.f32.mrb[5].mxu1  ;;  %v879_v2 = vpop.f32.mrb[2].mxu0 }
 0x11c   : > { %v1083_v4 = vadd.f32 %v1082_v1, %v1081_v63  ;;  %v1084_v5 = vpop.f32.mrb[6].mxu1  ;;  %v1144_v6 = vpop.f32.mrb[3].mxu0 }
 0x11d   : > { %v1085_v8 = vpop.f32.mrb[7].mxu1 }
 0x11e   : > { %v716_v10 = vadd.f32 %v1083_v4, %v675_v3  ;;  %v1086_v11 = vadd.f32 %v1085_v8, %v1084_v5 }
 0x120   : > { %v1145_v12 = vadd.f32 %v1022_v7, %v716_v10  ;;  %v719_v13 = vadd.f32 %v1086_v11, %v678_v9 }
 0x122   : > { %v1146_v14 = vadd.f32 %v1145_v12, %v876_v62  ;;  %v1147_v15 = vadd.f32 %v1022_v7, %v719_v13 }
 0x124   : > { %v1148_v16 = vadd.f32 %v1147_v15, %v879_v2  ;;  %v885_v17 = vmax.f32 %v1146_v14, 0.0 }
 0x126   : > { %v886_v18 = vmax.f32 %v1148_v16, 0.0 }
 0x128   : > { %v1041_v19 = vpack.c.bf16 %v886_v18, %v885_v17 }
 0x12a   : > { %1042 = vst [vmem:[%s278_s26] sm:$0xff] %v1041_v19  }
 0x12b PF: > { %s16_s21 = sadd.s32 1, %s1226_s21  }
 0x12c   : > { %p13_p4 = scmp.ge.s32.totalorder %s16_s21, 4  }
 0x12e   :  { %15 = sbr.rel (!%p13_p4) target bundleno = 1 (0x1), region = 77 }

// kernel: _lambda_.32
= control target key start
LH: loop header
LB: loop body
LE: loop exit
PB: predicated region body
PF: predicated region fallthrough
CT: control target
= control target key end

     0   :  { %s955_s12 = smov 0   ;;  %s1108_s0 = inlined_call_operand.vmem [shape: bf16[32,640], index: 0, kind: input, shape index: {}]   ;;  %s1109_s1 = inlined_call_operand.vmem [shape: bf16[640,128], index: 1, kind: input, shape index: {}]   ;;  %s1110_s2 = inlined_call_operand.vmem [shape: f32[1,128], index: 2, kind: input, shape index: {}]   ;;  %s1111_s3 = inlined_call_operand.vmem [shape: bf16[32,128], index: 3, kind: output, shape index: {}]  }
   0x1 LB: > { %s728_s13 = sadd.s32 4294967295, %s931_s12   ;;  %p732_p0 = scmp.ge.s32.totalorder %s931_s12, 1  ;;  %s931_s12 = sphi %s955_s12, %s13_s12  }
   0x2   : > { %p139_p1 = scmp.lt.s32.totalorder %s931_s12, 3 }
   0x4   : > { %p140_p2 = pnand %p732_p0, %p139_p1 }
   0x5   : > { %v878_v0 = vld [vmem:[%s1109_s1 + $0x40] sm:$0xff] (!%p140_p2)   ;;  %v882_v4 = vld [vmem:[%s1109_s1 + $0x48] sm:$0xff] (!%p140_p2)   ;;  %v886_v8 = vld [vmem:[%s1109_s1 + $0x50] sm:$0xff] (!%p140_p2)   ;;  %s733_s17 = sshll.u32 (!%p140_p2), %s728_s13, 1  ;;  %v933_v33 = vmov (!%p140_p2), 0.0   ;;  %vm934_vm0 = vmmov (!%p140_p2), 0  }
   0x6   : > { %143 = sbr.rel (%p140_p2) target bundleno = 291 (0x123), region = 32  ;;  %v879_v1 = vld [vmem:[%s1109_s1] sm:$0xff] (!%p140_p2)   ;;  %794 = vmatprep.subr.bf16.mxu0 (!%p140_p2), %v878_v0  ;;  %v883_v5 = vld [vmem:[%s1109_s1 + $0x8] sm:$0xff] (!%p140_p2)   ;;  %v887_v9 = vld [vmem:[%s1109_s1 + $0x10] sm:$0xff] (!%p140_p2)   ;;  %p165_p3 = scmp.lt.s32.totalorder (!%p140_p2), %s733_s17, 3 }
   0x7   : > { %v880_v2 = vld [vmem:[%s1109_s1 + $0xc0] sm:$0xff] (!%p140_p2)   ;;  %795 = vmatpush3.bf16.msra.mxu0 (!%p140_p2), %v879_v1  ;;  %v884_v6 = vld [vmem:[%s1109_s1 + $0xc8] sm:$0xff] (!%p140_p2)   ;;  %v888_v10 = vld [vmem:[%s1109_s1 + $0xd0] sm:$0xff] (!%p140_p2)  }
   0x8   : > { %v881_v3 = vld [vmem:[%s1109_s1 + $0x80] sm:$0xff] (!%p140_p2)   ;;  %816 = vmatprep.subr.bf16.mxu1 (!%p140_p2), %v880_v2  ;;  %796 = vmatprep.subr.bf16.mxu0 (!%p140_p2), %v882_v4  ;;  %v885_v7 = vld [vmem:[%s1109_s1 + $0x88] sm:$0xff] (!%p140_p2)   ;;  %v889_v11 = vld [vmem:[%s1109_s1 + $0x90] sm:$0xff] (!%p140_p2)  }
   0x9   : > { %817 = vmatpush3.bf16.msra.mxu1 (!%p140_p2), %v881_v3  ;;  %v890_v12 = vld [vmem:[%s1109_s1 + $0x58] sm:$0xff] (!%p140_p2)   ;;  %v894_v16 = vld [vmem:[%s1109_s1 + $0x60] sm:$0xff] (!%p140_p2)   ;;  %v898_v20 = vld [vmem:[%s1109_s1 + $0x68] sm:$0xff] (!%p140_p2)  }
   0xa   : > { %818 = vmatprep.subr.bf16.mxu1 (!%p140_p2), %v884_v6  ;;  %v891_v13 = vld [vmem:[%s1109_s1 + $0x18] sm:$0xff] (!%p140_p2)   ;;  %v895_v17 = vld [vmem:[%s1109_s1 + $0x20] sm:$0xff] (!%p140_p2)   ;;  %v899_v21 = vld [vmem:[%s1109_s1 + $0x28] sm:$0xff] (!%p140_p2)  }
   0xb   : > { %797 = vmatpush3.bf16.msra.mxu0 (!%p140_p2), %v883_v5  ;;  %v892_v14 = vld [vmem:[%s1109_s1 + $0xd8] sm:$0xff] (!%p140_p2)   ;;  %v896_v18 = vld [vmem:[%s1109_s1 + $0xe0] sm:$0xff] (!%p140_p2)   ;;  %v900_v22 = vld [vmem:[%s1109_s1 + $0xe8] sm:$0xff] (!%p140_p2)  }
   0xc   : > { %798 = vmatprep.subr.bf16.mxu0 (!%p140_p2), %v886_v8  ;;  %v893_v15 = vld [vmem:[%s1109_s1 + $0x98] sm:$0xff] (!%p140_p2)   ;;  %v897_v19 = vld [vmem:[%s1109_s1 + $0xa0] sm:$0xff] (!%p140_p2)   ;;  %v901_v23 = vld [vmem:[%s1109_s1 + $0xa8] sm:$0xff] (!%p140_p2)  }
   0xd   : > { %819 = vmatpush3.bf16.msra.mxu1 %v885_v7  ;;  %s1113_s17 = smov (!%p165_p3, %s733_s17), 3  ;;  %v902_v24 = vld [vmem:[%s1109_s1 + $0x70] sm:$0xff]   ;;  %v906_v28 = vld [vmem:[%s1109_s1 + $0x78] sm:$0xff]   ;;  %v916_v37 = vld [vmem:[%s1109_s1 + $0x100] sm:$0xff]  }
   0xe   : > { %820 = vmatprep.subr.bf16.mxu1 %v888_v10  ;;  %s867_s14 = smul.u32 20, %s1113_s17  ;;  %v903_v25 = vld [vmem:[%s1109_s1 + $0x30] sm:$0xff]   ;;  %v907_v29 = vld [vmem:[%s1109_s1 + $0x38] sm:$0xff]   ;;  %v917_v38 = vld [vmem:[%s1109_s1 + $0x108] sm:$0xff]  }
   0xf   : > { %799 = vmatpush3.bf16.msra.mxu0 %v887_v9  ;;  %v904_v26 = vld [vmem:[%s1109_s1 + $0xf0] sm:$0xff]   ;;  %v908_v30 = vld [vmem:[%s1109_s1 + $0xf8] sm:$0xff]   ;;  %v920_v41 = vld [vmem:[%s1109_s1 + $0x120] sm:$0xff]  }
  0x10   : > { %800 = vmatprep.subr.bf16.mxu0 %v890_v12  ;;  %v905_v27 = vld [vmem:[%s1109_s1 + $0xb0] sm:$0xff]   ;;  %s1058_s13 = scalar_lea.vmem %s1108_s0, %s867_s14  ;;  %v912_v34 = vld [vmem:[%s1109_s1 + $0xb8] sm:$0xff]   ;;  %v921_v42 = vld [vmem:[%s1109_s1 + $0x128] sm:$0xff]  }
  0x11   : > { %821 = vmatpush3.bf16.msra.mxu1 %v889_v11  ;;  %v909_v31 = vld [vmem:[%s1058_s13] ss:$20 sps:$4 sm:$0xff]   ;;  %v911_v32 = vld [vmem:[%s1058_s13 + $0x4] ss:$20 sps:$4 sm:$0xff]   ;;  %v913_v35 = vld [vmem:[%s1058_s13 + $0x8] ss:$20 sps:$4 sm:$0xff]  }
  0x12   : > { %822 = vmatprep.subr.bf16.mxu1 %v892_v14  ;;  %569 = vmatprep.mubr.bf16.mxu0 %v911_v32  ;;  %v915_v36 = vld [vmem:[%s1058_s13 + $0xc] ss:$20 sps:$4 sm:$0xff]   ;;  %v918_v39 = vld [vmem:[%s1109_s1 + $0x110] sm:$0xff]   ;;  %v919_v40 = vld [vmem:[%s1109_s1 + $0x118] sm:$0xff]  }
  0x13   : > { %801 = vmatpush3.bf16.msra.mxu0 %v891_v13  ;;  %610 = vmatprep.mubr.bf16.mxu1 %v915_v36  ;;  %v922_v43 = vld [vmem:[%s1109_s1 + $0x130] sm:$0xff]   ;;  %v923_v44 = vld [vmem:[%s1109_s1 + $0x138] sm:$0xff]   ;;  %v737_v47 = vld [vmem:[%s1110_s2] ss:$0 sm:$0xff] }
  0x14   : > { %802 = vmatprep.subr.bf16.mxu0 %v894_v16  ;;  %v924_v45 = vld [vmem:[%s1058_s13 + $0x10] ss:$20 sps:$4 sm:$0xff]   ;;  %s736_s13 = sshll.u32 %s1113_s17, 2 }
  0x15   : > { %823 = vmatpush3.bf16.msra.mxu1 %v893_v15  ;;  %s175_s28 = scalar_lea.vmem %s1111_s3, %s736_s13 }
  0x16   : > { %824 = vmatprep.subr.bf16.mxu1 %v896_v18 }
  0x17   : > { %803 = vmatpush3.bf16.msra.mxu0 %v895_v17 }
  0x18   : > { %804 = vmatprep.subr.bf16.mxu0 %v898_v20 }
  0x19   : > { %825 = vmatpush3.bf16.msra.mxu1 %v897_v19 }
  0x1a   : > { %826 = vmatprep.subr.bf16.mxu1 %v900_v22 }
  0x1b   : > { %805 = vmatpush3.bf16.msra.mxu0 %v899_v21 }
  0x1c   : > { %806 = vmatprep.subr.bf16.mxu0 %v902_v24 }
  0x1d   : > { %827 = vmatpush3.bf16.msra.mxu1 %v901_v23 }
  0x1e   : > { %828 = vmatprep.subr.bf16.mxu1 %v904_v26 }
  0x1f   : > { %807 = vmatpush3.bf16.msra.mxu0 %v903_v25 }
  0x20   : > { %808 = vmatprep.subr.bf16.mxu0 %v906_v28 }
  0x21   : > { %829 = vmatpush3.bf16.msra.mxu1 %v905_v27 }
  0x22   : > { %830 = vmatprep.subr.bf16.mxu1 %v908_v30 }
  0x23   : > { %809 = vmatpush3.bf16.msra.mxu0 %v907_v29 }
  0x24   : > { %847 = vmatprep.subr.bf16.mxu0 %v933_v33 }
  0x25   : > { %831 = vmatpush3.bf16.msra.mxu1 %v912_v34 }
  0x26   : > { %570 = vmatmul.mubr.bf16.vlgmr.msra.gmra.mrb[0].mxu0 %v909_v31 }
  0x27   : > { %863 = vmatprep.mubr.msk.bf16.mxu0 %vm934_vm0, %v933_v33  ;;  %848 = vmatpush3.bf16.msra.mxu0 %v916_v37 }
  0x28   : > { %611 = vmatmul.mubr.bf16.vlgmr.msra.gmra.mrb[0].mxu1 %v913_v35  ;;  %849 = vmatprep.subr.bf16.mxu0 %v933_v33 }
  0x2b   : > { %850 = vmatpush3.bf16.msra.mxu0 %v917_v38 }
  0x2c   : > { %851 = vmatprep.subr.bf16.mxu0 %v933_v33 }
  0x2f   : > { %852 = vmatpush3.bf16.msra.mxu0 %v918_v39 }
  0x30   : > { %853 = vmatprep.subr.bf16.mxu0 %v933_v33 }
  0x33   : > { %854 = vmatpush3.bf16.msra.mxu0 %v919_v40 }
  0x34   : > { %855 = vmatprep.subr.bf16.mxu0 %v933_v33 }
  0x37   : > { %856 = vmatpush3.bf16.msra.mxu0 %v920_v41 }
  0x38   : > { %857 = vmatprep.subr.bf16.mxu0 %v933_v33 }
  0x3b   : > { %858 = vmatpush3.bf16.msra.mxu0 %v921_v42 }
  0x3c   : > { %859 = vmatprep.subr.bf16.mxu0 %v933_v33 }
  0x3f   : > { %860 = vmatpush3.bf16.msra.mxu0 %v922_v43 }
  0x40   : > { %861 = vmatprep.subr.bf16.mxu0 %v933_v33 }
  0x43   : > { %862 = vmatpush3.bf16.msra.mxu0 %v923_v44 }
  0x46   : > { %864 = vmatmul.mubr.bf16.vlgmr.msra.gmra.mrb[4].mxu0 %v924_v45 }
  0xf9   : > { %v810_v46 = vpop.f32.mrb[0].mxu0 }
  0xfa   : > { %v811_v48 = vpop.f32.mrb[1].mxu0 }
  0xfb   : > { %v812_v49 = vadd.f32 %v811_v48, %v810_v46  ;;  %v813_v50 = vpop.f32.mrb[2].mxu0  ;;  %v832_v51 = vpop.f32.mrb[0].mxu1 }
  0xfc   : > { %v814_v52 = vpop.f32.mrb[3].mxu0  ;;  %v833_v55 = vpop.f32.mrb[1].mxu1 }
  0xfd   : > { %v572_v53 = vadd.f32 %v812_v49, %v737_v47  ;;  %v815_v54 = vadd.f32 %v814_v52, %v813_v50  ;;  %v834_v56 = vadd.f32 %v833_v55, %v832_v51  ;;  %v835_v57 = vpop.f32.mrb[2].mxu1 }
  0xfe   : > { %v836_v59 = vpop.f32.mrb[3].mxu1 }
  0xff   : > { %v575_v58 = vadd.f32 %v815_v54, %v737_v47  ;;  %v837_v60 = vadd.f32 %v836_v59, %v835_v57  ;;  %v613_v61 = vadd.f32 %v834_v56, %v572_v53 }
 0x101   : > { %v616_v62 = vadd.f32 %v837_v60, %v575_v58 }
 0x119   : > { %v653_v63 = vpop.f32.mrb[4].mxu0 }
 0x11a   : > { %v654_v0 = vadd.f32 %v653_v63, %v613_v61  ;;  %v865_v1 = vpop.f32.mrb[5].mxu0 }
 0x11b   : > { %v656_v2 = vpop.f32.mrb[6].mxu0 }
 0x11c   : > { %v657_v3 = vadd.f32 %v656_v2, %v616_v62  ;;  %v866_v4 = vpop.f32.mrb[7].mxu0  ;;  %v660_v5 = vmax.f32 %v654_v0, 0.0 }
 0x11e   : > { %v661_v6 = vmax.f32 %v657_v3, 0.0 }
 0x120   : > { %v792_v7 = vpack.c.bf16 %v661_v6, %v660_v5 }
 0x122   : > { %793 = vst [vmem:[%s175_s28] sm:$0xff] %v792_v7  }
 0x123 PF: > { %s13_s12 = sadd.s32 1, %s931_s12  }
 0x124   : > { %p10_p4 = scmp.ge.s32.totalorder %s13_s12, 4  }
 0x126   :  { %12 = sbr.rel (!%p10_p4) target bundleno = 1 (0x1), region = 62 }

// kernel: _lambda_.33
= control target key start
LH: loop header
LB: loop body
LE: loop exit
PB: predicated region body
PF: predicated region fallthrough
CT: control target
= control target key end

     0   :  { %s1297_s0 = inlined_call_operand.vmem [shape: bf16[32,640], index: 0, kind: input, shape index: {}]   ;;  %s1298_s1 = inlined_call_operand.vmem [shape: bf16[640,128], index: 1, kind: input, shape index: {}]   ;;  %s1299_s2 = inlined_call_operand.vmem [shape: f32[1,128], index: 2, kind: input, shape index: {}, may-alias: {2,6}]   ;;  %s1300_s3 = inlined_call_operand.vmem [shape: bf16[32,128], index: 3, kind: input, shape index: {}]   ;;  %s1301_s4 = inlined_call_operand.vmem [shape: bf16[2,32], index: 4, kind: input, shape index: {}]   ;;  %s1302_s5 = inlined_call_operand.vmem [shape: bf16[128,128], index: 5, kind: input, shape index: {}]   ;;  %s1303_s6 = inlined_call_operand.vmem [shape: f32[1,128], index: 6, kind: input, shape index: {}, may-alias: {2,6}]   ;;  %s1304_s7 = inlined_call_operand.hbm [shape: f32[2,128], index: 7, kind: output, shape index: {}]  }
   0x1   :  { %v955_v0 = vld [vmem:[%s1298_s1 + $0x40] sm:$0xff]   ;;  %v959_v4 = vld [vmem:[%s1298_s1 + $0x48] sm:$0xff]   ;;  %v963_v8 = vld [vmem:[%s1298_s1 + $0x50] sm:$0xff]  }
   0x2   :  { %v956_v1 = vld [vmem:[%s1298_s1] sm:$0xff]   ;;  %826 = vmatprep.subr.bf16.mxu0 %v955_v0  ;;  %v960_v5 = vld [vmem:[%s1298_s1 + $0x8] sm:$0xff]   ;;  %v964_v9 = vld [vmem:[%s1298_s1 + $0x10] sm:$0xff]  }
   0x3   :  { %v957_v2 = vld [vmem:[%s1298_s1 + $0xc0] sm:$0xff]   ;;  %827 = vmatpush3.bf16.msra.mxu0 %v956_v1  ;;  %v961_v6 = vld [vmem:[%s1298_s1 + $0xc8] sm:$0xff]   ;;  %v965_v10 = vld [vmem:[%s1298_s1 + $0xd0] sm:$0xff]  }
   0x4   :  { %v958_v3 = vld [vmem:[%s1298_s1 + $0x80] sm:$0xff]   ;;  %854 = vmatprep.subr.bf16.mxu1 %v957_v2  ;;  %828 = vmatprep.subr.bf16.mxu0 %v959_v4  ;;  %v962_v7 = vld [vmem:[%s1298_s1 + $0x88] sm:$0xff]   ;;  %v966_v11 = vld [vmem:[%s1298_s1 + $0x90] sm:$0xff]  }
   0x5   :  { %855 = vmatpush3.bf16.msra.mxu1 %v958_v3  ;;  %v967_v12 = vld [vmem:[%s1298_s1 + $0x58] sm:$0xff]   ;;  %v971_v16 = vld [vmem:[%s1298_s1 + $0x60] sm:$0xff]   ;;  %v975_v20 = vld [vmem:[%s1298_s1 + $0x68] sm:$0xff]  }
   0x6   :  { %856 = vmatprep.subr.bf16.mxu1 %v961_v6  ;;  %v968_v13 = vld [vmem:[%s1298_s1 + $0x18] sm:$0xff]   ;;  %v972_v17 = vld [vmem:[%s1298_s1 + $0x20] sm:$0xff]   ;;  %v976_v21 = vld [vmem:[%s1298_s1 + $0x28] sm:$0xff]  }
   0x7   :  { %829 = vmatpush3.bf16.msra.mxu0 %v960_v5  ;;  %v969_v14 = vld [vmem:[%s1298_s1 + $0xd8] sm:$0xff]   ;;  %v973_v18 = vld [vmem:[%s1298_s1 + $0xe0] sm:$0xff]   ;;  %v977_v22 = vld [vmem:[%s1298_s1 + $0xe8] sm:$0xff]  }
   0x8   :  { %830 = vmatprep.subr.bf16.mxu0 %v963_v8  ;;  %v970_v15 = vld [vmem:[%s1298_s1 + $0x98] sm:$0xff]   ;;  %v974_v19 = vld [vmem:[%s1298_s1 + $0xa0] sm:$0xff]   ;;  %v978_v23 = vld [vmem:[%s1298_s1 + $0xa8] sm:$0xff]  }
   0x9   :  { %857 = vmatpush3.bf16.msra.mxu1 %v962_v7  ;;  %v979_v24 = vld [vmem:[%s1298_s1 + $0x70] sm:$0xff]   ;;  %v983_v28 = vld [vmem:[%s1298_s1 + $0x78] sm:$0xff]   ;;  %v990_v34 = vld [vmem:[%s1298_s1 + $0x100] sm:$0xff]  }
   0xa   :  { %858 = vmatprep.subr.bf16.mxu1 %v965_v10  ;;  %v980_v25 = vld [vmem:[%s1298_s1 + $0x30] sm:$0xff]   ;;  %v984_v29 = vld [vmem:[%s1298_s1 + $0x38] sm:$0xff]   ;;  %v993_v36 = vld [vmem:[%s1297_s0 + $0xc] ss:$20 sps:$4 sm:$0xff]  }
   0xb   :  { %831 = vmatpush3.bf16.msra.mxu0 %v964_v9  ;;  %v981_v26 = vld [vmem:[%s1298_s1 + $0xf0] sm:$0xff]   ;;  %v985_v30 = vld [vmem:[%s1298_s1 + $0xf8] sm:$0xff]   ;;  %v994_v37 = vld [vmem:[%s1298_s1 + $0x108] sm:$0xff]   ;;  %500 = vmatprep.mubr.bf16.mxu1 %v993_v36 }
   0xc   :  { %832 = vmatprep.subr.bf16.mxu0 %v967_v12  ;;  %v982_v27 = vld [vmem:[%s1298_s1 + $0xb0] sm:$0xff]   ;;  %v988_v32 = vld [vmem:[%s1297_s0 + $0x4] ss:$20 sps:$4 sm:$0xff]   ;;  %v991_v35 = vld [vmem:[%s1297_s0 + $0x8] ss:$20 sps:$4 sm:$0xff]  }
   0xd   :  { %859 = vmatpush3.bf16.msra.mxu1 %v966_v11  ;;  %v986_v31 = vld [vmem:[%s1297_s0] ss:$20 sps:$4 sm:$0xff]   ;;  %v989_v33 = vld [vmem:[%s1298_s1 + $0xb8] sm:$0xff]   ;;  %451 = vmatprep.mubr.bf16.mxu0 %v988_v32  ;;  %v1004_v43 = vld [vmem:[%s1297_s0 + $0x30] ss:$20 sps:$4 sm:$0xff]  }
   0xe   :  { %860 = vmatprep.subr.bf16.mxu1 %v969_v14  ;;  %v995_v38 = vld [vmem:[%s1298_s1 + $0x110] sm:$0xff]   ;;  %v998_v39 = vld [vmem:[%s1297_s0 + $0x2c] ss:$20 sps:$4 sm:$0xff]   ;;  %v996_v40 = vld [vmem:[%s1298_s1 + $0x118] sm:$0xff]  }
   0xf   :  { %833 = vmatpush3.bf16.msra.mxu0 %v968_v13  ;;  %v1001_v41 = vld [vmem:[%s1297_s0 + $0x28] ss:$20 sps:$4 sm:$0xff]   ;;  %v997_v44 = vld [vmem:[%s1298_s1 + $0x120] sm:$0xff]  }
  0x10   :  { %834 = vmatprep.subr.bf16.mxu0 %v971_v16  ;;  %v1002_v42 = vld [vmem:[%s1297_s0 + $0x34] ss:$20 sps:$4 sm:$0xff]   ;;  %v1007_v45 = vld [vmem:[%s1297_s0 + $0x10] ss:$20 sps:$4 sm:$0xff]  }
  0x11   :  { %861 = vmatpush3.bf16.msra.mxu1 %v970_v15  ;;  %v1000_v46 = vld [vmem:[%s1298_s1 + $0x128] sm:$0xff]  }
  0x12   :  { %862 = vmatprep.subr.bf16.mxu1 %v973_v18 }
  0x13   :  { %835 = vmatpush3.bf16.msra.mxu0 %v972_v17 }
  0x14   :  { %836 = vmatprep.subr.bf16.mxu0 %v975_v20 }
  0x15   :  { %863 = vmatpush3.bf16.msra.mxu1 %v974_v19 }
  0x16   :  { %864 = vmatprep.subr.bf16.mxu1 %v977_v22 }
  0x17   :  { %837 = vmatpush3.bf16.msra.mxu0 %v976_v21 }
  0x18   :  { %838 = vmatprep.subr.bf16.mxu0 %v979_v24 }
  0x19   :  { %865 = vmatpush3.bf16.msra.mxu1 %v978_v23 }
  0x1a   :  { %866 = vmatprep.subr.bf16.mxu1 %v981_v26 }
  0x1b   :  { %839 = vmatpush3.bf16.msra.mxu0 %v980_v25 }
  0x1c   :  { %840 = vmatprep.subr.bf16.mxu0 %v983_v28 }
  0x1d   :  { %867 = vmatpush3.bf16.msra.mxu1 %v982_v27 }
  0x1e   :  { %868 = vmatprep.subr.bf16.mxu1 %v985_v30 }
  0x1f   :  { %841 = vmatpush3.bf16.msra.mxu0 %v984_v29 }
  0x20   :  { %904 = vmatprep.subr.bf16.mxu0 %v990_v34 }
  0x21   :  { %869 = vmatpush3.bf16.msra.mxu1 %v989_v33 }
  0x22   :  { %452 = vmatmul.mubr.bf16.vlgmr.msra.gmra.mrb[0].mxu0 %v986_v31 }
  0x23   :  { %905 = vmatpush3.bf16.msra.mxu0 %v990_v34  ;;  %459 = vmatprep.mubr.bf16.mxu0 %v998_v39 }
  0x24   :  { %501 = vmatmul.mubr.bf16.vlgmr.msra.gmra.mrb[0].mxu1 %v991_v35  ;;  %906 = vmatprep.subr.bf16.mxu0 %v994_v37 }
  0x25   :  { %508 = vmatprep.mubr.bf16.mxu1 %v1002_v42 }
  0x27   :  { %907 = vmatpush3.bf16.msra.mxu0 %v994_v37 }
  0x28   :  { %908 = vmatprep.subr.bf16.mxu0 %v995_v38 }
  0x2a   :  { %460 = vmatmul.mubr.bf16.gmra.mrb[4].mxu0 %v1001_v41 }
  0x2b   :  { %909 = vmatpush3.bf16.msra.mxu0 %v995_v38  ;;  %920 = vmatprep.mubr.bf16.mxu0 %v1007_v45 }
  0x2c   :  { %910 = vmatprep.subr.bf16.mxu0 %v996_v40  ;;  %509 = vmatmul.mubr.bf16.gmra.mrb[4].mxu1 %v1004_v43 }
  0x2f   :  { %911 = vmatpush3.bf16.msra.mxu0 %v996_v40 }
  0x30   :  { %912 = vmatprep.subr.bf16.mxu0 %v997_v44 }
  0x31   :  { %12 = vsyncpa [#allocation3], 0  ;;  %v1005_v47 = vld [vmem:[%s1298_s1 + $0x130] sm:$0xff]   ;;  %v1006_v48 = vld [vmem:[%s1298_s1 + $0x138] sm:$0xff]   ;;  %v1041_v50 = vmov 0.0   ;;  %vm1042_vm0 = vmmov 0  }
  0x32   :  { %v1008_v49 = vld [vmem:[%s1297_s0 + $0x38] ss:$20 sps:$4 sm:$0xff]   ;;  %932 = vmatprep.subr.bf16.mxu1 %v1041_v50  ;;  %948 = vmatprep.mubr.msk.bf16.mxu1 %vm1042_vm0, %v1041_v50  ;;  %v1009_v51 = vld [vmem:[%s1302_s5] sm:$0xff]   ;;  %v1011_v53 = vld [vmem:[%s1302_s5 + $0x10] sm:$0xff]   ;;  %vm585_vm1 = vcmask 261120   ;;  %s1043_s8 = smov [#allocation2]  }
  0x33   :  { %913 = vmatpush3.bf16.msra.mxu0 %v997_v44  ;;  %933 = vmatpush3.bf16.msra.mxu1 %v1009_v51  ;;  %v1010_v52 = vld [vmem:[%s1302_s5 + $0x8] sm:$0xff]   ;;  %v1012_v54 = vld [vmem:[%s1302_s5 + $0x18] sm:$0xff]   ;;  %v1013_v55 = vld [vmem:[%s1302_s5 + $0x20] sm:$0xff]   ;;  %s748_s9 = sshll.u32 %s1043_s8, 4  ;;  %s749_s9 = int_to_ptr.vmem [resolvable:$true] %s748_s9 }
  0x34   :  { %914 = vmatprep.subr.bf16.mxu0 %v1000_v46  ;;  %934 = vmatprep.subr.bf16.mxu1 %v1041_v50  ;;  %v1014_v56 = vld [vmem:[%s1302_s5 + $0x28] sm:$0xff]   ;;  %v1015_v57 = vld [vmem:[%s1302_s5 + $0x30] sm:$0xff]   ;;  %v756_v59 = vld [vmem:[%s1299_s2] ss:$0 sm:$0xff]  ;;  %p1022_p1 = scmp.lt.s32.totalorder %s749_s9, %s749_s9 }
  0x35   :  { %v825_v27 = vld [vmem:[%s1300_s3 + $0x8] sm:$0xff]   ;;  %v818_v28 = vld [vmem:[%s1300_s3] sm:$0xff]  }
  0x36   :  { %v823_v29 = vunpack.c.l.bf16 %v825_v27  ;;  %v819_v31 = vunpack.c.l.bf16 %v818_v28  ;;  %v824_v34 = vunpack.c.h.bf16 %v825_v27  ;;  %v820_v37 = vunpack.c.h.bf16 %v818_v28 }
  0x37   :  { %915 = vmatpush3.bf16.msra.mxu0 %v1000_v46  ;;  %935 = vmatpush3.bf16.msra.mxu1 %v1010_v52  ;;  %v582_v52 = vld [vmem:[%s1301_s4] sm:$0x1]  ;;  %s1017_s4 = scalar_lea.vmem %s749_s9, 32 }
  0x38   :  { %916 = vmatprep.subr.bf16.mxu0 %v1005_v47  ;;  %936 = vmatprep.subr.bf16.mxu1 %v1041_v50  ;;  %p1018_p0 = scmp.ne.s32.totalorder %s749_s9, %s1017_s4  ;;  %p1023_p2 = scmp.lt.s32.totalorder %s1017_s4, %s1017_s4 }
  0x3a   :  { %p1024_p3 = por %p1023_p2, %p1022_p1 }
  0x3b   :  { %917 = vmatpush3.bf16.msra.mxu0 %v1005_v47  ;;  %937 = vmatpush3.bf16.msra.mxu1 %v1011_v53  ;;  %v1016_v53 = vld [vmem:[%s1302_s5 + $0x38] sm:$0xff]  }
  0x3c   :  { %918 = vmatprep.subr.bf16.mxu0 %v1006_v48  ;;  %938 = vmatprep.subr.bf16.mxu1 %v1041_v50  ;;  %p1025_p4 = pnand %p1024_p3, %p1018_p0 }
  0x3f   :  { %919 = vmatpush3.bf16.msra.mxu0 %v1006_v48  ;;  %939 = vmatpush3.bf16.msra.mxu1 %v1012_v54 }
  0x40   :  { %924 = vmatprep.subr.bf16.mxu0 %v1041_v50  ;;  %940 = vmatprep.subr.bf16.mxu1 %v1041_v50 }
  0x42   :  { %921 = vmatmul.mubr.bf16.vlgmr.msra.gmra.mrb[8].mxu0 %v1008_v49 }
  0x43   :  { %928 = vmatprep.mubr.msk.bf16.mxu0 %vm1042_vm0, %v1041_v50  ;;  %941 = vmatpush3.bf16.msra.mxu1 %v1013_v55 }
  0x44   :  { %942 = vmatprep.subr.bf16.mxu1 %v1041_v50 }
  0x47   :  { %943 = vmatpush3.bf16.msra.mxu1 %v1014_v56 }
  0x48   :  { %944 = vmatprep.subr.bf16.mxu1 %v1041_v50 }
  0x4b   :  { %945 = vmatpush3.bf16.msra.mxu1 %v1015_v57 }
  0x4c   :  { %946 = vmatprep.subr.bf16.mxu1 %v1041_v50 }
  0x4f   :  { %947 = vmatpush3.bf16.msra.mxu1 %v1016_v53 }
  0xf5   :  { %v842_v58 = vpop.f32.mrb[0].mxu0 }
  0xf6   :  { %v843_v60 = vpop.f32.mrb[1].mxu0 }
  0xf7   :  { %v844_v61 = vadd.f32 %v843_v60, %v842_v58  ;;  %v845_v62 = vpop.f32.mrb[2].mxu0  ;;  %v870_v63 = vpop.f32.mrb[0].mxu1 }
  0xf8   :  { %v846_v0 = vpop.f32.mrb[3].mxu0  ;;  %v871_v3 = vpop.f32.mrb[1].mxu1 }
  0xf9   :  { %v454_v1 = vadd.f32 %v844_v61, %v756_v59  ;;  %v847_v2 = vadd.f32 %v846_v0, %v845_v62  ;;  %v872_v4 = vadd.f32 %v871_v3, %v870_v63  ;;  %v873_v5 = vpop.f32.mrb[2].mxu1 }
  0xfa   :  { %v874_v7 = vpop.f32.mrb[3].mxu1 }
  0xfb   :  { %v457_v6 = vadd.f32 %v847_v2, %v756_v59  ;;  %v875_v8 = vadd.f32 %v874_v7, %v873_v5  ;;  %v503_v9 = vadd.f32 %v872_v4, %v454_v1 }
  0xfd   :  { %v848_v10 = vpop.f32.mrb[4].mxu0  ;;  %v506_v12 = vadd.f32 %v875_v8, %v457_v6 }
  0xfe   :  { %v849_v11 = vpop.f32.mrb[5].mxu0 }
  0xff   :  { %v850_v13 = vadd.f32 %v849_v11, %v848_v10  ;;  %v851_v14 = vpop.f32.mrb[6].mxu0  ;;  %v876_v15 = vpop.f32.mrb[4].mxu1 }
 0x100   :  { %v852_v16 = vpop.f32.mrb[7].mxu0  ;;  %v877_v19 = vpop.f32.mrb[5].mxu1 }
 0x101   :  { %v462_v17 = vadd.f32 %v850_v13, %v756_v59  ;;  %v853_v18 = vadd.f32 %v852_v16, %v851_v14  ;;  %v878_v20 = vadd.f32 %v877_v19, %v876_v15  ;;  %v879_v21 = vpop.f32.mrb[6].mxu1 }
 0x102   :  { %v880_v23 = vpop.f32.mrb[7].mxu1 }
 0x103   :  { %v465_v22 = vadd.f32 %v853_v18, %v756_v59  ;;  %v881_v24 = vadd.f32 %v880_v23, %v879_v21  ;;  %v511_v25 = vadd.f32 %v878_v20, %v462_v17 }
 0x105   :  { %v514_v26 = vadd.f32 %v881_v24, %v465_v22 }
 0x115   :  { %v922_v30 = vpop.f32.mrb[8].mxu0 }
 0x116   :  { %v560_v32 = vadd.f32 %v922_v30, %v511_v25  ;;  %v551_v33 = vpop.f32.mrb[9].mxu0 }
 0x117   :  { %v552_v35 = vadd.f32 %v551_v33, %v503_v9  ;;  %v923_v36 = vpop.f32.mrb[10].mxu0 }
 0x118   :  { %v576_v38 = vadd.f32 %v823_v29, %v560_v32  ;;  %v563_v39 = vadd.f32 %v923_v36, %v514_v26  ;;  %v554_v40 = vpop.f32.mrb[11].mxu0 }
 0x119   :  { %v574_v41 = vadd.f32 %v819_v31, %v552_v35  ;;  %v555_v42 = vadd.f32 %v554_v40, %v506_v12 }
 0x11a   :  { %v577_v43 = vadd.f32 %v824_v34, %v563_v39  ;;  %v580_v45 = vmax.f32 %v576_v38, 0.0 }
 0x11b   :  { %v575_v44 = vadd.f32 %v820_v37, %v555_v42  ;;  %v578_v47 = vmax.f32 %v574_v41, 0.0 }
 0x11c   :  { %v581_v46 = vmax.f32 %v577_v43, 0.0 }
 0x11d   :  { %v579_v48 = vmax.f32 %v575_v44, 0.0 }
 0x11e   :  { %v584_v49 = vpack.c.bf16 %v581_v46, %v580_v45 }
 0x11f   :  { %v583_v51 = vpack.c.bf16 %v579_v48, %v578_v47 }
 0x121   :  { %925 = vmatpush3.bf16.msra.mxu0 %v583_v51 }
 0x122   :  { %926 = vmatprep.subr.bf16.mxu0 %v1041_v50  ;;  %v808_v50 = vld [vmem:[%s1303_s6] ss:$0 sm:$0xff] }
 0x125   :  { %927 = vmatpush3.bf16.msra.mxu0 %v584_v49 }
 0x128   :  { %929 = vmatmul.mubr.msk.bf16.vlgmr.msra.gmra.mrb[12].mxu0 %vm585_vm1, %v582_v52 }
 0x1fb   :  { %v623_v54 = vpop.f32.mrb[12].mxu0 }
 0x1fc   :  { %v629_v55 = vpack.c.bf16 %v623_v54, %v623_v54  ;;  %v930_v56 = vpop.f32.mrb[13].mxu0 }
 0x1fd   :  { %v626_v57 = vpop.f32.mrb[14].mxu0 }
 0x1fe   :  { %v931_v58 = vpop.f32.mrb[15].mxu0  ;;  %949 = vmatmul.mubr.bf16.vlgmr.msra.gmra.mrb[8].mxu1 %v629_v55 }
 0x2d1   :  { %v735_v59 = vpop.f32.mrb[8].mxu1 }
 0x2d2   :  { %v736_v60 = vadd.f32 %v808_v50, %v735_v59  ;;  %v950_v61 = vpop.f32.mrb[9].mxu1 }
 0x2d3   :  { %v738_v62 = vpop.f32.mrb[10].mxu1 }
 0x2d4   :  { %741 = vst [vmem:[#allocation2] sm:$0x3] %v736_v60  ;;  %v951_v63 = vpop.f32.mrb[11].mxu1 }
 0x2d5   :  { %1028 = shalt.err (!%p1025_p4)
}
 0x2d6   :  { %s1029_s6 = scalar_lea.hbm %s1304_s7, 32 }
 0x2d7   :  { %p1030_p5 = scmp.ne.s32.totalorder %s1304_s7, %s1029_s6  ;;  %p1033_p6 = scmp.lt.u32.totalorder %s1029_s6, %s1304_s7 }
 0x2d9   :  { %p1035_p7 = pnand %p1033_p6, %p1030_p5 }
 0x2db   :  { %1038 = shalt.err (!%p1035_p7)
}
 0x2dc   :  { %751 = dma.vmem_to_hbm [thread:$0]  %s749_s9, 32, %s1304_s7, [#allocation3]  }
 0x2dd   :  { %1039 = dma.done.wait [#allocation3], 32  }
 0x2de   :  { %1040 = vsyncadd [#allocation3], 4294967264 }
 0x2df   :  { %755 = vsyncpa [#allocation3], 1 }

</bundles_post_ra>
